<compile_context>
chip_gen: v7x
topology: tpu7x:2x2x1
jax: 0.10.0
libtpu: 0.0.40
codegen_flags: <defaults>
</compile_context>

<pallas_src>
import jax
import jax.numpy as jnp
from jax.experimental import pallas as pl
from jax.experimental.pallas import tpu as pltpu

LANE = 128
MROW = 16  # bf16 sublane-pack granularity; safe for fp32 blocks too.


def _round_up(x, m):
    return pl.cdiv(x, m) * m


def mlp_kernel(x_ref, w1_ref, b1_ref, w2_ref, b2_ref, w3_ref, b3_ref, o_ref):
    # Inputs/weights arrive as bf16; accumulation and bias adds stay fp32.
    h1 = jnp.dot(x_ref[...], w1_ref[...],
                 preferred_element_type=jnp.float32) + b1_ref[...]
    h1 = jnp.maximum(h1, 0.0).astype(jnp.bfloat16)
    h2 = jnp.dot(h1, w2_ref[...],
                 preferred_element_type=jnp.float32) + b2_ref[...]
    h2 = jnp.maximum(h2, 0.0).astype(jnp.bfloat16)
    # fc3 (no activation) -> lane-dense (128-padded) fp32 output slab.
    o_ref[...] = (
        jnp.dot(h2, w3_ref[...], preferred_element_type=jnp.float32) + b3_ref[...]
    ).astype(o_ref.dtype)


def prepare_params(params):
    """One-time preprocessing of the fp32 master params for the Pallas forward.

    Casts weights to bf16 and lane-pads fc3 to a multiple of 128. Keep the
    fp32 masters for optimizer updates and re-run this after each update.
    Returns (prepared_params, num_actions).
    """
    w1, b1, w2, b2, w3, b3 = params
    num_actions = w3.shape[1]
    n_pad = _round_up(num_actions, LANE)
    w3_p = jnp.zeros((w3.shape[0], n_pad), w3.dtype).at[:, :num_actions].set(w3)
    b3_p = jnp.zeros((1, n_pad), b3.dtype).at[:, :num_actions].set(b3)
    prepared = (
        w1.astype(jnp.bfloat16), b1,            # biases stay fp32
        w2.astype(jnp.bfloat16), b2,
        w3_p.astype(jnp.bfloat16), b3_p,
    )
    return prepared, num_actions


def network_forward(x, prepared, num_actions):
    """Pallas forward: fc1->relu->fc2->relu->fc3.

    x: (B, in_features) fp32. `prepared` from prepare_params.
    Returns (B, num_actions) fp32.
    """
    w1, b1, w2, b2, w3, b3 = prepared
    B, in_dim = x.shape
    fc1_dims = w1.shape[1]
    fc2_dims = w2.shape[1]
    n_pad = w3.shape[1]

    # ---- batch tiling --------------------------------------------------
    # Tiny batches: one step. Otherwise: >= 2 steps (v7x megacore sharding of
    # the "parallel" axis) and <= ~512 rows per step to amortize per-step
    # overhead; tm kept a multiple of 16 for bf16 sublane packing.
    b_sub = _round_up(B, MROW)
    if b_sub <= MROW:
        tm = b_sub
        n_steps = 1
    else:
        n_steps = max(2, pl.cdiv(b_sub, 512))
        tm = _round_up(pl.cdiv(b_sub, n_steps), MROW)
        n_steps = pl.cdiv(b_sub, tm)
    b_pad = n_steps * tm

    # ---- bf16 activation streaming; pad only when needed ----------------
    x_b = x.astype(jnp.bfloat16)
    if b_pad != B:
        x_b = jnp.zeros((b_pad, in_dim), jnp.bfloat16).at[:B, :].set(x_b)

    flops = 2 * b_pad * (in_dim * fc1_dims + fc1_dims * fc2_dims + fc2_dims * n_pad)
    bytes_accessed = (
        (w1.size + w2.size + w3.size) * 2          # bf16 weights (VMEM-resident)
        + (b1.size + b2.size + b3.size) * 4        # fp32 biases
        + x_b.size * 2 + b_pad * n_pad * 4         # bf16 in / fp32 out
    )

    x_spec = pl.BlockSpec((tm, in_dim), lambda i: (i, 0))
    out_spec = pl.BlockSpec((tm, n_pad), lambda i: (i, 0))

    def run(single_buffer_consts):
        kw = {}
        if single_buffer_consts:
            # Constant-index operands never change block -> single buffer.
            kw = dict(pipeline_mode=pl.Buffered(1))

        def const(a):
            return pl.BlockSpec(a.shape, lambda i: (0,) * a.ndim, **kw)

        return pl.pallas_call(
            mlp_kernel,
            out_shape=jax.ShapeDtypeStruct((b_pad, n_pad), jnp.float32),
            grid=(n_steps,),
            in_specs=[x_spec, const(w1), const(b1), const(w2), const(b2),
                      const(w3), const(b3)],
            out_specs=out_spec,
            compiler_params=pltpu.CompilerParams(
                dimension_semantics=("parallel",)),
            cost_estimate=pl.CostEstimate(
                flops=flops, transcendentals=0, bytes_accessed=bytes_accessed),
        )(x_b, w1, b1, w2, b2, w3, b3)

    try:
        out_pad = run(True)
    except Exception:
        # pl.Buffered(1) on top-level pallas_call operands is not supported on
        # every jax version; fall back to default double-buffering.
        out_pad = run(False)

    return out_pad[:B, :num_actions]


def init_params(key, input_dim, num_actions, fc1_dims=1024, fc2_dims=512):
    """Deterministic init mimicking torch.nn.Linear's U(-1/sqrt(fan_in), +1/sqrt(fan_in))."""
    def linear(key, fan_in, fan_out):
        kw, kb = jax.random.split(key)
        bound = 1.0 / jnp.sqrt(fan_in)
        w = jax.random.uniform(kw, (fan_in, fan_out), jnp.float32, -bound, bound)
        b = jax.random.uniform(kb, (1, fan_out), jnp.float32, -bound, bound)
        return w, b

    k1, k2, k3 = jax.random.split(key, 3)
    w1, b1 = linear(k1, input_dim, fc1_dims)
    w2, b2 = linear(k2, fc1_dims, fc2_dims)
    w3, b3 = linear(k3, fc2_dims, num_actions)
    return (w1, b1, w2, b2, w3, b3)
    # TODO(synk): Adam optimizer + MSELoss from the module are training
    # machinery, not part of the forward pass, and are not implemented here.


if __name__ == "__main__":
    # Shapes consistent with Network(alpha, inputShape=(8,), numActions=4)
    input_dim = 8
    num_actions = 4

    key = jax.random.PRNGKey(0)
    k_params, k_x1, k_x2 = jax.random.split(key, 3)
    params = init_params(k_params, input_dim, num_actions)
    prepared, n_act = prepare_params(params)
    w1, b1, w2, b2, w3, b3 = params

    def bf16_ref(x):
        h1 = jnp.maximum(jnp.dot(x.astype(jnp.bfloat16), w1.astype(jnp.bfloat16),
                                 preferred_element_type=jnp.float32) + b1, 0.0)
        h2 = jnp.maximum(jnp.dot(h1.astype(jnp.bfloat16), w2.astype(jnp.bfloat16),
                                 preferred_element_type=jnp.float32) + b2, 0.0)
        return jnp.dot(h2.astype(jnp.bfloat16), w3.astype(jnp.bfloat16),
                       preferred_element_type=jnp.float32) + b3

    def fp32_ref(x):
        h = jnp.maximum(x @ w1 + b1, 0.0)
        h = jnp.maximum(h @ w2 + b2, 0.0)
        return h @ w3 + b3

    # ---- tiny inference batch (single grid step) ------------------------
    x_small = jax.random.normal(k_x1, (2, input_dim), jnp.float32)
    out_small = network_forward(x_small, prepared, n_act)
    jax.block_until_ready(out_small)
    assert out_small.shape == (2, num_actions)
    assert jnp.allclose(out_small, bf16_ref(x_small), atol=2e-2, rtol=2e-2), (
        float(jnp.max(jnp.abs(out_small - bf16_ref(x_small)))))
    assert jnp.allclose(out_small, fp32_ref(x_small), atol=5e-2, rtol=5e-2)

    # ---- larger training-style batch (>= 2 grid steps) ------------------
    x_big = jax.random.normal(k_x2, (64, input_dim), jnp.float32)
    out_big = network_forward(x_big, prepared, n_act)
    jax.block_until_ready(out_big)
    assert out_big.shape == (64, num_actions)
    assert jnp.allclose(out_big, bf16_ref(x_big), atol=2e-2, rtol=2e-2), (
        float(jnp.max(jnp.abs(out_big - bf16_ref(x_big)))))
    assert jnp.allclose(out_big, fp32_ref(x_big), atol=5e-2, rtol=5e-2)

    print("KERNEL_OK")
</pallas_src>

<mosaic_0001>
module attributes {stable_mosaic.version = 11 : i64} {
  func.func @mlp_kernel(%arg0: i32, %arg1: memref<16x8xbf16, #tpu.memory_space<vmem>>, %arg2: memref<8x1024xbf16, #tpu.memory_space<vmem>>, %arg3: memref<1x1024xf32, #tpu.memory_space<vmem>>, %arg4: memref<1024x512xbf16, #tpu.memory_space<vmem>>, %arg5: memref<1x512xf32, #tpu.memory_space<vmem>>, %arg6: memref<512x128xbf16, #tpu.memory_space<vmem>>, %arg7: memref<1x128xf32, #tpu.memory_space<vmem>>, %arg8: memref<16x128xf32, #tpu.memory_space<vmem>>) attributes {dimension_semantics = [#tpu.dimension_semantics<parallel>], iteration_bounds = array<i64: 1>, scalar_prefetch = 0 : i64, scratch_operands = 0 : i64, tpu.core_type = #tpu.core_type<tc>, window_params = [{transform_indices = @transform_0, window_bounds = array<i64: 16, 8>}, {pipeline_mode = #tpu.pipeline_mode<synchronous>, transform_indices = @transform_1, window_bounds = array<i64: 8, 1024>}, {pipeline_mode = #tpu.pipeline_mode<synchronous>, transform_indices = @transform_2, window_bounds = array<i64: 1, 1024>}, {pipeline_mode = #tpu.pipeline_mode<synchronous>, transform_indices = @transform_3, window_bounds = array<i64: 1024, 512>}, {pipeline_mode = #tpu.pipeline_mode<synchronous>, transform_indices = @transform_4, window_bounds = array<i64: 1, 512>}, {pipeline_mode = #tpu.pipeline_mode<synchronous>, transform_indices = @transform_5, window_bounds = array<i64: 512, 128>}, {pipeline_mode = #tpu.pipeline_mode<synchronous>, transform_indices = @transform_6, window_bounds = array<i64: 1, 128>}, {transform_indices = @transform_7, window_bounds = array<i64: 16, 128>}]} {
    %c0 = arith.constant 0 : index
    %c0_0 = arith.constant 0 : index
    %0 = vector.load %arg1[%c0, %c0_0] : memref<16x8xbf16, #tpu.memory_space<vmem>>, vector<16x8xbf16>
    %c0_1 = arith.constant 0 : index
    %c0_2 = arith.constant 0 : index
    %1 = vector.load %arg2[%c0_1, %c0_2] : memref<8x1024xbf16, #tpu.memory_space<vmem>>, vector<8x1024xbf16>
    %cst = arith.constant dense<0.000000e+00> : vector<16x1024xf32>
    %2 = tpu.matmul %0, %1, %cst {dimension_numbers = #tpu.dot_dimension_numbers<[1], [0], [0], [1], [0, 0, 1, 1], [], []>} : vector<16x8xbf16>, vector<8x1024xbf16>, vector<16x1024xf32> -> vector<16x1024xf32>
    %c0_3 = arith.constant 0 : index
    %c0_4 = arith.constant 0 : index
    %3 = vector.load %arg3[%c0_3, %c0_4] : memref<1x1024xf32, #tpu.memory_space<vmem>>, vector<1x1024xf32>
    %4 = vector.broadcast %3 : vector<1x1024xf32> to vector<16x1024xf32>
    %5 = arith.addf %2, %4 : vector<16x1024xf32>
    %cst_5 = arith.constant 0.000000e+00 : f32
    %6 = vector.broadcast %cst_5 : f32 to vector<16x1024xf32>
    %7 = arith.maximumf %5, %6 : vector<16x1024xf32>
    %8 = arith.truncf %7 : vector<16x1024xf32> to vector<16x1024xbf16>
    %c0_6 = arith.constant 0 : index
    %c0_7 = arith.constant 0 : index
    %9 = vector.load %arg4[%c0_6, %c0_7] : memref<1024x512xbf16, #tpu.memory_space<vmem>>, vector<1024x512xbf16>
    %cst_8 = arith.constant dense<0.000000e+00> : vector<16x512xf32>
    %10 = tpu.matmul %8, %9, %cst_8 {dimension_numbers = #tpu.dot_dimension_numbers<[1], [0], [0], [1], [0, 0, 1, 1], [], []>} : vector<16x1024xbf16>, vector<1024x512xbf16>, vector<16x512xf32> -> vector<16x512xf32>
    %c0_9 = arith.constant 0 : index
    %c0_10 = arith.constant 0 : index
    %11 = vector.load %arg5[%c0_9, %c0_10] : memref<1x512xf32, #tpu.memory_space<vmem>>, vector<1x512xf32>
    %12 = vector.broadcast %11 : vector<1x512xf32> to vector<16x512xf32>
    %13 = arith.addf %10, %12 : vector<16x512xf32>
    %cst_11 = arith.constant 0.000000e+00 : f32
    %14 = vector.broadcast %cst_11 : f32 to vector<16x512xf32>
    %15 = arith.maximumf %13, %14 : vector<16x512xf32>
    %16 = arith.truncf %15 : vector<16x512xf32> to vector<16x512xbf16>
    %c0_12 = arith.constant 0 : index
    %c0_13 = arith.constant 0 : index
    %17 = vector.load %arg6[%c0_12, %c0_13] : memref<512x128xbf16, #tpu.memory_space<vmem>>, vector<512x128xbf16>
    %cst_14 = arith.constant dense<0.000000e+00> : vector<16x128xf32>
    %18 = tpu.matmul %16, %17, %cst_14 {dimension_numbers = #tpu.dot_dimension_numbers<[1], [0], [0], [1], [0, 0, 1, 1], [], []>} : vector<16x512xbf16>, vector<512x128xbf16>, vector<16x128xf32> -> vector<16x128xf32>
    %c0_15 = arith.constant 0 : index
    %c0_16 = arith.constant 0 : index
    %19 = vector.load %arg7[%c0_15, %c0_16] : memref<1x128xf32, #tpu.memory_space<vmem>>, vector<1x128xf32>
    %20 = vector.broadcast %19 : vector<1x128xf32> to vector<16x128xf32>
    %21 = arith.addf %18, %20 : vector<16x128xf32>
    %c0_17 = arith.constant 0 : index
    %c0_18 = arith.constant 0 : index
    %22 = vector.load %arg8[%c0_17, %c0_18] : memref<16x128xf32, #tpu.memory_space<vmem>>, vector<16x128xf32>
    tpu.vector_store %arg8[%c0_17, %c0_18], %21 {strides = array<i32>} : memref<16x128xf32, #tpu.memory_space<vmem>>, vector<16x128xf32>,
    return
  }
  func.func @transform_0(%arg0: i32) -> (i32, i32) {
    %c0_i32 = arith.constant 0 : i32
    %c0_i32_0 = arith.constant 0 : i32
    return %arg0, %c0_i32 : i32, i32
  }
  func.func @transform_1(%arg0: i32) -> (i32, i32) {
    %c0_i32 = arith.constant 0 : i32
    %c0_i32_0 = arith.constant 0 : i32
    %c0_i32_1 = arith.constant 0 : i32
    return %c0_i32, %c0_i32_0 : i32, i32
  }
  func.func @transform_2(%arg0: i32) -> (i32, i32) {
    %c0_i32 = arith.constant 0 : i32
    %c0_i32_0 = arith.constant 0 : i32
    %c0_i32_1 = arith.constant 0 : i32
    return %c0_i32, %c0_i32_0 : i32, i32
  }
  func.func @transform_3(%arg0: i32) -> (i32, i32) {
    %c0_i32 = arith.constant 0 : i32
    %c0_i32_0 = arith.constant 0 : i32
    %c0_i32_1 = arith.constant 0 : i32
    return %c0_i32, %c0_i32_0 : i32, i32
  }
  func.func @transform_4(%arg0: i32) -> (i32, i32) {
    %c0_i32 = arith.constant 0 : i32
    %c0_i32_0 = arith.constant 0 : i32
    %c0_i32_1 = arith.constant 0 : i32
    return %c0_i32, %c0_i32_0 : i32, i32
  }
  func.func @transform_5(%arg0: i32) -> (i32, i32) {
    %c0_i32 = arith.constant 0 : i32
    %c0_i32_0 = arith.constant 0 : i32
    %c0_i32_1 = arith.constant 0 : i32
    return %c0_i32, %c0_i32_0 : i32, i32
  }
  func.func @transform_6(%arg0: i32) -> (i32, i32) {
    %c0_i32 = arith.constant 0 : i32
    %c0_i32_0 = arith.constant 0 : i32
    %c0_i32_1 = arith.constant 0 : i32
    return %c0_i32, %c0_i32_0 : i32, i32
  }
  func.func @transform_7(%arg0: i32) -> (i32, i32) {
    %c0_i32 = arith.constant 0 : i32
    %c0_i32_0 = arith.constant 0 : i32
    return %arg0, %c0_i32 : i32, i32
  }
}

module attributes {stable_mosaic.version = 11 : i64} {
  func.func @mlp_kernel(%arg0: i32, %arg1: memref<16x8xbf16, #tpu.memory_space<vmem>>, %arg2: memref<8x1024xbf16, #tpu.memory_space<vmem>>, %arg3: memref<1x1024xf32, #tpu.memory_space<vmem>>, %arg4: memref<1024x512xbf16, #tpu.memory_space<vmem>>, %arg5: memref<1x512xf32, #tpu.memory_space<vmem>>, %arg6: memref<512x128xbf16, #tpu.memory_space<vmem>>, %arg7: memref<1x128xf32, #tpu.memory_space<vmem>>, %arg8: memref<16x128xf32, #tpu.memory_space<vmem>>) attributes {dimension_semantics = [#tpu.dimension_semantics<parallel>], iteration_bounds = array<i64: 1>, scalar_prefetch = 0 : i64, scratch_operands = 0 : i64, tpu.core_type = #tpu.core_type<tc>, window_params = [{transform_indices = @transform_0, window_bounds = array<i64: 16, 8>}, {pipeline_mode = #tpu.pipeline_mode<synchronous>, transform_indices = @transform_1, window_bounds = array<i64: 8, 1024>}, {pipeline_mode = #tpu.pipeline_mode<synchronous>, transform_indices = @transform_2, window_bounds = array<i64: 1, 1024>}, {pipeline_mode = #tpu.pipeline_mode<synchronous>, transform_indices = @transform_3, window_bounds = array<i64: 1024, 512>}, {pipeline_mode = #tpu.pipeline_mode<synchronous>, transform_indices = @transform_4, window_bounds = array<i64: 1, 512>}, {pipeline_mode = #tpu.pipeline_mode<synchronous>, transform_indices = @transform_5, window_bounds = array<i64: 512, 128>}, {pipeline_mode = #tpu.pipeline_mode<synchronous>, transform_indices = @transform_6, window_bounds = array<i64: 1, 128>}, {transform_indices = @transform_7, window_bounds = array<i64: 16, 128>}]} {
    %c0 = arith.constant 0 : index
    %c0_0 = arith.constant 0 : index
    %0 = vector.load %arg1[%c0, %c0_0] : memref<16x8xbf16, #tpu.memory_space<vmem>>, vector<16x8xbf16>
    %c0_1 = arith.constant 0 : index
    %c0_2 = arith.constant 0 : index
    %1 = vector.load %arg2[%c0_1, %c0_2] : memref<8x1024xbf16, #tpu.memory_space<vmem>>, vector<8x1024xbf16>
    %cst = arith.constant dense<0.000000e+00> : vector<16x1024xf32>
    %2 = tpu.matmul %0, %1, %cst {dimension_numbers = #tpu.dot_dimension_numbers<[1], [0], [0], [1], [0, 0, 1, 1], [], []>} : vector<16x8xbf16>, vector<8x1024xbf16>, vector<16x1024xf32> -> vector<16x1024xf32>
    %c0_3 = arith.constant 0 : index
    %c0_4 = arith.constant 0 : index
    %3 = vector.load %arg3[%c0_3, %c0_4] : memref<1x1024xf32, #tpu.memory_space<vmem>>, vector<1x1024xf32>
    %4 = vector.broadcast %3 : vector<1x1024xf32> to vector<16x1024xf32>
    %5 = arith.addf %2, %4 : vector<16x1024xf32>
    %cst_5 = arith.constant 0.000000e+00 : f32
    %6 = vector.broadcast %cst_5 : f32 to vector<16x1024xf32>
    %7 = arith.maximumf %5, %6 : vector<16x1024xf32>
    %8 = arith.truncf %7 : vector<16x1024xf32> to vector<16x1024xbf16>
    %c0_6 = arith.constant 0 : index
    %c0_7 = arith.constant 0 : index
    %9 = vector.load %arg4[%c0_6, %c0_7] : memref<1024x512xbf16, #tpu.memory_space<vmem>>, vector<1024x512xbf16>
    %cst_8 = arith.constant dense<0.000000e+00> : vector<16x512xf32>
    %10 = tpu.matmul %8, %9, %cst_8 {dimension_numbers = #tpu.dot_dimension_numbers<[1], [0], [0], [1], [0, 0, 1, 1], [], []>} : vector<16x1024xbf16>, vector<1024x512xbf16>, vector<16x512xf32> -> vector<16x512xf32>
    %c0_9 = arith.constant 0 : index
    %c0_10 = arith.constant 0 : index
    %11 = vector.load %arg5[%c0_9, %c0_10] : memref<1x512xf32, #tpu.memory_space<vmem>>, vector<1x512xf32>
    %12 = vector.broadcast %11 : vector<1x512xf32> to vector<16x512xf32>
    %13 = arith.addf %10, %12 : vector<16x512xf32>
    %cst_11 = arith.constant 0.000000e+00 : f32
    %14 = vector.broadcast %cst_11 : f32 to vector<16x512xf32>
    %15 = arith.maximumf %13, %14 : vector<16x512xf32>
    %16 = arith.truncf %15 : vector<16x512xf32> to vector<16x512xbf16>
    %c0_12 = arith.constant 0 : index
    %c0_13 = arith.constant 0 : index
    %17 = vector.load %arg6[%c0_12, %c0_13] : memref<512x128xbf16, #tpu.memory_space<vmem>>, vector<512x128xbf16>
    %cst_14 = arith.constant dense<0.000000e+00> : vector<16x128xf32>
    %18 = tpu.matmul %16, %17, %cst_14 {dimension_numbers = #tpu.dot_dimension_numbers<[1], [0], [0], [1], [0, 0, 1, 1], [], []>} : vector<16x512xbf16>, vector<512x128xbf16>, vector<16x128xf32> -> vector<16x128xf32>
    %c0_15 = arith.constant 0 : index
    %c0_16 = arith.constant 0 : index
    %19 = vector.load %arg7[%c0_15, %c0_16] : memref<1x128xf32, #tpu.memory_space<vmem>>, vector<1x128xf32>
    %20 = vector.broadcast %19 : vector<1x128xf32> to vector<16x128xf32>
    %21 = arith.addf %18, %20 : vector<16x128xf32>
    %c0_17 = arith.constant 0 : index
    %c0_18 = arith.constant 0 : index
    %22 = vector.load %arg8[%c0_17, %c0_18] : memref<16x128xf32, #tpu.memory_space<vmem>>, vector<16x128xf32>
    tpu.vector_store %arg8[%c0_17, %c0_18], %21 {strides = array<i32>} : memref<16x128xf32, #tpu.memory_space<vmem>>, vector<16x128xf32>,
    return
  }
  func.func @transform_0(%arg0: i32) -> (i32, i32) {
    %c0_i32 = arith.constant 0 : i32
    %c0_i32_0 = arith.constant 0 : i32
    return %arg0, %c0_i32 : i32, i32
  }
  func.func @transform_1(%arg0: i32) -> (i32, i32) {
    %c0_i32 = arith.constant 0 : i32
    %c0_i32_0 = arith.constant 0 : i32
    %c0_i32_1 = arith.constant 0 : i32
    return %c0_i32, %c0_i32_0 : i32, i32
  }
  func.func @transform_2(%arg0: i32) -> (i32, i32) {
    %c0_i32 = arith.constant 0 : i32
    %c0_i32_0 = arith.constant 0 : i32
    %c0_i32_1 = arith.constant 0 : i32
    return %c0_i32, %c0_i32_0 : i32, i32
  }
  func.func @transform_3(%arg0: i32) -> (i32, i32) {
    %c0_i32 = arith.constant 0 : i32
    %c0_i32_0 = arith.constant 0 : i32
    %c0_i32_1 = arith.constant 0 : i32
    return %c0_i32, %c0_i32_0 : i32, i32
  }
  func.func @transform_4(%arg0: i32) -> (i32, i32) {
    %c0_i32 = arith.constant 0 : i32
    %c0_i32_0 = arith.constant 0 : i32
    %c0_i32_1 = arith.constant 0 : i32
    return %c0_i32, %c0_i32_0 : i32, i32
  }
  func.func @transform_5(%arg0: i32) -> (i32, i32) {
    %c0_i32 = arith.constant 0 : i32
    %c0_i32_0 = arith.constant 0 : i32
    %c0_i32_1 = arith.constant 0 : i32
    return %c0_i32, %c0_i32_0 : i32, i32
  }
  func.func @transform_6(%arg0: i32) -> (i32, i32) {
    %c0_i32 = arith.constant 0 : i32
    %c0_i32_0 = arith.constant 0 : i32
    %c0_i32_1 = arith.constant 0 : i32
    return %c0_i32, %c0_i32_0 : i32, i32
  }
  func.func @transform_7(%arg0: i32) -> (i32, i32) {
    %c0_i32 = arith.constant 0 : i32
    %c0_i32_0 = arith.constant 0 : i32
    return %arg0, %c0_i32 : i32, i32
  }
}

</mosaic_0001>

<bundles_post_ra>
// kernel: tpu_custom_call.1
= control target key start
LH: loop header
LB: loop body
LE: loop exit
PB: predicated region body
PF: predicated region fallthrough
CT: control target
= control target key end

     0   :  { %12 = vsyncpa [#allocation3], 0  ;;  %s3735_s0 = inlined_call_operand.vmem [shape: bf16[16,8], index: 0, kind: input, shape index: {}]   ;;  %s3736_s1 = inlined_call_operand.hbm [shape: bf16[8,1024], index: 1, kind: input, shape index: {}]   ;;  %s3737_s2 = inlined_call_operand.vmem [shape: f32[1,1024], index: 2, kind: input, shape index: {}]   ;;  %s3738_s3 = inlined_call_operand.hbm [shape: bf16[1024,512], index: 3, kind: input, shape index: {}]   ;;  %s3739_s4 = inlined_call_operand.vmem [shape: f32[1,512], index: 4, kind: input, shape index: {}]   ;;  %s3740_s5 = inlined_call_operand.hbm [shape: bf16[512,128], index: 5, kind: input, shape index: {}]   ;;  %s3741_s6 = inlined_call_operand.vmem [shape: f32[1,128], index: 6, kind: input, shape index: {}]   ;;  %s3742_s7 = inlined_call_operand.hbm [shape: f32[16,128], index: 7, kind: output, shape index: {}]  }
   0x1   :  { %13 = vsyncpa [#allocation6], 0 }
   0x2   :  { %14 = vsyncpa [#allocation4], 0  ;;  %s3556_s24 = smov [#allocation5]   ;;  %s3462_s28 = scalar_lea.hbm %s3738_s3, 32768 }
   0x3   :  { %s34_s25 = sshll.u32 %s3556_s24, 4  ;;  %p3463_p0 = scmp.ne.s32.totalorder %s3738_s3, %s3462_s28  ;;  %s35_s25 = int_to_ptr.vmem [resolvable:$true] %s34_s25 }
   0x4   :  { %p3466_p1 = scmp.lt.u32.totalorder %s3462_s28, %s3738_s3 }
   0x6   :  { %p3468_p2 = pnand %p3466_p1, %p3463_p0 }
   0x8   :  { %3471 = shalt.err (!%p3468_p2)
}
   0x9   :  { %s3472_s10 = scalar_lea.vmem %s35_s25, 32768  ;;  %p3477_p4 = scmp.lt.s32.totalorder %s35_s25, %s35_s25 }
   0xa   :  { %p3473_p3 = scmp.ne.s32.totalorder %s35_s25, %s3472_s10  ;;  %p3478_p5 = scmp.lt.s32.totalorder %s3472_s10, %s3472_s10 }
   0xc   :  { %p3479_p6 = por %p3478_p5, %p3477_p4 }
   0xe   :  { %p3480_p7 = pnand %p3479_p6, %p3473_p3 }
  0x10   :  { %3483 = shalt.err (!%p3480_p7)
}
  0x11   :  { %s3557_s11 = smov 256   ;;  %s3558_s12 = smov 16  }
  0x12   :  { %40 = dma.hbm_to_vmem [thread:$0]  %s3738_s3, 32768, %s35_s25, [#allocation6], %s3557_s11, %s3557_s11, %s3558_s12  }
  0x13   :  { %s3559_s15 = smov [#allocation2]   ;;  %s3560_s17 = smov [#allocation7]  }
  0x14   :  { %s23_s16 = sshll.u32 %s3559_s15, 4  ;;  %s48_s18 = sshll.u32 %s3560_s17, 4  ;;  %s24_s16 = int_to_ptr.vmem [resolvable:$true] %s23_s16  ;;  %s49_s18 = int_to_ptr.vmem [resolvable:$true] %s48_s18 }
  0x15   :  { %s3484_s21 = scalar_lea.hbm %s3736_s1, 512 }
  0x16   :  { %p3485_p8 = scmp.ne.s32.totalorder %s3736_s1, %s3484_s21  ;;  %p3488_p9 = scmp.lt.u32.totalorder %s3484_s21, %s3736_s1 }
  0x18   :  { %p3490_p10 = pnand %p3488_p9, %p3485_p8 }
  0x1a   :  { %3493 = shalt.err (!%p3490_p10)
}
  0x1b   :  { %s3494_s3 = scalar_lea.vmem %s24_s16, 512  ;;  %p3499_p12 = scmp.lt.s32.totalorder %s24_s16, %s24_s16 }
  0x1c   :  { %p3495_p11 = scmp.ne.s32.totalorder %s24_s16, %s3494_s3  ;;  %p3500_p13 = scmp.lt.s32.totalorder %s3494_s3, %s3494_s3 }
  0x1e   :  { %p3501_p0 = por %p3500_p13, %p3499_p12 }
  0x20   :  { %p3502_p1 = pnand %p3501_p0, %p3495_p11 }
  0x22   :  { %3505 = shalt.err (!%p3502_p1)
}
  0x23   :  { %26 = dma.hbm_to_vmem [thread:$0]  %s3736_s1, 512, %s24_s16, [#allocation3]  }
  0x24   :  { %s3506_s30 = scalar_lea.hbm %s3740_s5, 4096 }
  0x25   :  { %p3507_p2 = scmp.ne.s32.totalorder %s3740_s5, %s3506_s30  ;;  %p3510_p3 = scmp.lt.u32.totalorder %s3506_s30, %s3740_s5 }
  0x27   :  { %p3512_p4 = pnand %p3510_p3, %p3507_p2 }
  0x29   :  { %3515 = shalt.err (!%p3512_p4)
}
  0x2a   :  { %s3516_s12 = scalar_lea.vmem %s49_s18, 4096  ;;  %p3521_p6 = scmp.lt.s32.totalorder %s49_s18, %s49_s18 }
  0x2b   :  { %p3517_p5 = scmp.ne.s32.totalorder %s49_s18, %s3516_s12  ;;  %p3522_p7 = scmp.lt.s32.totalorder %s3516_s12, %s3516_s12 }
  0x2d   :  { %p3523_p8 = por %p3522_p7, %p3521_p6 }
  0x2f   :  { %p3524_p9 = pnand %p3523_p8, %p3517_p5 }
  0x31   :  { %3527 = shalt.err (!%p3524_p9)
}
  0x32   :  { %s3561_s1 = smov 64   ;;  %s3562_s13 = smov 4  }
  0x33   :  { %54 = dma.hbm_to_vmem [thread:$0]  %s3740_s5, 4096, %s49_s18, [#allocation6], %s3561_s1, %s3561_s1, %s3562_s13  }
  0x34   :  { %3550 = dma.done.wait [#allocation3], 512  }
  0x35   :  { %3551 = vsyncadd [#allocation3], 4294966784 }
  0x36   :  { %3552 = dma.done.wait [#allocation6], 36864  }
  0x37   :  { %3553 = vsyncadd [#allocation6], 4294930432  ;;  %v3563_v0 = vmov 0   ;;  %v69_v1 = vld [vmem:[#allocation2] sm:$0xff]  ;;  %vm144_vm0 = vcmask 1043456   ;;  %v70_v4 = vld [vmem:[#allocation2 + $0x8] sm:$0xff] }
  0x38   :  { %201 = vmatprep.mubr.bf16.mxu0 %v3563_v0  ;;  %244 = vmatprep.mubr.bf16.mxu1 %v3563_v0  ;;  %v2646_v2 = vcombine.high %v69_v1, %v69_v1  ;;  %v2645_v3 = vcombine.low %v69_v1, %v69_v1  ;;  %v71_v5 = vld [vmem:[#allocation2 + $0x10] sm:$0xff]  ;;  %v2648_v6 = vcombine.high %v70_v4, %v70_v4  ;;  %v72_v10 = vld [vmem:[#allocation2 + $0x18] sm:$0xff]  ;;  %vm140_vm1 = vcmask 64512   ;;  %s3564_s20 = smov [#allocation8]  }
  0x39   :  { %v2647_v7 = vcombine.low %v70_v4, %v70_v4  ;;  %v2650_v8 = vcombine.high %v71_v5, %v71_v5  ;;  %v2649_v9 = vcombine.low %v71_v5, %v71_v5  ;;  %v3039_v12 = vld [vmem:[%s3735_s0] sm:$0xff]   ;;  %v2652_v13 = vcombine.high %v72_v10, %v72_v10  ;;  %v3048_v18 = vld [vmem:[#allocation5 + $0x4] ss:$16 sps:$4 sm:$0xff]   ;;  %v3046_v20 = vld [vmem:[#allocation5] ss:$16 sps:$4 sm:$0xff]   ;;  %s2631_s21 = sshll.u32 %s3564_s20, 4  ;;  %s2632_s21 = int_to_ptr.vmem [resolvable:$true] %s2631_s21 }
  0x3a   :  { %2653 = vmatprep.subr.msk.bf16.mxu0 %vm144_vm0, %v2646_v2  ;;  %v146_v11 = vsel %vm144_vm0, %v2645_v3, 0  ;;  %v2651_v14 = vcombine.low %v72_v10, %v72_v10  ;;  %2655 = vmatprep.subr.msk.bf16.mxu1 %vm144_vm0, %v2648_v6  ;;  %v3051_v19 = vld [vmem:[#allocation5 + $0xc] ss:$16 sps:$4 sm:$0xff]   ;;  %v3049_v21 = vld [vmem:[#allocation5 + $0x8] ss:$16 sps:$4 sm:$0xff]   ;;  %p3533_p11 = scmp.lt.s32.totalorder %s2632_s21, %s2632_s21 }
  0x3b   :  { %170 = vmatpush1.bf16.msra.mxu0 %v146_v11  ;;  %v152_v15 = vsel %vm144_vm0, %v2647_v7, 0  ;;  %v158_v16 = vsel %vm144_vm0, %v2649_v9, 0  ;;  %v3054_v22 = vld [vmem:[#allocation5 + $0x24] ss:$16 sps:$4 sm:$0xff]   ;;  %v3057_v23 = vld [vmem:[#allocation5 + $0x2c] ss:$16 sps:$4 sm:$0xff]  }
  0x3c   :  { %213 = vmatpush1.bf16.msra.mxu1 %v152_v15  ;;  %2657 = vmatprep.subr.msk.bf16.mxu0 %vm144_vm0, %v2650_v8  ;;  %v164_v17 = vsel %vm144_vm0, %v2651_v14, 0  ;;  %v3052_v24 = vld [vmem:[#allocation5 + $0x20] ss:$16 sps:$4 sm:$0xff]   ;;  %v3055_v25 = vld [vmem:[#allocation5 + $0x28] ss:$16 sps:$4 sm:$0xff]  }
  0x3d   :  { %2659 = vmatprep.subr.msk.bf16.mxu1 %vm144_vm0, %v2652_v13  ;;  %v3060_v26 = vld [vmem:[#allocation5 + $0x44] ss:$16 sps:$4 sm:$0xff]   ;;  %v3063_v27 = vld [vmem:[#allocation5 + $0x4c] ss:$16 sps:$4 sm:$0xff]   ;;  %v3058_v28 = vld [vmem:[#allocation5 + $0x40] ss:$16 sps:$4 sm:$0xff]  }
  0x3e   :  { %2654 = vmatmul.mubr.msk.bf16.vlgmr.msra.gmra.mrb[0].mxu0 %vm140_vm1, %v3039_v12  ;;  %v3061_v29 = vld [vmem:[#allocation5 + $0x48] ss:$16 sps:$4 sm:$0xff]   ;;  %v3066_v30 = vld [vmem:[#allocation5 + $0x64] ss:$16 sps:$4 sm:$0xff]   ;;  %v3069_v31 = vld [vmem:[#allocation5 + $0x6c] ss:$16 sps:$4 sm:$0xff]  }
  0x3f   :  { %2656 = vmatmul.mubr.msk.bf16.vlgmr.msra.gmra.mrb[0].mxu1 %vm140_vm1, %v3039_v12  ;;  %256 = vmatpush1.bf16.msra.mxu0 %v158_v16  ;;  %v3064_v32 = vld [vmem:[#allocation5 + $0x60] ss:$16 sps:$4 sm:$0xff]   ;;  %v3067_v33 = vld [vmem:[#allocation5 + $0x68] ss:$16 sps:$4 sm:$0xff]   ;;  %v3072_v34 = vld [vmem:[#allocation5 + $0x84] ss:$16 sps:$4 sm:$0xff]  }
  0x40   :  { %287 = vmatprep.mubr.bf16.mxu0 %v3563_v0  ;;  %299 = vmatpush1.bf16.msra.mxu1 %v164_v17  ;;  %v3075_v35 = vld [vmem:[#allocation5 + $0x8c] ss:$16 sps:$4 sm:$0xff]   ;;  %v3070_v36 = vld [vmem:[#allocation5 + $0x80] ss:$16 sps:$4 sm:$0xff]   ;;  %v3073_v37 = vld [vmem:[#allocation5 + $0x88] ss:$16 sps:$4 sm:$0xff]  }
  0x41   :  { %330 = vmatprep.mubr.bf16.mxu1 %v3563_v0  ;;  %1923 = vmatprep.subr.bf16.mxu0 %v3048_v18  ;;  %v3078_v38 = vld [vmem:[#allocation5 + $0xa4] ss:$16 sps:$4 sm:$0xff]   ;;  %v3081_v39 = vld [vmem:[#allocation5 + $0xac] ss:$16 sps:$4 sm:$0xff]   ;;  %v3076_v40 = vld [vmem:[#allocation5 + $0xa0] ss:$16 sps:$4 sm:$0xff]  }
  0x42   :  { %2095 = vmatprep.subr.bf16.mxu1 %v3051_v19  ;;  %v3079_v41 = vld [vmem:[#allocation5 + $0xa8] ss:$16 sps:$4 sm:$0xff]   ;;  %v3084_v42 = vld [vmem:[#allocation5 + $0xc4] ss:$16 sps:$4 sm:$0xff]   ;;  %v3087_v43 = vld [vmem:[#allocation5 + $0xcc] ss:$16 sps:$4 sm:$0xff]  }
  0x43   :  { %v3082_v44 = vld [vmem:[#allocation5 + $0xc0] ss:$16 sps:$4 sm:$0xff]   ;;  %v3085_v45 = vld [vmem:[#allocation5 + $0xc8] ss:$16 sps:$4 sm:$0xff]   ;;  %v3090_v46 = vld [vmem:[#allocation5 + $0xe4] ss:$16 sps:$4 sm:$0xff]  }
  0x44   :  { %v3093_v47 = vld [vmem:[#allocation5 + $0xec] ss:$16 sps:$4 sm:$0xff]   ;;  %v3088_v48 = vld [vmem:[#allocation5 + $0xe0] ss:$16 sps:$4 sm:$0xff]   ;;  %v3091_v49 = vld [vmem:[#allocation5 + $0xe8] ss:$16 sps:$4 sm:$0xff]  }
  0x45   :  { %v3096_v50 = vld [vmem:[#allocation5 + $0x104] ss:$16 sps:$4 sm:$0xff]   ;;  %v3099_v51 = vld [vmem:[#allocation5 + $0x10c] ss:$16 sps:$4 sm:$0xff]   ;;  %v3094_v52 = vld [vmem:[#allocation5 + $0x100] ss:$16 sps:$4 sm:$0xff]  }
  0x46   :  { %2658 = vmatmul.mubr.msk.bf16.vlgmr.msra.gmra.mrb[4].mxu0 %vm140_vm1, %v3039_v12  ;;  %v3097_v53 = vld [vmem:[#allocation5 + $0x108] ss:$16 sps:$4 sm:$0xff]   ;;  %v3102_v54 = vld [vmem:[#allocation5 + $0x124] ss:$16 sps:$4 sm:$0xff]   ;;  %v3105_v55 = vld [vmem:[#allocation5 + $0x12c] ss:$16 sps:$4 sm:$0xff]  }
  0x47   :  { %2660 = vmatmul.mubr.msk.bf16.vlgmr.msra.gmra.mrb[4].mxu1 %vm140_vm1, %v3039_v12  ;;  %1924 = vmatpush1.bf16.msra.mxu0 %v3046_v20  ;;  %v3100_v56 = vld [vmem:[#allocation5 + $0x120] ss:$16 sps:$4 sm:$0xff]   ;;  %v3103_v57 = vld [vmem:[#allocation5 + $0x128] ss:$16 sps:$4 sm:$0xff]   ;;  %v3108_v58 = vld [vmem:[#allocation5 + $0x144] ss:$16 sps:$4 sm:$0xff]   ;;  %v75_v20 = vlaneseq }
  0x48   :  { %2096 = vmatpush1.bf16.msra.mxu1 %v3049_v21  ;;  %1925 = vmatprep.subr.bf16.mxu0 %v3054_v22  ;;  %v3111_v59 = vld [vmem:[#allocation5 + $0x14c] ss:$16 sps:$4 sm:$0xff]   ;;  %v3106_v60 = vld [vmem:[#allocation5 + $0x140] ss:$16 sps:$4 sm:$0xff]   ;;  %v3109_v61 = vld [vmem:[#allocation5 + $0x148] ss:$16 sps:$4 sm:$0xff]  }
  0x49   :  { %2097 = vmatprep.subr.bf16.mxu1 %v3057_v23  ;;  %v3114_v62 = vld [vmem:[#allocation5 + $0x164] ss:$16 sps:$4 sm:$0xff]   ;;  %v3117_v63 = vld [vmem:[#allocation5 + $0x16c] ss:$16 sps:$4 sm:$0xff]   ;;  %v3112_v0 = vld [vmem:[#allocation5 + $0x160] ss:$16 sps:$4 sm:$0xff]  }
  0x4a   :  { %v3115_v1 = vld [vmem:[#allocation5 + $0x168] ss:$16 sps:$4 sm:$0xff]   ;;  %v3120_v2 = vld [vmem:[#allocation5 + $0x184] ss:$16 sps:$4 sm:$0xff]   ;;  %v3123_v3 = vld [vmem:[#allocation5 + $0x18c] ss:$16 sps:$4 sm:$0xff]  }
  0x4b   :  { %1926 = vmatpush1.bf16.msra.mxu0 %v3052_v24  ;;  %v3118_v4 = vld [vmem:[#allocation5 + $0x180] ss:$16 sps:$4 sm:$0xff]   ;;  %v3121_v5 = vld [vmem:[#allocation5 + $0x188] ss:$16 sps:$4 sm:$0xff]   ;;  %v3126_v6 = vld [vmem:[#allocation5 + $0x1a4] ss:$16 sps:$4 sm:$0xff]  }
  0x4c   :  { %2098 = vmatpush1.bf16.msra.mxu1 %v3055_v25  ;;  %1927 = vmatprep.subr.bf16.mxu0 %v3060_v26  ;;  %v3129_v7 = vld [vmem:[#allocation5 + $0x1ac] ss:$16 sps:$4 sm:$0xff]   ;;  %v3124_v8 = vld [vmem:[#allocation5 + $0x1a0] ss:$16 sps:$4 sm:$0xff]   ;;  %v3127_v9 = vld [vmem:[#allocation5 + $0x1a8] ss:$16 sps:$4 sm:$0xff]  }
  0x4d   :  { %2099 = vmatprep.subr.bf16.mxu1 %v3063_v27  ;;  %v3132_v10 = vld [vmem:[#allocation5 + $0x1c4] ss:$16 sps:$4 sm:$0xff]   ;;  %v3135_v11 = vld [vmem:[#allocation5 + $0x1cc] ss:$16 sps:$4 sm:$0xff]   ;;  %v3130_v12 = vld [vmem:[#allocation5 + $0x1c0] ss:$16 sps:$4 sm:$0xff]  }
  0x4e   :  { %v3133_v13 = vld [vmem:[#allocation5 + $0x1c8] ss:$16 sps:$4 sm:$0xff]   ;;  %v3138_v14 = vld [vmem:[#allocation5 + $0x1e4] ss:$16 sps:$4 sm:$0xff]   ;;  %v3141_v15 = vld [vmem:[#allocation5 + $0x1ec] ss:$16 sps:$4 sm:$0xff]  }
  0x4f   :  { %1928 = vmatpush1.bf16.msra.mxu0 %v3058_v28  ;;  %v3136_v16 = vld [vmem:[#allocation5 + $0x1e0] ss:$16 sps:$4 sm:$0xff]   ;;  %v3139_v17 = vld [vmem:[#allocation5 + $0x1e8] ss:$16 sps:$4 sm:$0xff]   ;;  %v3144_v18 = vld [vmem:[#allocation5 + $0x204] ss:$16 sps:$4 sm:$0xff]  }
  0x50   :  { %2100 = vmatpush1.bf16.msra.mxu1 %v3061_v29  ;;  %1929 = vmatprep.subr.bf16.mxu0 %v3066_v30  ;;  %v3147_v19 = vld [vmem:[#allocation5 + $0x20c] ss:$16 sps:$4 sm:$0xff]   ;;  %v3658_v21 = vshrl.u32 %v75_v20, 7  ;;  %v3154_v20 = vld [vmem:[#allocation5 + $0x240] ss:$16 sps:$4 sm:$0xff]  }
  0x51   :  { %2101 = vmatprep.subr.bf16.mxu1 %v3069_v31  ;;  %v3664_v23 = vld [vmem:[%s3737_s2] sm:$0xff] }
  0x52   :  { %v77_v22 = vsub.s32 0, %v3658_v21  ;;  %v81_v24 = vsub.s32 1, %v3658_v21  ;;  %v85_v25 = vsub.s32 2, %v3658_v21  ;;  %v89_v26 = vsub.s32 3, %v3658_v21 }
  0x53   :  { %1930 = vmatpush1.bf16.msra.mxu0 %v3064_v32  ;;  %v93_v32 = vsub.s32 4, %v3658_v21 }
  0x54   :  { %2102 = vmatpush1.bf16.msra.mxu1 %v3067_v33  ;;  %1931 = vmatprep.subr.bf16.mxu0 %v3072_v34  ;;  %v78_v27 = vrot.slane %v3664_v23, %v77_v22  ;;  %v82_v28 = vrot.slane %v3664_v23, %v81_v24  ;;  %v86_v29 = vrot.slane %v3664_v23, %v85_v25 }
  0x55   :  { %2103 = vmatprep.subr.bf16.mxu1 %v3075_v35  ;;  %v90_v30 = vrot.slane %v3664_v23, %v89_v26 }
  0x57   :  { %1932 = vmatpush1.bf16.msra.mxu0 %v3070_v36 }
  0x58   :  { %2104 = vmatpush1.bf16.msra.mxu1 %v3073_v37  ;;  %1933 = vmatprep.subr.bf16.mxu0 %v3078_v38 }
  0x59   :  { %2105 = vmatprep.subr.bf16.mxu1 %v3081_v39 }
  0x5b   :  { %1934 = vmatpush1.bf16.msra.mxu0 %v3076_v40  ;;  %v97_v40 = vsub.s32 5, %v3658_v21 }
  0x5c   :  { %2106 = vmatpush1.bf16.msra.mxu1 %v3079_v41  ;;  %1935 = vmatprep.subr.bf16.mxu0 %v3084_v42 }
  0x5d   :  { %2107 = vmatprep.subr.bf16.mxu1 %v3087_v43 }
  0x5f   :  { %1936 = vmatpush1.bf16.msra.mxu0 %v3082_v44 }
  0x60   :  { %2108 = vmatpush1.bf16.msra.mxu1 %v3085_v45  ;;  %1937 = vmatprep.subr.bf16.mxu0 %v3090_v46 }
  0x61   :  { %2109 = vmatprep.subr.bf16.mxu1 %v3093_v47 }
  0x63   :  { %1938 = vmatpush1.bf16.msra.mxu0 %v3088_v48 }
  0x64   :  { %2110 = vmatpush1.bf16.msra.mxu1 %v3091_v49  ;;  %1939 = vmatprep.subr.bf16.mxu0 %v3096_v50  ;;  %v94_v49 = vrot.slane %v3664_v23, %v93_v32  ;;  %v3163_v32 = vld [vmem:[#allocation5 + $0x268] ss:$16 sps:$4 sm:$0xff]  }
  0x65   :  { %2111 = vmatprep.subr.bf16.mxu1 %v3099_v51 }
  0x67   :  { %1940 = vmatpush1.bf16.msra.mxu0 %v3094_v52 }
  0x68   :  { %2112 = vmatpush1.bf16.msra.mxu1 %v3097_v53  ;;  %1941 = vmatprep.subr.bf16.mxu0 %v3102_v54 }
  0x69   :  { %2113 = vmatprep.subr.bf16.mxu1 %v3105_v55 }
  0x6b   :  { %1942 = vmatpush1.bf16.msra.mxu0 %v3100_v56 }
  0x6c   :  { %2114 = vmatpush1.bf16.msra.mxu1 %v3103_v57  ;;  %1943 = vmatprep.subr.bf16.mxu0 %v3108_v58  ;;  %v98_v57 = vrot.slane %v3664_v23, %v97_v40  ;;  %v3175_v40 = vld [vmem:[#allocation5 + $0x2a8] ss:$16 sps:$4 sm:$0xff]  }
  0x6d   :  { %2115 = vmatprep.subr.bf16.mxu1 %v3111_v59 }
  0x6f   :  { %1944 = vmatpush1.bf16.msra.mxu0 %v3106_v60 }
  0x70   :  { %2116 = vmatpush1.bf16.msra.mxu1 %v3109_v61  ;;  %1945 = vmatprep.subr.bf16.mxu0 %v3114_v62  ;;  %v3142_v61 = vld [vmem:[#allocation5 + $0x200] ss:$16 sps:$4 sm:$0xff]   ;;  %v3145_v62 = vld [vmem:[#allocation5 + $0x208] ss:$16 sps:$4 sm:$0xff]  }
  0x71   :  { %2117 = vmatprep.subr.bf16.mxu1 %v3117_v63 }
  0x73   :  { %1946 = vmatpush1.bf16.msra.mxu0 %v3112_v0 }
  0x74   :  { %2118 = vmatpush1.bf16.msra.mxu1 %v3115_v1  ;;  %1947 = vmatprep.subr.bf16.mxu0 %v3120_v2  ;;  %v3150_v1 = vld [vmem:[#allocation5 + $0x224] ss:$16 sps:$4 sm:$0xff]   ;;  %v3153_v2 = vld [vmem:[#allocation5 + $0x22c] ss:$16 sps:$4 sm:$0xff]  }
  0x75   :  { %2119 = vmatprep.subr.bf16.mxu1 %v3123_v3 }
  0x77   :  { %1948 = vmatpush1.bf16.msra.mxu0 %v3118_v4 }
  0x78   :  { %2120 = vmatpush1.bf16.msra.mxu1 %v3121_v5  ;;  %1949 = vmatprep.subr.bf16.mxu0 %v3126_v6 }
  0x79   :  { %2121 = vmatprep.subr.bf16.mxu1 %v3129_v7 }
  0x7b   :  { %1950 = vmatpush1.bf16.msra.mxu0 %v3124_v8 }
  0x7c   :  { %2122 = vmatpush1.bf16.msra.mxu1 %v3127_v9  ;;  %1951 = vmatprep.subr.bf16.mxu0 %v3132_v10 }
  0x7d   :  { %2123 = vmatprep.subr.bf16.mxu1 %v3135_v11  ;;  %v3148_v11 = vld [vmem:[#allocation5 + $0x220] ss:$16 sps:$4 sm:$0xff]  }
  0x7f   :  { %1952 = vmatpush1.bf16.msra.mxu0 %v3130_v12  ;;  %v3151_v12 = vld [vmem:[#allocation5 + $0x228] ss:$16 sps:$4 sm:$0xff]  }
  0x80   :  { %2124 = vmatpush1.bf16.msra.mxu1 %v3133_v13  ;;  %1953 = vmatprep.subr.bf16.mxu0 %v3138_v14 }
  0x81   :  { %2125 = vmatprep.subr.bf16.mxu1 %v3141_v15  ;;  %v3156_v15 = vld [vmem:[#allocation5 + $0x244] ss:$16 sps:$4 sm:$0xff]  }
  0x83   :  { %1954 = vmatpush1.bf16.msra.mxu0 %v3136_v16  ;;  %v3159_v16 = vld [vmem:[#allocation5 + $0x24c] ss:$16 sps:$4 sm:$0xff]  }
  0x84   :  { %2126 = vmatpush1.bf16.msra.mxu1 %v3139_v17  ;;  %1966 = vmatprep.subr.bf16.mxu0 %v3144_v18 }
  0x85   :  { %2138 = vmatprep.subr.bf16.mxu1 %v3147_v19 }
 0x111   :  { %v203_v31 = vpop.f32.mrb[0].mxu0 }
 0x112   :  { %v204_v33 = vadd.f32 %v203_v31, %v78_v27  ;;  %v205_v34 = vpop.f32.mrb[1].mxu0  ;;  %v246_v35 = vpop.f32.mrb[0].mxu1  ;;  %v3160_v31 = vld [vmem:[#allocation5 + $0x260] ss:$16 sps:$4 sm:$0xff]  }
 0x113   :  { %v206_v36 = vadd.f32 %v205_v34, %v82_v28  ;;  %v207_v37 = vpop.f32.mrb[2].mxu0  ;;  %v247_v38 = vadd.f32 %v246_v35, %v86_v29  ;;  %v248_v39 = vpop.f32.mrb[1].mxu1  ;;  %v3171_v34 = vld [vmem:[#allocation5 + $0x28c] ss:$16 sps:$4 sm:$0xff]   ;;  %v3166_v35 = vld [vmem:[#allocation5 + $0x280] ss:$16 sps:$4 sm:$0xff]  }
 0x114   :  { %v208_v41 = vadd.f32 %v207_v37, %v78_v27  ;;  %v209_v42 = vpop.f32.mrb[3].mxu0  ;;  %v249_v43 = vadd.f32 %v248_v39, %v90_v30  ;;  %v250_v44 = vpop.f32.mrb[2].mxu1  ;;  %v341_v50 = vmax.f32 %v204_v33, 0.0  ;;  %v3157_v27 = vld [vmem:[#allocation5 + $0x248] ss:$16 sps:$4 sm:$0xff]  }
 0x115   :  { %v210_v45 = vadd.f32 %v209_v42, %v82_v28  ;;  %v343_v46 = vmax.f32 %v247_v38, 0.0  ;;  %v251_v47 = vadd.f32 %v250_v44, %v86_v29  ;;  %v252_v48 = vpop.f32.mrb[3].mxu1  ;;  %v342_v54 = vmax.f32 %v206_v36, 0.0  ;;  %v3162_v29 = vld [vmem:[#allocation5 + $0x264] ss:$16 sps:$4 sm:$0xff]  }
 0x116   :  { %v349_v51 = vmax.f32 %v208_v41, 0.0  ;;  %v344_v52 = vmax.f32 %v249_v43, 0.0  ;;  %v253_v53 = vadd.f32 %v252_v48, %v90_v30  ;;  %v3165_v30 = vld [vmem:[#allocation5 + $0x26c] ss:$16 sps:$4 sm:$0xff]   ;;  %v3168_v33 = vld [vmem:[#allocation5 + $0x284] ss:$16 sps:$4 sm:$0xff]  }
 0x117   :  { %v350_v55 = vmax.f32 %v210_v45, 0.0  ;;  %v351_v56 = vmax.f32 %v251_v47, 0.0  ;;  %v3169_v36 = vld [vmem:[#allocation5 + $0x288] ss:$16 sps:$4 sm:$0xff]   ;;  %v3174_v37 = vld [vmem:[#allocation5 + $0x2a4] ss:$16 sps:$4 sm:$0xff]  }
 0x118   :  { %v357_v58 = vpack.c.bf16 %v349_v51, %v341_v50  ;;  %v352_v59 = vmax.f32 %v253_v53, 0.0  ;;  %v3177_v38 = vld [vmem:[#allocation5 + $0x2ac] ss:$16 sps:$4 sm:$0xff]   ;;  %v3172_v39 = vld [vmem:[#allocation5 + $0x2a0] ss:$16 sps:$4 sm:$0xff]   ;;  %v101_v41 = vsub.s32 6, %v3658_v21 }
 0x119   :  { %v358_v60 = vpack.c.bf16 %v350_v55, %v342_v54  ;;  %v3685_v63 = vpack.c.bf16 %v351_v56, %v343_v46  ;;  %v289_v0 = vpop.f32.mrb[4].mxu0  ;;  %v105_v43 = vsub.s32 7, %v3658_v21  ;;  %v3180_v44 = vld [vmem:[#allocation5 + $0x2c4] ss:$16 sps:$4 sm:$0xff]   ;;  %v3183_v45 = vld [vmem:[#allocation5 + $0x2cc] ss:$16 sps:$4 sm:$0xff]  }
 0x11a   :  { %v360_v3 = vpack.c.bf16 %v352_v59, %v344_v52  ;;  %v290_v4 = vadd.f32 %v289_v0, %v94_v49  ;;  %v291_v5 = vpop.f32.mrb[5].mxu0  ;;  %v332_v42 = vpop.f32.mrb[4].mxu1  ;;  %v102_v47 = vrot.slane %v3664_v23, %v101_v41  ;;  %v3178_v50 = vld [vmem:[#allocation5 + $0x2c0] ss:$16 sps:$4 sm:$0xff]   ;;  %v3181_v51 = vld [vmem:[#allocation5 + $0x2c8] ss:$16 sps:$4 sm:$0xff]  }
 0x11b   :  { %1955 = vmatprep.mubr.bf16.mxu0 %v358_v60  ;;  %2127 = vmatprep.mubr.bf16.mxu1 %v358_v60  ;;  %v292_v6 = vadd.f32 %v291_v5, %v98_v57  ;;  %v293_v7 = vpop.f32.mrb[6].mxu0  ;;  %v334_v46 = vpop.f32.mrb[5].mxu1  ;;  %v106_v48 = vrot.slane %v3664_v23, %v105_v43  ;;  %v3186_v56 = vld [vmem:[#allocation5 + $0x2e4] ss:$16 sps:$4 sm:$0xff]   ;;  %v3184_v23 = vld [vmem:[#allocation5 + $0x2e0] ss:$16 sps:$4 sm:$0xff]  }
 0x11c   :  { %1956 = vmatmul.mubr.bf16.vlgmr.msra.gmra.mrb[8].mxu0 %v357_v58  ;;  %2128 = vmatmul.mubr.bf16.vlgmr.msra.gmra.mrb[8].mxu1 %v357_v58  ;;  %v345_v8 = vmax.f32 %v290_v4, 0.0  ;;  %v294_v9 = vadd.f32 %v293_v7, %v94_v49  ;;  %v295_v10 = vpop.f32.mrb[7].mxu0  ;;  %v336_v49 = vpop.f32.mrb[6].mxu1  ;;  %v333_v52 = vadd.f32 %v332_v42, %v102_v47  ;;  %v3187_v0 = vld [vmem:[#allocation5 + $0x2e8] ss:$16 sps:$4 sm:$0xff]  }
 0x11d   :  { %1967 = vmatpush1.bf16.msra.mxu0 %v3142_v61  ;;  %2139 = vmatpush1.bf16.msra.mxu1 %v3145_v62  ;;  %v346_v13 = vmax.f32 %v292_v6, 0.0  ;;  %v296_v14 = vadd.f32 %v295_v10, %v98_v57  ;;  %v335_v53 = vadd.f32 %v334_v46, %v106_v48  ;;  %v337_v54 = vadd.f32 %v336_v49, %v102_v47  ;;  %v338_v55 = vpop.f32.mrb[7].mxu1  ;;  %v3189_v57 = vld [vmem:[#allocation5 + $0x2ec] ss:$16 sps:$4 sm:$0xff]   ;;  %v3190_v5 = vld [vmem:[#allocation5 + $0x300] ss:$16 sps:$4 sm:$0xff]  }
 0x11e   :  { %1968 = vmatprep.subr.bf16.mxu0 %v3150_v1  ;;  %2140 = vmatprep.subr.bf16.mxu1 %v3153_v2  ;;  %v353_v17 = vmax.f32 %v294_v9, 0.0  ;;  %v339_v58 = vadd.f32 %v338_v55, %v106_v48  ;;  %v347_v59 = vmax.f32 %v333_v52, 0.0  ;;  %v3192_v2 = vld [vmem:[#allocation5 + $0x304] ss:$16 sps:$4 sm:$0xff]   ;;  %v3193_v6 = vld [vmem:[#allocation5 + $0x308] ss:$16 sps:$4 sm:$0xff]  }
 0x11f   :  { %1998 = vmatprep.mubr.bf16.mxu0 %v360_v3  ;;  %2170 = vmatprep.mubr.bf16.mxu1 %v360_v3  ;;  %v354_v18 = vmax.f32 %v296_v14, 0.0  ;;  %v348_v60 = vmax.f32 %v335_v53, 0.0  ;;  %v355_v61 = vmax.f32 %v337_v54, 0.0  ;;  %v3195_v3 = vld [vmem:[#allocation5 + $0x30c] ss:$16 sps:$4 sm:$0xff]  }
 0x120   :  { %v3687_v19 = vpack.c.bf16 %v353_v17, %v345_v8  ;;  %v356_v62 = vmax.f32 %v339_v58, 0.0  ;;  %v3198_v7 = vld [vmem:[#allocation5 + $0x324] ss:$16 sps:$4 sm:$0xff]   ;;  %v3201_v8 = vld [vmem:[#allocation5 + $0x32c] ss:$16 sps:$4 sm:$0xff]  }
 0x121   :  { %1969 = vmatpush1.bf16.msra.mxu0 %v3148_v11  ;;  %2141 = vmatpush1.bf16.msra.mxu1 %v3151_v12  ;;  %v3689_v28 = vpack.c.bf16 %v354_v18, %v346_v13  ;;  %v3695_v1 = vpack.c.bf16 %v355_v61, %v347_v59  ;;  %v3196_v9 = vld [vmem:[#allocation5 + $0x320] ss:$16 sps:$4 sm:$0xff]   ;;  %v3199_v10 = vld [vmem:[#allocation5 + $0x328] ss:$16 sps:$4 sm:$0xff]   ;;  %v3204_v11 = vld [vmem:[#allocation5 + $0x344] ss:$16 sps:$4 sm:$0xff]  }
 0x122   :  { %1970 = vmatprep.subr.bf16.mxu0 %v3156_v15  ;;  %2142 = vmatprep.subr.bf16.mxu1 %v3159_v16  ;;  %v3697_v4 = vpack.c.bf16 %v356_v62, %v348_v60  ;;  %v3207_v12 = vld [vmem:[#allocation5 + $0x34c] ss:$16 sps:$4 sm:$0xff]   ;;  %v3202_v13 = vld [vmem:[#allocation5 + $0x340] ss:$16 sps:$4 sm:$0xff]   ;;  %v3205_v14 = vld [vmem:[#allocation5 + $0x348] ss:$16 sps:$4 sm:$0xff]  }
 0x123   :  { %v3210_v15 = vld [vmem:[#allocation5 + $0x364] ss:$16 sps:$4 sm:$0xff]   ;;  %v3213_v16 = vld [vmem:[#allocation5 + $0x36c] ss:$16 sps:$4 sm:$0xff]   ;;  %v3208_v17 = vld [vmem:[#allocation5 + $0x360] ss:$16 sps:$4 sm:$0xff]  }
 0x124   :  { %v3211_v18 = vld [vmem:[#allocation5 + $0x368] ss:$16 sps:$4 sm:$0xff]   ;;  %v3232_v41 = vld [vmem:[#allocation5 + $0x3e0] ss:$16 sps:$4 sm:$0xff]   ;;  %v3240_v43 = vld [vmem:[#allocation5 + $0x404] ss:$16 sps:$4 sm:$0xff]  }
 0x125   :  { %1971 = vmatpush1.bf16.msra.mxu0 %v3154_v20  ;;  %2143 = vmatpush1.bf16.msra.mxu1 %v3157_v27  ;;  %v3216_v20 = vld [vmem:[#allocation5 + $0x384] ss:$16 sps:$4 sm:$0xff]   ;;  %v3219_v27 = vld [vmem:[#allocation5 + $0x38c] ss:$16 sps:$4 sm:$0xff]   ;;  %v3235_v42 = vld [vmem:[#allocation5 + $0x3e8] ss:$16 sps:$4 sm:$0xff]  }
 0x126   :  { %1972 = vmatprep.subr.bf16.mxu0 %v3162_v29  ;;  %2144 = vmatprep.subr.bf16.mxu1 %v3165_v30  ;;  %v3214_v29 = vld [vmem:[#allocation5 + $0x380] ss:$16 sps:$4 sm:$0xff]   ;;  %v3217_v30 = vld [vmem:[#allocation5 + $0x388] ss:$16 sps:$4 sm:$0xff]   ;;  %v3246_v47 = vld [vmem:[#allocation5 + $0x424] ss:$16 sps:$4 sm:$0xff]  }
 0x127   :  { %v3241_v46 = vld [vmem:[#allocation5 + $0x408] ss:$16 sps:$4 sm:$0xff]   ;;  %v3249_v48 = vld [vmem:[#allocation5 + $0x42c] ss:$16 sps:$4 sm:$0xff]   ;;  %v3244_v49 = vld [vmem:[#allocation5 + $0x420] ss:$16 sps:$4 sm:$0xff]  }
 0x128   :  { %v3255_v52 = vld [vmem:[#allocation5 + $0x44c] ss:$16 sps:$4 sm:$0xff]   ;;  %v3250_v53 = vld [vmem:[#allocation5 + $0x440] ss:$16 sps:$4 sm:$0xff]   ;;  %v3253_v54 = vld [vmem:[#allocation5 + $0x448] ss:$16 sps:$4 sm:$0xff]  }
 0x129   :  { %1973 = vmatpush1.bf16.msra.mxu0 %v3160_v31  ;;  %2145 = vmatpush1.bf16.msra.mxu1 %v3163_v32  ;;  %v3222_v31 = vld [vmem:[#allocation5 + $0x3a4] ss:$16 sps:$4 sm:$0xff]   ;;  %v3225_v32 = vld [vmem:[#allocation5 + $0x3ac] ss:$16 sps:$4 sm:$0xff]   ;;  %v3262_v60 = vld [vmem:[#allocation5 + $0x480] ss:$16 sps:$4 sm:$0xff]  }
 0x12a   :  { %1974 = vmatprep.subr.bf16.mxu0 %v3168_v33  ;;  %2146 = vmatprep.subr.bf16.mxu1 %v3171_v34  ;;  %v3220_v33 = vld [vmem:[#allocation5 + $0x3a0] ss:$16 sps:$4 sm:$0xff]   ;;  %v3223_v34 = vld [vmem:[#allocation5 + $0x3a8] ss:$16 sps:$4 sm:$0xff]   ;;  %v3258_v55 = vld [vmem:[#allocation5 + $0x464] ss:$16 sps:$4 sm:$0xff]  }
 0x12b   :  { %v3264_v58 = vld [vmem:[#allocation5 + $0x484] ss:$16 sps:$4 sm:$0xff]   ;;  %v3267_v59 = vld [vmem:[#allocation5 + $0x48c] ss:$16 sps:$4 sm:$0xff]  }
 0x12c   :  { %v3270_v61 = vld [vmem:[#allocation5 + $0x4a4] ss:$16 sps:$4 sm:$0xff]   ;;  %v3273_v62 = vld [vmem:[#allocation5 + $0x4ac] ss:$16 sps:$4 sm:$0xff]  }
 0x12d   :  { %1975 = vmatpush1.bf16.msra.mxu0 %v3166_v35  ;;  %2147 = vmatpush1.bf16.msra.mxu1 %v3169_v36  ;;  %v3228_v35 = vld [vmem:[#allocation5 + $0x3c4] ss:$16 sps:$4 sm:$0xff]   ;;  %v3231_v36 = vld [vmem:[#allocation5 + $0x3cc] ss:$16 sps:$4 sm:$0xff]  }
 0x12e   :  { %1976 = vmatprep.subr.bf16.mxu0 %v3174_v37  ;;  %2148 = vmatprep.subr.bf16.mxu1 %v3177_v38  ;;  %v3226_v37 = vld [vmem:[#allocation5 + $0x3c0] ss:$16 sps:$4 sm:$0xff]   ;;  %v3229_v38 = vld [vmem:[#allocation5 + $0x3c8] ss:$16 sps:$4 sm:$0xff]  }
 0x131   :  { %1977 = vmatpush1.bf16.msra.mxu0 %v3172_v39  ;;  %2149 = vmatpush1.bf16.msra.mxu1 %v3175_v40  ;;  %v3234_v39 = vld [vmem:[#allocation5 + $0x3e4] ss:$16 sps:$4 sm:$0xff]   ;;  %v3237_v40 = vld [vmem:[#allocation5 + $0x3ec] ss:$16 sps:$4 sm:$0xff]  }
 0x132   :  { %1978 = vmatprep.subr.bf16.mxu0 %v3180_v44  ;;  %2150 = vmatprep.subr.bf16.mxu1 %v3183_v45  ;;  %v3243_v44 = vld [vmem:[#allocation5 + $0x40c] ss:$16 sps:$4 sm:$0xff]   ;;  %v3238_v45 = vld [vmem:[#allocation5 + $0x400] ss:$16 sps:$4 sm:$0xff]  }
 0x135   :  { %1979 = vmatpush1.bf16.msra.mxu0 %v3178_v50  ;;  %2151 = vmatpush1.bf16.msra.mxu1 %v3181_v51  ;;  %v3247_v50 = vld [vmem:[#allocation5 + $0x428] ss:$16 sps:$4 sm:$0xff]   ;;  %v3252_v51 = vld [vmem:[#allocation5 + $0x444] ss:$16 sps:$4 sm:$0xff]  }
 0x136   :  { %1980 = vmatprep.subr.bf16.mxu0 %v3186_v56  ;;  %2152 = vmatprep.subr.bf16.mxu1 %v3189_v57  ;;  %v3256_v56 = vld [vmem:[#allocation5 + $0x460] ss:$16 sps:$4 sm:$0xff]   ;;  %v3259_v57 = vld [vmem:[#allocation5 + $0x468] ss:$16 sps:$4 sm:$0xff]  }
 0x139   :  { %1981 = vmatpush1.bf16.msra.mxu0 %v3184_v23  ;;  %2153 = vmatpush1.bf16.msra.mxu1 %v3187_v0  ;;  %v3268_v23 = vld [vmem:[#allocation5 + $0x4a0] ss:$16 sps:$4 sm:$0xff]   ;;  %v3271_v0 = vld [vmem:[#allocation5 + $0x4a8] ss:$16 sps:$4 sm:$0xff]  }
 0x13a   :  { %1982 = vmatprep.subr.bf16.mxu0 %v3192_v2  ;;  %2154 = vmatprep.subr.bf16.mxu1 %v3195_v3  ;;  %v3276_v2 = vld [vmem:[#allocation5 + $0x4c4] ss:$16 sps:$4 sm:$0xff]   ;;  %v3279_v3 = vld [vmem:[#allocation5 + $0x4cc] ss:$16 sps:$4 sm:$0xff]  }
 0x13d   :  { %1983 = vmatpush1.bf16.msra.mxu0 %v3190_v5  ;;  %2155 = vmatpush1.bf16.msra.mxu1 %v3193_v6  ;;  %v3274_v5 = vld [vmem:[#allocation5 + $0x4c0] ss:$16 sps:$4 sm:$0xff]   ;;  %v3277_v6 = vld [vmem:[#allocation5 + $0x4c8] ss:$16 sps:$4 sm:$0xff]  }
 0x13e   :  { %1984 = vmatprep.subr.bf16.mxu0 %v3198_v7  ;;  %2156 = vmatprep.subr.bf16.mxu1 %v3201_v8  ;;  %v3282_v7 = vld [vmem:[#allocation5 + $0x4e4] ss:$16 sps:$4 sm:$0xff]   ;;  %v3285_v8 = vld [vmem:[#allocation5 + $0x4ec] ss:$16 sps:$4 sm:$0xff]  }
 0x141   :  { %1985 = vmatpush1.bf16.msra.mxu0 %v3196_v9  ;;  %2157 = vmatpush1.bf16.msra.mxu1 %v3199_v10  ;;  %v3280_v9 = vld [vmem:[#allocation5 + $0x4e0] ss:$16 sps:$4 sm:$0xff]   ;;  %v3283_v10 = vld [vmem:[#allocation5 + $0x4e8] ss:$16 sps:$4 sm:$0xff]  }
 0x142   :  { %1986 = vmatprep.subr.bf16.mxu0 %v3204_v11  ;;  %2158 = vmatprep.subr.bf16.mxu1 %v3207_v12  ;;  %v3288_v11 = vld [vmem:[#allocation5 + $0x504] ss:$16 sps:$4 sm:$0xff]   ;;  %v3291_v12 = vld [vmem:[#allocation5 + $0x50c] ss:$16 sps:$4 sm:$0xff]  }
 0x145   :  { %1987 = vmatpush1.bf16.msra.mxu0 %v3202_v13  ;;  %2159 = vmatpush1.bf16.msra.mxu1 %v3205_v14  ;;  %v3286_v13 = vld [vmem:[#allocation5 + $0x500] ss:$16 sps:$4 sm:$0xff]   ;;  %v3289_v14 = vld [vmem:[#allocation5 + $0x508] ss:$16 sps:$4 sm:$0xff]  }
 0x146   :  { %1988 = vmatprep.subr.bf16.mxu0 %v3210_v15  ;;  %2160 = vmatprep.subr.bf16.mxu1 %v3213_v16  ;;  %v3294_v15 = vld [vmem:[#allocation5 + $0x524] ss:$16 sps:$4 sm:$0xff]   ;;  %v3297_v16 = vld [vmem:[#allocation5 + $0x52c] ss:$16 sps:$4 sm:$0xff]  }
 0x149   :  { %1989 = vmatpush1.bf16.msra.mxu0 %v3208_v17  ;;  %2161 = vmatpush1.bf16.msra.mxu1 %v3211_v18  ;;  %v3292_v17 = vld [vmem:[#allocation5 + $0x520] ss:$16 sps:$4 sm:$0xff]   ;;  %v3295_v18 = vld [vmem:[#allocation5 + $0x528] ss:$16 sps:$4 sm:$0xff]  }
 0x14a   :  { %1990 = vmatprep.subr.bf16.mxu0 %v3216_v20  ;;  %2162 = vmatprep.subr.bf16.mxu1 %v3219_v27  ;;  %v3300_v20 = vld [vmem:[#allocation5 + $0x544] ss:$16 sps:$4 sm:$0xff]   ;;  %v3303_v27 = vld [vmem:[#allocation5 + $0x54c] ss:$16 sps:$4 sm:$0xff]  }
 0x14d   :  { %1991 = vmatpush1.bf16.msra.mxu0 %v3214_v29  ;;  %2163 = vmatpush1.bf16.msra.mxu1 %v3217_v30  ;;  %v3298_v29 = vld [vmem:[#allocation5 + $0x540] ss:$16 sps:$4 sm:$0xff]   ;;  %v3301_v30 = vld [vmem:[#allocation5 + $0x548] ss:$16 sps:$4 sm:$0xff]  }
 0x14e   :  { %1992 = vmatprep.subr.bf16.mxu0 %v3222_v31  ;;  %2164 = vmatprep.subr.bf16.mxu1 %v3225_v32  ;;  %v3306_v31 = vld [vmem:[#allocation5 + $0x564] ss:$16 sps:$4 sm:$0xff]   ;;  %v3309_v32 = vld [vmem:[#allocation5 + $0x56c] ss:$16 sps:$4 sm:$0xff]  }
 0x151   :  { %1993 = vmatpush1.bf16.msra.mxu0 %v3220_v33  ;;  %2165 = vmatpush1.bf16.msra.mxu1 %v3223_v34  ;;  %v3304_v33 = vld [vmem:[#allocation5 + $0x560] ss:$16 sps:$4 sm:$0xff]   ;;  %v3307_v34 = vld [vmem:[#allocation5 + $0x568] ss:$16 sps:$4 sm:$0xff]  }
 0x152   :  { %1994 = vmatprep.subr.bf16.mxu0 %v3228_v35  ;;  %2166 = vmatprep.subr.bf16.mxu1 %v3231_v36  ;;  %v3312_v35 = vld [vmem:[#allocation5 + $0x584] ss:$16 sps:$4 sm:$0xff]   ;;  %v3315_v36 = vld [vmem:[#allocation5 + $0x58c] ss:$16 sps:$4 sm:$0xff]  }
 0x155   :  { %1995 = vmatpush1.bf16.msra.mxu0 %v3226_v37  ;;  %2167 = vmatpush1.bf16.msra.mxu1 %v3229_v38  ;;  %v3310_v37 = vld [vmem:[#allocation5 + $0x580] ss:$16 sps:$4 sm:$0xff]   ;;  %v3313_v38 = vld [vmem:[#allocation5 + $0x588] ss:$16 sps:$4 sm:$0xff]  }
 0x156   :  { %1996 = vmatprep.subr.bf16.mxu0 %v3234_v39  ;;  %2168 = vmatprep.subr.bf16.mxu1 %v3237_v40  ;;  %v3318_v39 = vld [vmem:[#allocation5 + $0x5a4] ss:$16 sps:$4 sm:$0xff]   ;;  %v3321_v40 = vld [vmem:[#allocation5 + $0x5ac] ss:$16 sps:$4 sm:$0xff]  }
 0x159   :  { %1997 = vmatpush1.bf16.msra.mxu0 %v3232_v41  ;;  %2169 = vmatpush1.bf16.msra.mxu1 %v3235_v42  ;;  %v3316_v41 = vld [vmem:[#allocation5 + $0x5a0] ss:$16 sps:$4 sm:$0xff]   ;;  %v3319_v42 = vld [vmem:[#allocation5 + $0x5a8] ss:$16 sps:$4 sm:$0xff]  }
 0x15a   :  { %2009 = vmatprep.subr.bf16.mxu0 %v3240_v43  ;;  %2181 = vmatprep.subr.bf16.mxu1 %v3243_v44  ;;  %v3324_v43 = vld [vmem:[#allocation5 + $0x5c4] ss:$16 sps:$4 sm:$0xff]   ;;  %v3327_v44 = vld [vmem:[#allocation5 + $0x5cc] ss:$16 sps:$4 sm:$0xff]  }
 0x15c   :  { %1999 = vmatmul.mubr.bf16.vlgmr.msra.gmra.mrb[8].mxu0 %v3685_v63  ;;  %2171 = vmatmul.mubr.bf16.vlgmr.msra.gmra.mrb[8].mxu1 %v3685_v63  ;;  %v3261_v63 = vld [vmem:[#allocation5 + $0x46c] ss:$16 sps:$4 sm:$0xff]  }
 0x15d   :  { %2010 = vmatpush1.bf16.msra.mxu0 %v3238_v45  ;;  %2182 = vmatpush1.bf16.msra.mxu1 %v3241_v46  ;;  %v3322_v45 = vld [vmem:[#allocation5 + $0x5c0] ss:$16 sps:$4 sm:$0xff]   ;;  %v3325_v46 = vld [vmem:[#allocation5 + $0x5c8] ss:$16 sps:$4 sm:$0xff]  }
 0x15e   :  { %2011 = vmatprep.subr.bf16.mxu0 %v3246_v47  ;;  %2183 = vmatprep.subr.bf16.mxu1 %v3249_v48  ;;  %v3330_v47 = vld [vmem:[#allocation5 + $0x5e4] ss:$16 sps:$4 sm:$0xff]   ;;  %v3333_v48 = vld [vmem:[#allocation5 + $0x5ec] ss:$16 sps:$4 sm:$0xff]  }
 0x15f   :  { %2041 = vmatprep.mubr.bf16.mxu0 %v3689_v28  ;;  %2213 = vmatprep.mubr.bf16.mxu1 %v3689_v28  ;;  %v3265_v28 = vld [vmem:[#allocation5 + $0x488] ss:$16 sps:$4 sm:$0xff]  }
 0x161   :  { %2012 = vmatpush1.bf16.msra.mxu0 %v3244_v49  ;;  %2184 = vmatpush1.bf16.msra.mxu1 %v3247_v50  ;;  %v3328_v49 = vld [vmem:[#allocation5 + $0x5e0] ss:$16 sps:$4 sm:$0xff]   ;;  %v3331_v50 = vld [vmem:[#allocation5 + $0x5e8] ss:$16 sps:$4 sm:$0xff]  }
 0x162   :  { %2013 = vmatprep.subr.bf16.mxu0 %v3252_v51  ;;  %2185 = vmatprep.subr.bf16.mxu1 %v3255_v52  ;;  %v3336_v51 = vld [vmem:[#allocation5 + $0x604] ss:$16 sps:$4 sm:$0xff]   ;;  %v3339_v52 = vld [vmem:[#allocation5 + $0x60c] ss:$16 sps:$4 sm:$0xff]  }
 0x165   :  { %2014 = vmatpush1.bf16.msra.mxu0 %v3250_v53  ;;  %2186 = vmatpush1.bf16.msra.mxu1 %v3253_v54  ;;  %v3334_v53 = vld [vmem:[#allocation5 + $0x600] ss:$16 sps:$4 sm:$0xff]   ;;  %v3337_v54 = vld [vmem:[#allocation5 + $0x608] ss:$16 sps:$4 sm:$0xff]  }
 0x166   :  { %2015 = vmatprep.subr.bf16.mxu0 %v3258_v55  ;;  %2187 = vmatprep.subr.bf16.mxu1 %v3261_v63  ;;  %v3342_v55 = vld [vmem:[#allocation5 + $0x624] ss:$16 sps:$4 sm:$0xff]   ;;  %v3345_v63 = vld [vmem:[#allocation5 + $0x62c] ss:$16 sps:$4 sm:$0xff]  }
 0x169   :  { %2016 = vmatpush1.bf16.msra.mxu0 %v3256_v56  ;;  %2188 = vmatpush1.bf16.msra.mxu1 %v3259_v57  ;;  %v3340_v56 = vld [vmem:[#allocation5 + $0x620] ss:$16 sps:$4 sm:$0xff]   ;;  %v3343_v57 = vld [vmem:[#allocation5 + $0x628] ss:$16 sps:$4 sm:$0xff]  }
 0x16a   :  { %2017 = vmatprep.subr.bf16.mxu0 %v3264_v58  ;;  %2189 = vmatprep.subr.bf16.mxu1 %v3267_v59  ;;  %v3348_v58 = vld [vmem:[#allocation5 + $0x644] ss:$16 sps:$4 sm:$0xff]   ;;  %v3351_v59 = vld [vmem:[#allocation5 + $0x64c] ss:$16 sps:$4 sm:$0xff]  }
 0x16d   :  { %2018 = vmatpush1.bf16.msra.mxu0 %v3262_v60  ;;  %2190 = vmatpush1.bf16.msra.mxu1 %v3265_v28  ;;  %v3346_v60 = vld [vmem:[#allocation5 + $0x640] ss:$16 sps:$4 sm:$0xff]   ;;  %v3349_v28 = vld [vmem:[#allocation5 + $0x648] ss:$16 sps:$4 sm:$0xff]  }
 0x16e   :  { %2019 = vmatprep.subr.bf16.mxu0 %v3270_v61  ;;  %2191 = vmatprep.subr.bf16.mxu1 %v3273_v62  ;;  %v3354_v61 = vld [vmem:[#allocation5 + $0x664] ss:$16 sps:$4 sm:$0xff]   ;;  %v3352_v62 = vld [vmem:[#allocation5 + $0x660] ss:$16 sps:$4 sm:$0xff]  }
 0x171   :  { %2020 = vmatpush1.bf16.msra.mxu0 %v3268_v23  ;;  %2192 = vmatpush1.bf16.msra.mxu1 %v3271_v0  ;;  %v3355_v23 = vld [vmem:[#allocation5 + $0x668] ss:$16 sps:$4 sm:$0xff]   ;;  %v3360_v0 = vld [vmem:[#allocation5 + $0x684] ss:$16 sps:$4 sm:$0xff]  }
 0x172   :  { %2021 = vmatprep.subr.bf16.mxu0 %v3276_v2  ;;  %2193 = vmatprep.subr.bf16.mxu1 %v3279_v3  ;;  %v3363_v2 = vld [vmem:[#allocation5 + $0x68c] ss:$16 sps:$4 sm:$0xff]   ;;  %v3358_v3 = vld [vmem:[#allocation5 + $0x680] ss:$16 sps:$4 sm:$0xff]  }
 0x175   :  { %2022 = vmatpush1.bf16.msra.mxu0 %v3274_v5  ;;  %2194 = vmatpush1.bf16.msra.mxu1 %v3277_v6  ;;  %v3366_v5 = vld [vmem:[#allocation5 + $0x6a4] ss:$16 sps:$4 sm:$0xff]   ;;  %v3369_v6 = vld [vmem:[#allocation5 + $0x6ac] ss:$16 sps:$4 sm:$0xff]  }
 0x176   :  { %2023 = vmatprep.subr.bf16.mxu0 %v3282_v7  ;;  %2195 = vmatprep.subr.bf16.mxu1 %v3285_v8  ;;  %v3364_v7 = vld [vmem:[#allocation5 + $0x6a0] ss:$16 sps:$4 sm:$0xff]   ;;  %v3367_v8 = vld [vmem:[#allocation5 + $0x6a8] ss:$16 sps:$4 sm:$0xff]  }
 0x179   :  { %2024 = vmatpush1.bf16.msra.mxu0 %v3280_v9  ;;  %2196 = vmatpush1.bf16.msra.mxu1 %v3283_v10  ;;  %v3372_v9 = vld [vmem:[#allocation5 + $0x6c4] ss:$16 sps:$4 sm:$0xff]   ;;  %v3375_v10 = vld [vmem:[#allocation5 + $0x6cc] ss:$16 sps:$4 sm:$0xff]  }
 0x17a   :  { %2025 = vmatprep.subr.bf16.mxu0 %v3288_v11  ;;  %2197 = vmatprep.subr.bf16.mxu1 %v3291_v12  ;;  %v3370_v11 = vld [vmem:[#allocation5 + $0x6c0] ss:$16 sps:$4 sm:$0xff]   ;;  %v3373_v12 = vld [vmem:[#allocation5 + $0x6c8] ss:$16 sps:$4 sm:$0xff]  }
 0x17d   :  { %2026 = vmatpush1.bf16.msra.mxu0 %v3286_v13  ;;  %2198 = vmatpush1.bf16.msra.mxu1 %v3289_v14  ;;  %v3378_v13 = vld [vmem:[#allocation5 + $0x6e4] ss:$16 sps:$4 sm:$0xff]   ;;  %v3381_v14 = vld [vmem:[#allocation5 + $0x6ec] ss:$16 sps:$4 sm:$0xff]  }
 0x17e   :  { %2027 = vmatprep.subr.bf16.mxu0 %v3294_v15  ;;  %2199 = vmatprep.subr.bf16.mxu1 %v3297_v16  ;;  %v3376_v15 = vld [vmem:[#allocation5 + $0x6e0] ss:$16 sps:$4 sm:$0xff]   ;;  %v3379_v16 = vld [vmem:[#allocation5 + $0x6e8] ss:$16 sps:$4 sm:$0xff]  }
 0x181   :  { %2028 = vmatpush1.bf16.msra.mxu0 %v3292_v17  ;;  %2200 = vmatpush1.bf16.msra.mxu1 %v3295_v18  ;;  %v3384_v17 = vld [vmem:[#allocation5 + $0x704] ss:$16 sps:$4 sm:$0xff]   ;;  %v3387_v18 = vld [vmem:[#allocation5 + $0x70c] ss:$16 sps:$4 sm:$0xff]  }
 0x182   :  { %2029 = vmatprep.subr.bf16.mxu0 %v3300_v20  ;;  %2201 = vmatprep.subr.bf16.mxu1 %v3303_v27  ;;  %v3382_v20 = vld [vmem:[#allocation5 + $0x700] ss:$16 sps:$4 sm:$0xff]   ;;  %v3385_v27 = vld [vmem:[#allocation5 + $0x708] ss:$16 sps:$4 sm:$0xff]  }
 0x185   :  { %2030 = vmatpush1.bf16.msra.mxu0 %v3298_v29  ;;  %2202 = vmatpush1.bf16.msra.mxu1 %v3301_v30  ;;  %v3390_v29 = vld [vmem:[#allocation5 + $0x724] ss:$16 sps:$4 sm:$0xff]   ;;  %v3393_v30 = vld [vmem:[#allocation5 + $0x72c] ss:$16 sps:$4 sm:$0xff]  }
 0x186   :  { %2031 = vmatprep.subr.bf16.mxu0 %v3306_v31  ;;  %2203 = vmatprep.subr.bf16.mxu1 %v3309_v32  ;;  %v3388_v31 = vld [vmem:[#allocation5 + $0x720] ss:$16 sps:$4 sm:$0xff]   ;;  %v3391_v32 = vld [vmem:[#allocation5 + $0x728] ss:$16 sps:$4 sm:$0xff]  }
 0x189   :  { %2032 = vmatpush1.bf16.msra.mxu0 %v3304_v33  ;;  %2204 = vmatpush1.bf16.msra.mxu1 %v3307_v34  ;;  %v3396_v33 = vld [vmem:[#allocation5 + $0x744] ss:$16 sps:$4 sm:$0xff]   ;;  %v3399_v34 = vld [vmem:[#allocation5 + $0x74c] ss:$16 sps:$4 sm:$0xff]  }
 0x18a   :  { %2033 = vmatprep.subr.bf16.mxu0 %v3312_v35  ;;  %2205 = vmatprep.subr.bf16.mxu1 %v3315_v36  ;;  %v3394_v35 = vld [vmem:[#allocation5 + $0x740] ss:$16 sps:$4 sm:$0xff]   ;;  %v3397_v36 = vld [vmem:[#allocation5 + $0x748] ss:$16 sps:$4 sm:$0xff]  }
 0x18d   :  { %2034 = vmatpush1.bf16.msra.mxu0 %v3310_v37  ;;  %2206 = vmatpush1.bf16.msra.mxu1 %v3313_v38  ;;  %v3402_v37 = vld [vmem:[#allocation5 + $0x764] ss:$16 sps:$4 sm:$0xff]   ;;  %v3405_v38 = vld [vmem:[#allocation5 + $0x76c] ss:$16 sps:$4 sm:$0xff]  }
 0x18e   :  { %2035 = vmatprep.subr.bf16.mxu0 %v3318_v39  ;;  %2207 = vmatprep.subr.bf16.mxu1 %v3321_v40  ;;  %v3400_v39 = vld [vmem:[#allocation5 + $0x760] ss:$16 sps:$4 sm:$0xff]   ;;  %v3403_v40 = vld [vmem:[#allocation5 + $0x768] ss:$16 sps:$4 sm:$0xff]  }
 0x191   :  { %2036 = vmatpush1.bf16.msra.mxu0 %v3316_v41  ;;  %2208 = vmatpush1.bf16.msra.mxu1 %v3319_v42  ;;  %v3408_v41 = vld [vmem:[#allocation5 + $0x784] ss:$16 sps:$4 sm:$0xff]   ;;  %v3411_v42 = vld [vmem:[#allocation5 + $0x78c] ss:$16 sps:$4 sm:$0xff]  }
 0x192   :  { %2037 = vmatprep.subr.bf16.mxu0 %v3324_v43  ;;  %2209 = vmatprep.subr.bf16.mxu1 %v3327_v44  ;;  %v3406_v43 = vld [vmem:[#allocation5 + $0x780] ss:$16 sps:$4 sm:$0xff]   ;;  %v3409_v44 = vld [vmem:[#allocation5 + $0x788] ss:$16 sps:$4 sm:$0xff]  }
 0x195   :  { %2038 = vmatpush1.bf16.msra.mxu0 %v3322_v45  ;;  %2210 = vmatpush1.bf16.msra.mxu1 %v3325_v46  ;;  %v3414_v45 = vld [vmem:[#allocation5 + $0x7a4] ss:$16 sps:$4 sm:$0xff]   ;;  %v3417_v46 = vld [vmem:[#allocation5 + $0x7ac] ss:$16 sps:$4 sm:$0xff]  }
 0x196   :  { %2039 = vmatprep.subr.bf16.mxu0 %v3330_v47  ;;  %2211 = vmatprep.subr.bf16.mxu1 %v3333_v48  ;;  %v3412_v47 = vld [vmem:[#allocation5 + $0x7a0] ss:$16 sps:$4 sm:$0xff]   ;;  %v3415_v48 = vld [vmem:[#allocation5 + $0x7a8] ss:$16 sps:$4 sm:$0xff]  }
 0x199   :  { %2040 = vmatpush1.bf16.msra.mxu0 %v3328_v49  ;;  %2212 = vmatpush1.bf16.msra.mxu1 %v3331_v50  ;;  %v3420_v49 = vld [vmem:[#allocation5 + $0x7c4] ss:$16 sps:$4 sm:$0xff]   ;;  %v3423_v50 = vld [vmem:[#allocation5 + $0x7cc] ss:$16 sps:$4 sm:$0xff]  }
 0x19a   :  { %2052 = vmatprep.subr.bf16.mxu0 %v3336_v51  ;;  %2224 = vmatprep.subr.bf16.mxu1 %v3339_v52  ;;  %v3418_v51 = vld [vmem:[#allocation5 + $0x7c0] ss:$16 sps:$4 sm:$0xff]   ;;  %v3421_v52 = vld [vmem:[#allocation5 + $0x7c8] ss:$16 sps:$4 sm:$0xff]  }
 0x19c   :  { %2042 = vmatmul.mubr.bf16.vlgmr.msra.gmra.mrb[8].mxu0 %v3687_v19  ;;  %2214 = vmatmul.mubr.bf16.vlgmr.msra.gmra.mrb[8].mxu1 %v3687_v19  ;;  %v3357_v19 = vld [vmem:[#allocation5 + $0x66c] ss:$16 sps:$4 sm:$0xff]  }
 0x19d   :  { %2053 = vmatpush1.bf16.msra.mxu0 %v3334_v53  ;;  %2225 = vmatpush1.bf16.msra.mxu1 %v3337_v54  ;;  %v3426_v53 = vld [vmem:[#allocation5 + $0x7e4] ss:$16 sps:$4 sm:$0xff]   ;;  %v3429_v54 = vld [vmem:[#allocation5 + $0x7ec] ss:$16 sps:$4 sm:$0xff]  }
 0x19e   :  { %2054 = vmatprep.subr.bf16.mxu0 %v3342_v55  ;;  %2226 = vmatprep.subr.bf16.mxu1 %v3345_v63  ;;  %v3424_v55 = vld [vmem:[#allocation5 + $0x7e0] ss:$16 sps:$4 sm:$0xff]   ;;  %v3427_v63 = vld [vmem:[#allocation5 + $0x7e8] ss:$16 sps:$4 sm:$0xff]  }
 0x19f   :  { %2084 = vmatprep.mubr.bf16.mxu0 %v3697_v4  ;;  %2256 = vmatprep.mubr.bf16.mxu1 %v3697_v4  ;;  %v3361_v4 = vld [vmem:[#allocation5 + $0x688] ss:$16 sps:$4 sm:$0xff]  }
 0x1a1   :  { %2055 = vmatpush1.bf16.msra.mxu0 %v3340_v56  ;;  %2227 = vmatpush1.bf16.msra.mxu1 %v3343_v57  ;;  %v3430_v56 = vld [vmem:[#allocation7 + $0x40] sm:$0xff]  }
 0x1a2   :  { %2056 = vmatprep.subr.bf16.mxu0 %v3348_v58  ;;  %2228 = vmatprep.subr.bf16.mxu1 %v3351_v59  ;;  %v3431_v57 = vld [vmem:[#allocation7 + $0xc0] sm:$0xff]  }
 0x1a3   :  { %v3432_v58 = vld [vmem:[#allocation7] sm:$0xff]  }
 0x1a4   :  { %v3433_v59 = vld [vmem:[#allocation7 + $0x80] sm:$0xff]  }
 0x1a5   :  { %2057 = vmatpush1.bf16.msra.mxu0 %v3346_v60  ;;  %2229 = vmatpush1.bf16.msra.mxu1 %v3349_v28  ;;  %v3434_v60 = vld [vmem:[#allocation7 + $0x48] sm:$0xff]  }
 0x1a6   :  { %2058 = vmatprep.subr.bf16.mxu0 %v3354_v61  ;;  %2230 = vmatprep.subr.bf16.mxu1 %v3357_v19  ;;  %v3435_v28 = vld [vmem:[#allocation7 + $0xc8] sm:$0xff]  }
 0x1a7   :  { %v3436_v61 = vld [vmem:[#allocation7 + $0x8] sm:$0xff]  }
 0x1a8   :  { %v3437_v19 = vld [vmem:[#allocation7 + $0x88] sm:$0xff]  }
 0x1a9   :  { %2059 = vmatpush1.bf16.msra.mxu0 %v3352_v62  ;;  %2231 = vmatpush1.bf16.msra.mxu1 %v3355_v23  ;;  %v3438_v62 = vld [vmem:[#allocation7 + $0x50] sm:$0xff]  }
 0x1aa   :  { %2060 = vmatprep.subr.bf16.mxu0 %v3360_v0  ;;  %2232 = vmatprep.subr.bf16.mxu1 %v3363_v2  ;;  %v3439_v23 = vld [vmem:[#allocation7 + $0xd0] sm:$0xff]  }
 0x1ab   :  { %v3440_v0 = vld [vmem:[#allocation7 + $0x10] sm:$0xff]  }
 0x1ac   :  { %v3441_v2 = vld [vmem:[#allocation7 + $0x90] sm:$0xff]  }
 0x1ad   :  { %2061 = vmatpush1.bf16.msra.mxu0 %v3358_v3  ;;  %2233 = vmatpush1.bf16.msra.mxu1 %v3361_v4  ;;  %v3442_v3 = vld [vmem:[#allocation7 + $0x58] sm:$0xff]  }
 0x1ae   :  { %2062 = vmatprep.subr.bf16.mxu0 %v3366_v5  ;;  %2234 = vmatprep.subr.bf16.mxu1 %v3369_v6  ;;  %v3443_v4 = vld [vmem:[#allocation7 + $0xd8] sm:$0xff]   ;;  %v3446_v6 = vld [vmem:[#allocation7 + $0x60] sm:$0xff]  }
 0x1af   :  { %v3444_v5 = vld [vmem:[#allocation7 + $0x18] sm:$0xff]  }
 0x1b1   :  { %2063 = vmatpush1.bf16.msra.mxu0 %v3364_v7  ;;  %2235 = vmatpush1.bf16.msra.mxu1 %v3367_v8  ;;  %v3447_v7 = vld [vmem:[#allocation7 + $0xe0] sm:$0xff]  }
 0x1b2   :  { %2064 = vmatprep.subr.bf16.mxu0 %v3372_v9  ;;  %2236 = vmatprep.subr.bf16.mxu1 %v3375_v10  ;;  %v3448_v8 = vld [vmem:[#allocation7 + $0x20] sm:$0xff]   ;;  %v3450_v10 = vld [vmem:[#allocation7 + $0x68] sm:$0xff]  }
 0x1b3   :  { %v3449_v9 = vld [vmem:[#allocation7 + $0xa0] sm:$0xff]  }
 0x1b5   :  { %2065 = vmatpush1.bf16.msra.mxu0 %v3370_v11  ;;  %2237 = vmatpush1.bf16.msra.mxu1 %v3373_v12  ;;  %v3451_v11 = vld [vmem:[#allocation7 + $0xe8] sm:$0xff]  }
 0x1b6   :  { %2066 = vmatprep.subr.bf16.mxu0 %v3378_v13  ;;  %2238 = vmatprep.subr.bf16.mxu1 %v3381_v14  ;;  %v3452_v12 = vld [vmem:[#allocation7 + $0x28] sm:$0xff]   ;;  %v3454_v14 = vld [vmem:[#allocation7 + $0x70] sm:$0xff]  }
 0x1b7   :  { %v3453_v13 = vld [vmem:[#allocation7 + $0xa8] sm:$0xff]  }
 0x1b9   :  { %2067 = vmatpush1.bf16.msra.mxu0 %v3376_v15  ;;  %2239 = vmatpush1.bf16.msra.mxu1 %v3379_v16  ;;  %v3455_v15 = vld [vmem:[#allocation7 + $0xf0] sm:$0xff]  }
 0x1ba   :  { %2068 = vmatprep.subr.bf16.mxu0 %v3384_v17  ;;  %2240 = vmatprep.subr.bf16.mxu1 %v3387_v18  ;;  %v3456_v16 = vld [vmem:[#allocation7 + $0x30] sm:$0xff]   ;;  %v3458_v18 = vld [vmem:[#allocation7 + $0x78] sm:$0xff]  }
 0x1bb   :  { %v3457_v17 = vld [vmem:[#allocation7 + $0xb0] sm:$0xff]  }
 0x1bd   :  { %2069 = vmatpush1.bf16.msra.mxu0 %v3382_v20  ;;  %2241 = vmatpush1.bf16.msra.mxu1 %v3385_v27  ;;  %v3459_v20 = vld [vmem:[#allocation7 + $0xf8] sm:$0xff]  }
 0x1be   :  { %2070 = vmatprep.subr.bf16.mxu0 %v3390_v29  ;;  %2242 = vmatprep.subr.bf16.mxu1 %v3393_v30  ;;  %v3460_v27 = vld [vmem:[#allocation7 + $0x38] sm:$0xff]  }
 0x1bf   :  { %v3461_v29 = vld [vmem:[#allocation7 + $0xb8] sm:$0xff]  }
 0x1c0   :  { %v621_v30 = vld [vmem:[%s3739_s4] sm:$0xf] }
 0x1c1   :  { %2071 = vmatpush1.bf16.msra.mxu0 %v3388_v31  ;;  %2243 = vmatpush1.bf16.msra.mxu1 %v3391_v32  ;;  %v626_v31 = vrot.slane %v621_v30, %v77_v22  ;;  %v634_v32 = vrot.slane %v621_v30, %v85_v25 }
 0x1c2   :  { %2072 = vmatprep.subr.bf16.mxu0 %v3396_v33  ;;  %2244 = vmatprep.subr.bf16.mxu1 %v3399_v34  ;;  %v630_v33 = vrot.slane %v621_v30, %v81_v24  ;;  %v638_v34 = vrot.slane %v621_v30, %v89_v26 }
 0x1c5   :  { %2073 = vmatpush1.bf16.msra.mxu0 %v3394_v35  ;;  %2245 = vmatpush1.bf16.msra.mxu1 %v3397_v36 }
 0x1c6   :  { %2074 = vmatprep.subr.bf16.mxu0 %v3402_v37  ;;  %2246 = vmatprep.subr.bf16.mxu1 %v3405_v38 }
 0x1c9   :  { %2075 = vmatpush1.bf16.msra.mxu0 %v3400_v39  ;;  %2247 = vmatpush1.bf16.msra.mxu1 %v3403_v40 }
 0x1ca   :  { %2076 = vmatprep.subr.bf16.mxu0 %v3408_v41  ;;  %2248 = vmatprep.subr.bf16.mxu1 %v3411_v42 }
 0x1cd   :  { %2077 = vmatpush1.bf16.msra.mxu0 %v3406_v43  ;;  %2249 = vmatpush1.bf16.msra.mxu1 %v3409_v44 }
 0x1ce   :  { %2078 = vmatprep.subr.bf16.mxu0 %v3414_v45  ;;  %2250 = vmatprep.subr.bf16.mxu1 %v3417_v46 }
 0x1d1   :  { %2079 = vmatpush1.bf16.msra.mxu0 %v3412_v47  ;;  %2251 = vmatpush1.bf16.msra.mxu1 %v3415_v48 }
 0x1d2   :  { %2080 = vmatprep.subr.bf16.mxu0 %v3420_v49  ;;  %2252 = vmatprep.subr.bf16.mxu1 %v3423_v50 }
 0x1d5   :  { %2081 = vmatpush1.bf16.msra.mxu0 %v3418_v51  ;;  %2253 = vmatpush1.bf16.msra.mxu1 %v3421_v52 }
 0x1d6   :  { %2082 = vmatprep.subr.bf16.mxu0 %v3426_v53  ;;  %2254 = vmatprep.subr.bf16.mxu1 %v3429_v54 }
 0x1d9   :  { %2083 = vmatpush1.bf16.msra.mxu0 %v3424_v55  ;;  %2255 = vmatpush1.bf16.msra.mxu1 %v3427_v63 }
 0x1da   :  { %2950 = vmatprep.subr.bf16.mxu0 %v3430_v56  ;;  %2972 = vmatprep.subr.bf16.mxu1 %v3431_v57 }
 0x1dc   :  { %2085 = vmatmul.mubr.bf16.vlgmr.msra.gmra.mrb[8].mxu0 %v3695_v1  ;;  %2257 = vmatmul.mubr.bf16.vlgmr.msra.gmra.mrb[8].mxu1 %v3695_v1  ;;  %v3445_v1 = vld [vmem:[#allocation7 + $0x98] sm:$0xff]  }
 0x1dd   :  { %2951 = vmatpush3.bf16.msra.mxu0 %v3432_v58  ;;  %2973 = vmatpush3.bf16.msra.mxu1 %v3433_v59  ;;  %v2917_v59 = vld [vmem:[%s3741_s6] ss:$0 sm:$0xff]  ;;  %s3528_s6 = scalar_lea.vmem %s2632_s21, 256 }
 0x1de   :  { %2952 = vmatprep.subr.bf16.mxu0 %v3434_v60  ;;  %2974 = vmatprep.subr.bf16.mxu1 %v3435_v28  ;;  %p3529_p10 = scmp.ne.s32.totalorder %s2632_s21, %s3528_s6  ;;  %p3534_p12 = scmp.lt.s32.totalorder %s3528_s6, %s3528_s6 }
 0x1e0   :  { %p3535_p13 = por %p3534_p12, %p3533_p11 }
 0x1e1   :  { %2953 = vmatpush3.bf16.msra.mxu0 %v3436_v61  ;;  %2975 = vmatpush3.bf16.msra.mxu1 %v3437_v19 }
 0x1e2   :  { %2954 = vmatprep.subr.bf16.mxu0 %v3438_v62  ;;  %2976 = vmatprep.subr.bf16.mxu1 %v3439_v23  ;;  %p3536_p0 = pnand %p3535_p13, %p3529_p10 }
 0x1e5   :  { %2955 = vmatpush3.bf16.msra.mxu0 %v3440_v0  ;;  %2977 = vmatpush3.bf16.msra.mxu1 %v3441_v2 }
 0x1e6   :  { %2956 = vmatprep.subr.bf16.mxu0 %v3442_v3  ;;  %2978 = vmatprep.subr.bf16.mxu1 %v3443_v4 }
 0x1e9   :  { %2957 = vmatpush3.bf16.msra.mxu0 %v3444_v5  ;;  %2979 = vmatpush3.bf16.msra.mxu1 %v3445_v1 }
 0x1ea   :  { %2958 = vmatprep.subr.bf16.mxu0 %v3446_v6  ;;  %2980 = vmatprep.subr.bf16.mxu1 %v3447_v7 }
 0x1ed   :  { %2959 = vmatpush3.bf16.msra.mxu0 %v3448_v8  ;;  %2981 = vmatpush3.bf16.msra.mxu1 %v3449_v9 }
 0x1ee   :  { %2960 = vmatprep.subr.bf16.mxu0 %v3450_v10  ;;  %2982 = vmatprep.subr.bf16.mxu1 %v3451_v11 }
 0x1f1   :  { %2961 = vmatpush3.bf16.msra.mxu0 %v3452_v12  ;;  %2983 = vmatpush3.bf16.msra.mxu1 %v3453_v13 }
 0x1f2   :  { %2962 = vmatprep.subr.bf16.mxu0 %v3454_v14  ;;  %2984 = vmatprep.subr.bf16.mxu1 %v3455_v15 }
 0x1f5   :  { %2963 = vmatpush3.bf16.msra.mxu0 %v3456_v16  ;;  %2985 = vmatpush3.bf16.msra.mxu1 %v3457_v17 }
 0x1f6   :  { %2964 = vmatprep.subr.bf16.mxu0 %v3458_v18  ;;  %2986 = vmatprep.subr.bf16.mxu1 %v3459_v20 }
 0x1f9   :  { %2965 = vmatpush3.bf16.msra.mxu0 %v3460_v27  ;;  %2987 = vmatpush3.bf16.msra.mxu1 %v3461_v29 }
 0x2af   :  { %v2086_v35 = vpop.f32.mrb[8].mxu0  ;;  %v2258_v36 = vpop.f32.mrb[8].mxu1 }
 0x2b0   :  { %v2994_v37 = vadd.f32 %v2086_v35, %v626_v31  ;;  %v2998_v38 = vadd.f32 %v2258_v36, %v634_v32  ;;  %v2088_v39 = vpop.f32.mrb[9].mxu0  ;;  %v2260_v40 = vpop.f32.mrb[9].mxu1 }
 0x2b1   :  { %v2995_v41 = vadd.f32 %v2088_v39, %v630_v33  ;;  %v2999_v42 = vadd.f32 %v2260_v40, %v638_v34  ;;  %v2090_v43 = vpop.f32.mrb[10].mxu0  ;;  %v2262_v44 = vpop.f32.mrb[10].mxu1 }
 0x2b2   :  { %v2996_v22 = vadd.f32 %v2090_v43, %v626_v31  ;;  %v3000_v45 = vadd.f32 %v2262_v44, %v634_v32  ;;  %v2092_v46 = vpop.f32.mrb[11].mxu0  ;;  %v2264_v25 = vpop.f32.mrb[11].mxu1  ;;  %v2267_v24 = vmax.f32 %v2994_v37, 0.0  ;;  %v2269_v49 = vmax.f32 %v2998_v38, 0.0 }
 0x2b3   :  { %v2997_v47 = vadd.f32 %v2092_v46, %v630_v33  ;;  %v3001_v48 = vadd.f32 %v2264_v25, %v638_v34  ;;  %v2268_v50 = vmax.f32 %v2995_v41, 0.0  ;;  %v2270_v51 = vmax.f32 %v2999_v42, 0.0 }
 0x2b4   :  { %v2271_v21 = vmax.f32 %v2996_v22, 0.0  ;;  %v2273_v26 = vmax.f32 %v3000_v45, 0.0 }
 0x2b5   :  { %v2272_v52 = vmax.f32 %v2997_v47, 0.0  ;;  %v2274_v53 = vmax.f32 %v3001_v48, 0.0 }
 0x2b6   :  { %v2275_v54 = vpack.c.bf16 %v2271_v21, %v2267_v24  ;;  %v2277_v55 = vpack.c.bf16 %v2273_v26, %v2269_v49 }
 0x2b7   :  { %v2276_v63 = vpack.c.bf16 %v2272_v52, %v2268_v50  ;;  %v2278_v56 = vpack.c.bf16 %v2274_v53, %v2270_v51 }
 0x2b9   :  { %2574 = vmatprep.mubr.bf16.mxu0 %v2276_v63  ;;  %2615 = vmatprep.mubr.bf16.mxu1 %v2278_v56 }
 0x2ba   :  { %2575 = vmatmul.mubr.bf16.vlgmr.msra.gmra.mrb[12].mxu0 %v2275_v54  ;;  %2616 = vmatmul.mubr.bf16.vlgmr.msra.gmra.mrb[12].mxu1 %v2277_v55 }
 0x38d   :  { %v2966_v57 = vpop.f32.mrb[12].mxu0  ;;  %v2988_v58 = vpop.f32.mrb[12].mxu1 }
 0x38e   :  { %v2967_v60 = vpop.f32.mrb[13].mxu0  ;;  %v2989_v28 = vpop.f32.mrb[13].mxu1 }
 0x38f   :  { %v2968_v61 = vadd.f32 %v2967_v60, %v2966_v57  ;;  %v2990_v19 = vadd.f32 %v2989_v28, %v2988_v58  ;;  %v2969_v62 = vpop.f32.mrb[14].mxu0  ;;  %v2991_v23 = vpop.f32.mrb[14].mxu1 }
 0x390   :  { %v2970_v0 = vpop.f32.mrb[15].mxu0  ;;  %v2992_v2 = vpop.f32.mrb[15].mxu1 }
 0x391   :  { %v2577_v3 = vadd.f32 %v2968_v61, %v2917_v59  ;;  %v2971_v4 = vadd.f32 %v2970_v0, %v2969_v62  ;;  %v2993_v5 = vadd.f32 %v2992_v2, %v2991_v23 }
 0x393   :  { %v2618_v1 = vadd.f32 %v2990_v19, %v2577_v3  ;;  %v2580_v6 = vadd.f32 %v2971_v4, %v2917_v59 }
 0x395   :  { %2624 = vst [vmem:[#allocation8] sm:$0xff] %v2618_v1  ;;  %v2621_v7 = vadd.f32 %v2993_v5, %v2580_v6 }
 0x397   :  { %2625 = vst [vmem:[#allocation8 + $0x8] sm:$0xff] %v2621_v7 }
 0x398   :  { %3539 = shalt.err (!%p3536_p0)
}
 0x399   :  { %s3540_s24 = scalar_lea.hbm %s3742_s7, 256 }
 0x39a   :  { %p3541_p1 = scmp.ne.s32.totalorder %s3742_s7, %s3540_s24  ;;  %p3544_p2 = scmp.lt.u32.totalorder %s3540_s24, %s3742_s7 }
 0x39c   :  { %p3546_p3 = pnand %p3544_p2, %p3541_p1 }
 0x39e   :  { %3549 = shalt.err (!%p3546_p3)
}
 0x39f   :  { %s3565_s28 = smov 128   ;;  %s3566_s29 = smov 8  }
 0x3a0   :  { %2637 = dma.vmem_to_hbm [thread:$0]  %s2632_s21, 256, %s3742_s7, [#allocation4], %s3565_s28, %s3565_s28, %s3566_s29  }
 0x3a1   :  { %3554 = dma.done.wait [#allocation4], 256  }
 0x3a2   :  { %3555 = vsyncadd [#allocation4], 4294967040 }
 0x3a3   :  { %2641 = vsyncpa [#allocation3], 1 }
 0x3a4   :  { %2642 = vsyncpa [#allocation6], 1 }
 0x3a5   :  { %2643 = vsyncpa [#allocation4], 1 }

// kernel: tpu_custom_call.1
= control target key start
LH: loop header
LB: loop body
LE: loop exit
PB: predicated region body
PF: predicated region fallthrough
CT: control target
= control target key end

     0   :  { %12 = vsyncpa [#allocation3], 0  ;;  %s3735_s0 = inlined_call_operand.vmem [shape: bf16[16,8], index: 0, kind: input, shape index: {}]   ;;  %s3736_s1 = inlined_call_operand.hbm [shape: bf16[8,1024], index: 1, kind: input, shape index: {}]   ;;  %s3737_s2 = inlined_call_operand.vmem [shape: f32[1,1024], index: 2, kind: input, shape index: {}]   ;;  %s3738_s3 = inlined_call_operand.hbm [shape: bf16[1024,512], index: 3, kind: input, shape index: {}]   ;;  %s3739_s4 = inlined_call_operand.vmem [shape: f32[1,512], index: 4, kind: input, shape index: {}]   ;;  %s3740_s5 = inlined_call_operand.hbm [shape: bf16[512,128], index: 5, kind: input, shape index: {}]   ;;  %s3741_s6 = inlined_call_operand.vmem [shape: f32[1,128], index: 6, kind: input, shape index: {}]   ;;  %s3742_s7 = inlined_call_operand.hbm [shape: f32[16,128], index: 7, kind: output, shape index: {}]  }
   0x1   :  { %13 = vsyncpa [#allocation6], 0 }
   0x2   :  { %14 = vsyncpa [#allocation4], 0  ;;  %s3556_s24 = smov [#allocation5]   ;;  %s3462_s28 = scalar_lea.hbm %s3738_s3, 32768 }
   0x3   :  { %s34_s25 = sshll.u32 %s3556_s24, 4  ;;  %p3463_p0 = scmp.ne.s32.totalorder %s3738_s3, %s3462_s28  ;;  %s35_s25 = int_to_ptr.vmem [resolvable:$true] %s34_s25 }
   0x4   :  { %p3466_p1 = scmp.lt.u32.totalorder %s3462_s28, %s3738_s3 }
   0x6   :  { %p3468_p2 = pnand %p3466_p1, %p3463_p0 }
   0x8   :  { %3471 = shalt.err (!%p3468_p2)
}
   0x9   :  { %s3472_s10 = scalar_lea.vmem %s35_s25, 32768  ;;  %p3477_p4 = scmp.lt.s32.totalorder %s35_s25, %s35_s25 }
   0xa   :  { %p3473_p3 = scmp.ne.s32.totalorder %s35_s25, %s3472_s10  ;;  %p3478_p5 = scmp.lt.s32.totalorder %s3472_s10, %s3472_s10 }
   0xc   :  { %p3479_p6 = por %p3478_p5, %p3477_p4 }
   0xe   :  { %p3480_p7 = pnand %p3479_p6, %p3473_p3 }
  0x10   :  { %3483 = shalt.err (!%p3480_p7)
}
  0x11   :  { %s3557_s11 = smov 256   ;;  %s3558_s12 = smov 16  }
  0x12   :  { %40 = dma.hbm_to_vmem [thread:$0]  %s3738_s3, 32768, %s35_s25, [#allocation6], %s3557_s11, %s3557_s11, %s3558_s12  }
  0x13   :  { %s3559_s15 = smov [#allocation2]   ;;  %s3560_s17 = smov [#allocation7]  }
  0x14   :  { %s23_s16 = sshll.u32 %s3559_s15, 4  ;;  %s48_s18 = sshll.u32 %s3560_s17, 4  ;;  %s24_s16 = int_to_ptr.vmem [resolvable:$true] %s23_s16  ;;  %s49_s18 = int_to_ptr.vmem [resolvable:$true] %s48_s18 }
  0x15   :  { %s3484_s21 = scalar_lea.hbm %s3736_s1, 512 }
  0x16   :  { %p3485_p8 = scmp.ne.s32.totalorder %s3736_s1, %s3484_s21  ;;  %p3488_p9 = scmp.lt.u32.totalorder %s3484_s21, %s3736_s1 }
  0x18   :  { %p3490_p10 = pnand %p3488_p9, %p3485_p8 }
  0x1a   :  { %3493 = shalt.err (!%p3490_p10)
}
  0x1b   :  { %s3494_s3 = scalar_lea.vmem %s24_s16, 512  ;;  %p3499_p12 = scmp.lt.s32.totalorder %s24_s16, %s24_s16 }
  0x1c   :  { %p3495_p11 = scmp.ne.s32.totalorder %s24_s16, %s3494_s3  ;;  %p3500_p13 = scmp.lt.s32.totalorder %s3494_s3, %s3494_s3 }
  0x1e   :  { %p3501_p0 = por %p3500_p13, %p3499_p12 }
  0x20   :  { %p3502_p1 = pnand %p3501_p0, %p3495_p11 }
  0x22   :  { %3505 = shalt.err (!%p3502_p1)
}
  0x23   :  { %26 = dma.hbm_to_vmem [thread:$0]  %s3736_s1, 512, %s24_s16, [#allocation3]  }
  0x24   :  { %s3506_s30 = scalar_lea.hbm %s3740_s5, 4096 }
  0x25   :  { %p3507_p2 = scmp.ne.s32.totalorder %s3740_s5, %s3506_s30  ;;  %p3510_p3 = scmp.lt.u32.totalorder %s3506_s30, %s3740_s5 }
  0x27   :  { %p3512_p4 = pnand %p3510_p3, %p3507_p2 }
  0x29   :  { %3515 = shalt.err (!%p3512_p4)
}
  0x2a   :  { %s3516_s12 = scalar_lea.vmem %s49_s18, 4096  ;;  %p3521_p6 = scmp.lt.s32.totalorder %s49_s18, %s49_s18 }
  0x2b   :  { %p3517_p5 = scmp.ne.s32.totalorder %s49_s18, %s3516_s12  ;;  %p3522_p7 = scmp.lt.s32.totalorder %s3516_s12, %s3516_s12 }
  0x2d   :  { %p3523_p8 = por %p3522_p7, %p3521_p6 }
  0x2f   :  { %p3524_p9 = pnand %p3523_p8, %p3517_p5 }
  0x31   :  { %3527 = shalt.err (!%p3524_p9)
}
  0x32   :  { %s3561_s1 = smov 64   ;;  %s3562_s13 = smov 4  }
  0x33   :  { %54 = dma.hbm_to_vmem [thread:$0]  %s3740_s5, 4096, %s49_s18, [#allocation6], %s3561_s1, %s3561_s1, %s3562_s13  }
  0x34   :  { %3550 = dma.done.wait [#allocation3], 512  }
  0x35   :  { %3551 = vsyncadd [#allocation3], 4294966784 }
  0x36   :  { %3552 = dma.done.wait [#allocation6], 36864  }
  0x37   :  { %3553 = vsyncadd [#allocation6], 4294930432  ;;  %v3563_v0 = vmov 0   ;;  %v69_v1 = vld [vmem:[#allocation2] sm:$0xff]  ;;  %vm144_vm0 = vcmask 1043456   ;;  %v70_v4 = vld [vmem:[#allocation2 + $0x8] sm:$0xff] }
  0x38   :  { %201 = vmatprep.mubr.bf16.mxu0 %v3563_v0  ;;  %244 = vmatprep.mubr.bf16.mxu1 %v3563_v0  ;;  %v2646_v2 = vcombine.high %v69_v1, %v69_v1  ;;  %v2645_v3 = vcombine.low %v69_v1, %v69_v1  ;;  %v71_v5 = vld [vmem:[#allocation2 + $0x10] sm:$0xff]  ;;  %v2648_v6 = vcombine.high %v70_v4, %v70_v4  ;;  %v72_v10 = vld [vmem:[#allocation2 + $0x18] sm:$0xff]  ;;  %vm140_vm1 = vcmask 64512   ;;  %s3564_s20 = smov [#allocation8]  }
  0x39   :  { %v2647_v7 = vcombine.low %v70_v4, %v70_v4  ;;  %v2650_v8 = vcombine.high %v71_v5, %v71_v5  ;;  %v2649_v9 = vcombine.low %v71_v5, %v71_v5  ;;  %v3039_v12 = vld [vmem:[%s3735_s0] sm:$0xff]   ;;  %v2652_v13 = vcombine.high %v72_v10, %v72_v10  ;;  %v3048_v18 = vld [vmem:[#allocation5 + $0x4] ss:$16 sps:$4 sm:$0xff]   ;;  %v3046_v20 = vld [vmem:[#allocation5] ss:$16 sps:$4 sm:$0xff]   ;;  %s2631_s21 = sshll.u32 %s3564_s20, 4  ;;  %s2632_s21 = int_to_ptr.vmem [resolvable:$true] %s2631_s21 }
  0x3a   :  { %2653 = vmatprep.subr.msk.bf16.mxu0 %vm144_vm0, %v2646_v2  ;;  %v146_v11 = vsel %vm144_vm0, %v2645_v3, 0  ;;  %v2651_v14 = vcombine.low %v72_v10, %v72_v10  ;;  %2655 = vmatprep.subr.msk.bf16.mxu1 %vm144_vm0, %v2648_v6  ;;  %v3051_v19 = vld [vmem:[#allocation5 + $0xc] ss:$16 sps:$4 sm:$0xff]   ;;  %v3049_v21 = vld [vmem:[#allocation5 + $0x8] ss:$16 sps:$4 sm:$0xff]   ;;  %p3533_p11 = scmp.lt.s32.totalorder %s2632_s21, %s2632_s21 }
  0x3b   :  { %170 = vmatpush1.bf16.msra.mxu0 %v146_v11  ;;  %v152_v15 = vsel %vm144_vm0, %v2647_v7, 0  ;;  %v158_v16 = vsel %vm144_vm0, %v2649_v9, 0  ;;  %v3054_v22 = vld [vmem:[#allocation5 + $0x24] ss:$16 sps:$4 sm:$0xff]   ;;  %v3057_v23 = vld [vmem:[#allocation5 + $0x2c] ss:$16 sps:$4 sm:$0xff]  }
  0x3c   :  { %213 = vmatpush1.bf16.msra.mxu1 %v152_v15  ;;  %2657 = vmatprep.subr.msk.bf16.mxu0 %vm144_vm0, %v2650_v8  ;;  %v164_v17 = vsel %vm144_vm0, %v2651_v14, 0  ;;  %v3052_v24 = vld [vmem:[#allocation5 + $0x20] ss:$16 sps:$4 sm:$0xff]   ;;  %v3055_v25 = vld [vmem:[#allocation5 + $0x28] ss:$16 sps:$4 sm:$0xff]  }
  0x3d   :  { %2659 = vmatprep.subr.msk.bf16.mxu1 %vm144_vm0, %v2652_v13  ;;  %v3060_v26 = vld [vmem:[#allocation5 + $0x44] ss:$16 sps:$4 sm:$0xff]   ;;  %v3063_v27 = vld [vmem:[#allocation5 + $0x4c] ss:$16 sps:$4 sm:$0xff]   ;;  %v3058_v28 = vld [vmem:[#allocation5 + $0x40] ss:$16 sps:$4 sm:$0xff]  }
  0x3e   :  { %2654 = vmatmul.mubr.msk.bf16.vlgmr.msra.gmra.mrb[0].mxu0 %vm140_vm1, %v3039_v12  ;;  %v3061_v29 = vld [vmem:[#allocation5 + $0x48] ss:$16 sps:$4 sm:$0xff]   ;;  %v3066_v30 = vld [vmem:[#allocation5 + $0x64] ss:$16 sps:$4 sm:$0xff]   ;;  %v3069_v31 = vld [vmem:[#allocation5 + $0x6c] ss:$16 sps:$4 sm:$0xff]  }
  0x3f   :  { %2656 = vmatmul.mubr.msk.bf16.vlgmr.msra.gmra.mrb[0].mxu1 %vm140_vm1, %v3039_v12  ;;  %256 = vmatpush1.bf16.msra.mxu0 %v158_v16  ;;  %v3064_v32 = vld [vmem:[#allocation5 + $0x60] ss:$16 sps:$4 sm:$0xff]   ;;  %v3067_v33 = vld [vmem:[#allocation5 + $0x68] ss:$16 sps:$4 sm:$0xff]   ;;  %v3072_v34 = vld [vmem:[#allocation5 + $0x84] ss:$16 sps:$4 sm:$0xff]  }
  0x40   :  { %287 = vmatprep.mubr.bf16.mxu0 %v3563_v0  ;;  %299 = vmatpush1.bf16.msra.mxu1 %v164_v17  ;;  %v3075_v35 = vld [vmem:[#allocation5 + $0x8c] ss:$16 sps:$4 sm:$0xff]   ;;  %v3070_v36 = vld [vmem:[#allocation5 + $0x80] ss:$16 sps:$4 sm:$0xff]   ;;  %v3073_v37 = vld [vmem:[#allocation5 + $0x88] ss:$16 sps:$4 sm:$0xff]  }
  0x41   :  { %330 = vmatprep.mubr.bf16.mxu1 %v3563_v0  ;;  %1923 = vmatprep.subr.bf16.mxu0 %v3048_v18  ;;  %v3078_v38 = vld [vmem:[#allocation5 + $0xa4] ss:$16 sps:$4 sm:$0xff]   ;;  %v3081_v39 = vld [vmem:[#allocation5 + $0xac] ss:$16 sps:$4 sm:$0xff]   ;;  %v3076_v40 = vld [vmem:[#allocation5 + $0xa0] ss:$16 sps:$4 sm:$0xff]  }
  0x42   :  { %2095 = vmatprep.subr.bf16.mxu1 %v3051_v19  ;;  %v3079_v41 = vld [vmem:[#allocation5 + $0xa8] ss:$16 sps:$4 sm:$0xff]   ;;  %v3084_v42 = vld [vmem:[#allocation5 + $0xc4] ss:$16 sps:$4 sm:$0xff]   ;;  %v3087_v43 = vld [vmem:[#allocation5 + $0xcc] ss:$16 sps:$4 sm:$0xff]  }
  0x43   :  { %v3082_v44 = vld [vmem:[#allocation5 + $0xc0] ss:$16 sps:$4 sm:$0xff]   ;;  %v3085_v45 = vld [vmem:[#allocation5 + $0xc8] ss:$16 sps:$4 sm:$0xff]   ;;  %v3090_v46 = vld [vmem:[#allocation5 + $0xe4] ss:$16 sps:$4 sm:$0xff]  }
  0x44   :  { %v3093_v47 = vld [vmem:[#allocation5 + $0xec] ss:$16 sps:$4 sm:$0xff]   ;;  %v3088_v48 = vld [vmem:[#allocation5 + $0xe0] ss:$16 sps:$4 sm:$0xff]   ;;  %v3091_v49 = vld [vmem:[#allocation5 + $0xe8] ss:$16 sps:$4 sm:$0xff]  }
  0x45   :  { %v3096_v50 = vld [vmem:[#allocation5 + $0x104] ss:$16 sps:$4 sm:$0xff]   ;;  %v3099_v51 = vld [vmem:[#allocation5 + $0x10c] ss:$16 sps:$4 sm:$0xff]   ;;  %v3094_v52 = vld [vmem:[#allocation5 + $0x100] ss:$16 sps:$4 sm:$0xff]  }
  0x46   :  { %2658 = vmatmul.mubr.msk.bf16.vlgmr.msra.gmra.mrb[4].mxu0 %vm140_vm1, %v3039_v12  ;;  %v3097_v53 = vld [vmem:[#allocation5 + $0x108] ss:$16 sps:$4 sm:$0xff]   ;;  %v3102_v54 = vld [vmem:[#allocation5 + $0x124] ss:$16 sps:$4 sm:$0xff]   ;;  %v3105_v55 = vld [vmem:[#allocation5 + $0x12c] ss:$16 sps:$4 sm:$0xff]  }
  0x47   :  { %2660 = vmatmul.mubr.msk.bf16.vlgmr.msra.gmra.mrb[4].mxu1 %vm140_vm1, %v3039_v12  ;;  %1924 = vmatpush1.bf16.msra.mxu0 %v3046_v20  ;;  %v3100_v56 = vld [vmem:[#allocation5 + $0x120] ss:$16 sps:$4 sm:$0xff]   ;;  %v3103_v57 = vld [vmem:[#allocation5 + $0x128] ss:$16 sps:$4 sm:$0xff]   ;;  %v3108_v58 = vld [vmem:[#allocation5 + $0x144] ss:$16 sps:$4 sm:$0xff]   ;;  %v75_v20 = vlaneseq }
  0x48   :  { %2096 = vmatpush1.bf16.msra.mxu1 %v3049_v21  ;;  %1925 = vmatprep.subr.bf16.mxu0 %v3054_v22  ;;  %v3111_v59 = vld [vmem:[#allocation5 + $0x14c] ss:$16 sps:$4 sm:$0xff]   ;;  %v3106_v60 = vld [vmem:[#allocation5 + $0x140] ss:$16 sps:$4 sm:$0xff]   ;;  %v3109_v61 = vld [vmem:[#allocation5 + $0x148] ss:$16 sps:$4 sm:$0xff]  }
  0x49   :  { %2097 = vmatprep.subr.bf16.mxu1 %v3057_v23  ;;  %v3114_v62 = vld [vmem:[#allocation5 + $0x164] ss:$16 sps:$4 sm:$0xff]   ;;  %v3117_v63 = vld [vmem:[#allocation5 + $0x16c] ss:$16 sps:$4 sm:$0xff]   ;;  %v3112_v0 = vld [vmem:[#allocation5 + $0x160] ss:$16 sps:$4 sm:$0xff]  }
  0x4a   :  { %v3115_v1 = vld [vmem:[#allocation5 + $0x168] ss:$16 sps:$4 sm:$0xff]   ;;  %v3120_v2 = vld [vmem:[#allocation5 + $0x184] ss:$16 sps:$4 sm:$0xff]   ;;  %v3123_v3 = vld [vmem:[#allocation5 + $0x18c] ss:$16 sps:$4 sm:$0xff]  }
  0x4b   :  { %1926 = vmatpush1.bf16.msra.mxu0 %v3052_v24  ;;  %v3118_v4 = vld [vmem:[#allocation5 + $0x180] ss:$16 sps:$4 sm:$0xff]   ;;  %v3121_v5 = vld [vmem:[#allocation5 + $0x188] ss:$16 sps:$4 sm:$0xff]   ;;  %v3126_v6 = vld [vmem:[#allocation5 + $0x1a4] ss:$16 sps:$4 sm:$0xff]  }
  0x4c   :  { %2098 = vmatpush1.bf16.msra.mxu1 %v3055_v25  ;;  %1927 = vmatprep.subr.bf16.mxu0 %v3060_v26  ;;  %v3129_v7 = vld [vmem:[#allocation5 + $0x1ac] ss:$16 sps:$4 sm:$0xff]   ;;  %v3124_v8 = vld [vmem:[#allocation5 + $0x1a0] ss:$16 sps:$4 sm:$0xff]   ;;  %v3127_v9 = vld [vmem:[#allocation5 + $0x1a8] ss:$16 sps:$4 sm:$0xff]  }
  0x4d   :  { %2099 = vmatprep.subr.bf16.mxu1 %v3063_v27  ;;  %v3132_v10 = vld [vmem:[#allocation5 + $0x1c4] ss:$16 sps:$4 sm:$0xff]   ;;  %v3135_v11 = vld [vmem:[#allocation5 + $0x1cc] ss:$16 sps:$4 sm:$0xff]   ;;  %v3130_v12 = vld [vmem:[#allocation5 + $0x1c0] ss:$16 sps:$4 sm:$0xff]  }
  0x4e   :  { %v3133_v13 = vld [vmem:[#allocation5 + $0x1c8] ss:$16 sps:$4 sm:$0xff]   ;;  %v3138_v14 = vld [vmem:[#allocation5 + $0x1e4] ss:$16 sps:$4 sm:$0xff]   ;;  %v3141_v15 = vld [vmem:[#allocation5 + $0x1ec] ss:$16 sps:$4 sm:$0xff]  }
  0x4f   :  { %1928 = vmatpush1.bf16.msra.mxu0 %v3058_v28  ;;  %v3136_v16 = vld [vmem:[#allocation5 + $0x1e0] ss:$16 sps:$4 sm:$0xff]   ;;  %v3139_v17 = vld [vmem:[#allocation5 + $0x1e8] ss:$16 sps:$4 sm:$0xff]   ;;  %v3144_v18 = vld [vmem:[#allocation5 + $0x204] ss:$16 sps:$4 sm:$0xff]  }
  0x50   :  { %2100 = vmatpush1.bf16.msra.mxu1 %v3061_v29  ;;  %1929 = vmatprep.subr.bf16.mxu0 %v3066_v30  ;;  %v3147_v19 = vld [vmem:[#allocation5 + $0x20c] ss:$16 sps:$4 sm:$0xff]   ;;  %v3658_v21 = vshrl.u32 %v75_v20, 7  ;;  %v3154_v20 = vld [vmem:[#allocation5 + $0x240] ss:$16 sps:$4 sm:$0xff]  }
  0x51   :  { %2101 = vmatprep.subr.bf16.mxu1 %v3069_v31  ;;  %v3664_v23 = vld [vmem:[%s3737_s2] sm:$0xff] }
  0x52   :  { %v77_v22 = vsub.s32 0, %v3658_v21  ;;  %v81_v24 = vsub.s32 1, %v3658_v21  ;;  %v85_v25 = vsub.s32 2, %v3658_v21  ;;  %v89_v26 = vsub.s32 3, %v3658_v21 }
  0x53   :  { %1930 = vmatpush1.bf16.msra.mxu0 %v3064_v32  ;;  %v93_v32 = vsub.s32 4, %v3658_v21 }
  0x54   :  { %2102 = vmatpush1.bf16.msra.mxu1 %v3067_v33  ;;  %1931 = vmatprep.subr.bf16.mxu0 %v3072_v34  ;;  %v78_v27 = vrot.slane %v3664_v23, %v77_v22  ;;  %v82_v28 = vrot.slane %v3664_v23, %v81_v24  ;;  %v86_v29 = vrot.slane %v3664_v23, %v85_v25 }
  0x55   :  { %2103 = vmatprep.subr.bf16.mxu1 %v3075_v35  ;;  %v90_v30 = vrot.slane %v3664_v23, %v89_v26 }
  0x57   :  { %1932 = vmatpush1.bf16.msra.mxu0 %v3070_v36 }
  0x58   :  { %2104 = vmatpush1.bf16.msra.mxu1 %v3073_v37  ;;  %1933 = vmatprep.subr.bf16.mxu0 %v3078_v38 }
  0x59   :  { %2105 = vmatprep.subr.bf16.mxu1 %v3081_v39 }
  0x5b   :  { %1934 = vmatpush1.bf16.msra.mxu0 %v3076_v40  ;;  %v97_v40 = vsub.s32 5, %v3658_v21 }
  0x5c   :  { %2106 = vmatpush1.bf16.msra.mxu1 %v3079_v41  ;;  %1935 = vmatprep.subr.bf16.mxu0 %v3084_v42 }
  0x5d   :  { %2107 = vmatprep.subr.bf16.mxu1 %v3087_v43 }
  0x5f   :  { %1936 = vmatpush1.bf16.msra.mxu0 %v3082_v44 }
  0x60   :  { %2108 = vmatpush1.bf16.msra.mxu1 %v3085_v45  ;;  %1937 = vmatprep.subr.bf16.mxu0 %v3090_v46 }
  0x61   :  { %2109 = vmatprep.subr.bf16.mxu1 %v3093_v47 }
  0x63   :  { %1938 = vmatpush1.bf16.msra.mxu0 %v3088_v48 }
  0x64   :  { %2110 = vmatpush1.bf16.msra.mxu1 %v3091_v49  ;;  %1939 = vmatprep.subr.bf16.mxu0 %v3096_v50  ;;  %v94_v49 = vrot.slane %v3664_v23, %v93_v32  ;;  %v3163_v32 = vld [vmem:[#allocation5 + $0x268] ss:$16 sps:$4 sm:$0xff]  }
  0x65   :  { %2111 = vmatprep.subr.bf16.mxu1 %v3099_v51 }
  0x67   :  { %1940 = vmatpush1.bf16.msra.mxu0 %v3094_v52 }
  0x68   :  { %2112 = vmatpush1.bf16.msra.mxu1 %v3097_v53  ;;  %1941 = vmatprep.subr.bf16.mxu0 %v3102_v54 }
  0x69   :  { %2113 = vmatprep.subr.bf16.mxu1 %v3105_v55 }
  0x6b   :  { %1942 = vmatpush1.bf16.msra.mxu0 %v3100_v56 }
  0x6c   :  { %2114 = vmatpush1.bf16.msra.mxu1 %v3103_v57  ;;  %1943 = vmatprep.subr.bf16.mxu0 %v3108_v58  ;;  %v98_v57 = vrot.slane %v3664_v23, %v97_v40  ;;  %v3175_v40 = vld [vmem:[#allocation5 + $0x2a8] ss:$16 sps:$4 sm:$0xff]  }
  0x6d   :  { %2115 = vmatprep.subr.bf16.mxu1 %v3111_v59 }
  0x6f   :  { %1944 = vmatpush1.bf16.msra.mxu0 %v3106_v60 }
  0x70   :  { %2116 = vmatpush1.bf16.msra.mxu1 %v3109_v61  ;;  %1945 = vmatprep.subr.bf16.mxu0 %v3114_v62  ;;  %v3142_v61 = vld [vmem:[#allocation5 + $0x200] ss:$16 sps:$4 sm:$0xff]   ;;  %v3145_v62 = vld [vmem:[#allocation5 + $0x208] ss:$16 sps:$4 sm:$0xff]  }
  0x71   :  { %2117 = vmatprep.subr.bf16.mxu1 %v3117_v63 }
  0x73   :  { %1946 = vmatpush1.bf16.msra.mxu0 %v3112_v0 }
  0x74   :  { %2118 = vmatpush1.bf16.msra.mxu1 %v3115_v1  ;;  %1947 = vmatprep.subr.bf16.mxu0 %v3120_v2  ;;  %v3150_v1 = vld [vmem:[#allocation5 + $0x224] ss:$16 sps:$4 sm:$0xff]   ;;  %v3153_v2 = vld [vmem:[#allocation5 + $0x22c] ss:$16 sps:$4 sm:$0xff]  }
  0x75   :  { %2119 = vmatprep.subr.bf16.mxu1 %v3123_v3 }
  0x77   :  { %1948 = vmatpush1.bf16.msra.mxu0 %v3118_v4 }
  0x78   :  { %2120 = vmatpush1.bf16.msra.mxu1 %v3121_v5  ;;  %1949 = vmatprep.subr.bf16.mxu0 %v3126_v6 }
  0x79   :  { %2121 = vmatprep.subr.bf16.mxu1 %v3129_v7 }
  0x7b   :  { %1950 = vmatpush1.bf16.msra.mxu0 %v3124_v8 }
  0x7c   :  { %2122 = vmatpush1.bf16.msra.mxu1 %v3127_v9  ;;  %1951 = vmatprep.subr.bf16.mxu0 %v3132_v10 }
  0x7d   :  { %2123 = vmatprep.subr.bf16.mxu1 %v3135_v11  ;;  %v3148_v11 = vld [vmem:[#allocation5 + $0x220] ss:$16 sps:$4 sm:$0xff]  }
  0x7f   :  { %1952 = vmatpush1.bf16.msra.mxu0 %v3130_v12  ;;  %v3151_v12 = vld [vmem:[#allocation5 + $0x228] ss:$16 sps:$4 sm:$0xff]  }
  0x80   :  { %2124 = vmatpush1.bf16.msra.mxu1 %v3133_v13  ;;  %1953 = vmatprep.subr.bf16.mxu0 %v3138_v14 }
  0x81   :  { %2125 = vmatprep.subr.bf16.mxu1 %v3141_v15  ;;  %v3156_v15 = vld [vmem:[#allocation5 + $0x244] ss:$16 sps:$4 sm:$0xff]  }
  0x83   :  { %1954 = vmatpush1.bf16.msra.mxu0 %v3136_v16  ;;  %v3159_v16 = vld [vmem:[#allocation5 + $0x24c] ss:$16 sps:$4 sm:$0xff]  }
  0x84   :  { %2126 = vmatpush1.bf16.msra.mxu1 %v3139_v17  ;;  %1966 = vmatprep.subr.bf16.mxu0 %v3144_v18 }
  0x85   :  { %2138 = vmatprep.subr.bf16.mxu1 %v3147_v19 }
 0x111   :  { %v203_v31 = vpop.f32.mrb[0].mxu0 }
 0x112   :  { %v204_v33 = vadd.f32 %v203_v31, %v78_v27  ;;  %v205_v34 = vpop.f32.mrb[1].mxu0  ;;  %v246_v35 = vpop.f32.mrb[0].mxu1  ;;  %v3160_v31 = vld [vmem:[#allocation5 + $0x260] ss:$16 sps:$4 sm:$0xff]  }
 0x113   :  { %v206_v36 = vadd.f32 %v205_v34, %v82_v28  ;;  %v207_v37 = vpop.f32.mrb[2].mxu0  ;;  %v247_v38 = vadd.f32 %v246_v35, %v86_v29  ;;  %v248_v39 = vpop.f32.mrb[1].mxu1  ;;  %v3171_v34 = vld [vmem:[#allocation5 + $0x28c] ss:$16 sps:$4 sm:$0xff]   ;;  %v3166_v35 = vld [vmem:[#allocation5 + $0x280] ss:$16 sps:$4 sm:$0xff]  }
 0x114   :  { %v208_v41 = vadd.f32 %v207_v37, %v78_v27  ;;  %v209_v42 = vpop.f32.mrb[3].mxu0  ;;  %v249_v43 = vadd.f32 %v248_v39, %v90_v30  ;;  %v250_v44 = vpop.f32.mrb[2].mxu1  ;;  %v341_v50 = vmax.f32 %v204_v33, 0.0  ;;  %v3157_v27 = vld [vmem:[#allocation5 + $0x248] ss:$16 sps:$4 sm:$0xff]  }
 0x115   :  { %v210_v45 = vadd.f32 %v209_v42, %v82_v28  ;;  %v343_v46 = vmax.f32 %v247_v38, 0.0  ;;  %v251_v47 = vadd.f32 %v250_v44, %v86_v29  ;;  %v252_v48 = vpop.f32.mrb[3].mxu1  ;;  %v342_v54 = vmax.f32 %v206_v36, 0.0  ;;  %v3162_v29 = vld [vmem:[#allocation5 + $0x264] ss:$16 sps:$4 sm:$0xff]  }
 0x116   :  { %v349_v51 = vmax.f32 %v208_v41, 0.0  ;;  %v344_v52 = vmax.f32 %v249_v43, 0.0  ;;  %v253_v53 = vadd.f32 %v252_v48, %v90_v30  ;;  %v3165_v30 = vld [vmem:[#allocation5 + $0x26c] ss:$16 sps:$4 sm:$0xff]   ;;  %v3168_v33 = vld [vmem:[#allocation5 + $0x284] ss:$16 sps:$4 sm:$0xff]  }
 0x117   :  { %v350_v55 = vmax.f32 %v210_v45, 0.0  ;;  %v351_v56 = vmax.f32 %v251_v47, 0.0  ;;  %v3169_v36 = vld [vmem:[#allocation5 + $0x288] ss:$16 sps:$4 sm:$0xff]   ;;  %v3174_v37 = vld [vmem:[#allocation5 + $0x2a4] ss:$16 sps:$4 sm:$0xff]  }
 0x118   :  { %v357_v58 = vpack.c.bf16 %v349_v51, %v341_v50  ;;  %v352_v59 = vmax.f32 %v253_v53, 0.0  ;;  %v3177_v38 = vld [vmem:[#allocation5 + $0x2ac] ss:$16 sps:$4 sm:$0xff]   ;;  %v3172_v39 = vld [vmem:[#allocation5 + $0x2a0] ss:$16 sps:$4 sm:$0xff]   ;;  %v101_v41 = vsub.s32 6, %v3658_v21 }
 0x119   :  { %v358_v60 = vpack.c.bf16 %v350_v55, %v342_v54  ;;  %v3685_v63 = vpack.c.bf16 %v351_v56, %v343_v46  ;;  %v289_v0 = vpop.f32.mrb[4].mxu0  ;;  %v105_v43 = vsub.s32 7, %v3658_v21  ;;  %v3180_v44 = vld [vmem:[#allocation5 + $0x2c4] ss:$16 sps:$4 sm:$0xff]   ;;  %v3183_v45 = vld [vmem:[#allocation5 + $0x2cc] ss:$16 sps:$4 sm:$0xff]  }
 0x11a   :  { %v360_v3 = vpack.c.bf16 %v352_v59, %v344_v52  ;;  %v290_v4 = vadd.f32 %v289_v0, %v94_v49  ;;  %v291_v5 = vpop.f32.mrb[5].mxu0  ;;  %v332_v42 = vpop.f32.mrb[4].mxu1  ;;  %v102_v47 = vrot.slane %v3664_v23, %v101_v41  ;;  %v3178_v50 = vld [vmem:[#allocation5 + $0x2c0] ss:$16 sps:$4 sm:$0xff]   ;;  %v3181_v51 = vld [vmem:[#allocation5 + $0x2c8] ss:$16 sps:$4 sm:$0xff]  }
 0x11b   :  { %1955 = vmatprep.mubr.bf16.mxu0 %v358_v60  ;;  %2127 = vmatprep.mubr.bf16.mxu1 %v358_v60  ;;  %v292_v6 = vadd.f32 %v291_v5, %v98_v57  ;;  %v293_v7 = vpop.f32.mrb[6].mxu0  ;;  %v334_v46 = vpop.f32.mrb[5].mxu1  ;;  %v106_v48 = vrot.slane %v3664_v23, %v105_v43  ;;  %v3186_v56 = vld [vmem:[#allocation5 + $0x2e4] ss:$16 sps:$4 sm:$0xff]   ;;  %v3184_v23 = vld [vmem:[#allocation5 + $0x2e0] ss:$16 sps:$4 sm:$0xff]  }
 0x11c   :  { %1956 = vmatmul.mubr.bf16.vlgmr.msra.gmra.mrb[8].mxu0 %v357_v58  ;;  %2128 = vmatmul.mubr.bf16.vlgmr.msra.gmra.mrb[8].mxu1 %v357_v58  ;;  %v345_v8 = vmax.f32 %v290_v4, 0.0  ;;  %v294_v9 = vadd.f32 %v293_v7, %v94_v49  ;;  %v295_v10 = vpop.f32.mrb[7].mxu0  ;;  %v336_v49 = vpop.f32.mrb[6].mxu1  ;;  %v333_v52 = vadd.f32 %v332_v42, %v102_v47  ;;  %v3187_v0 = vld [vmem:[#allocation5 + $0x2e8] ss:$16 sps:$4 sm:$0xff]  }
 0x11d   :  { %1967 = vmatpush1.bf16.msra.mxu0 %v3142_v61  ;;  %2139 = vmatpush1.bf16.msra.mxu1 %v3145_v62  ;;  %v346_v13 = vmax.f32 %v292_v6, 0.0  ;;  %v296_v14 = vadd.f32 %v295_v10, %v98_v57  ;;  %v335_v53 = vadd.f32 %v334_v46, %v106_v48  ;;  %v337_v54 = vadd.f32 %v336_v49, %v102_v47  ;;  %v338_v55 = vpop.f32.mrb[7].mxu1  ;;  %v3189_v57 = vld [vmem:[#allocation5 + $0x2ec] ss:$16 sps:$4 sm:$0xff]   ;;  %v3190_v5 = vld [vmem:[#allocation5 + $0x300] ss:$16 sps:$4 sm:$0xff]  }
 0x11e   :  { %1968 = vmatprep.subr.bf16.mxu0 %v3150_v1  ;;  %2140 = vmatprep.subr.bf16.mxu1 %v3153_v2  ;;  %v353_v17 = vmax.f32 %v294_v9, 0.0  ;;  %v339_v58 = vadd.f32 %v338_v55, %v106_v48  ;;  %v347_v59 = vmax.f32 %v333_v52, 0.0  ;;  %v3192_v2 = vld [vmem:[#allocation5 + $0x304] ss:$16 sps:$4 sm:$0xff]   ;;  %v3193_v6 = vld [vmem:[#allocation5 + $0x308] ss:$16 sps:$4 sm:$0xff]  }
 0x11f   :  { %1998 = vmatprep.mubr.bf16.mxu0 %v360_v3  ;;  %2170 = vmatprep.mubr.bf16.mxu1 %v360_v3  ;;  %v354_v18 = vmax.f32 %v296_v14, 0.0  ;;  %v348_v60 = vmax.f32 %v335_v53, 0.0  ;;  %v355_v61 = vmax.f32 %v337_v54, 0.0  ;;  %v3195_v3 = vld [vmem:[#allocation5 + $0x30c] ss:$16 sps:$4 sm:$0xff]  }
 0x120   :  { %v3687_v19 = vpack.c.bf16 %v353_v17, %v345_v8  ;;  %v356_v62 = vmax.f32 %v339_v58, 0.0  ;;  %v3198_v7 = vld [vmem:[#allocation5 + $0x324] ss:$16 sps:$4 sm:$0xff]   ;;  %v3201_v8 = vld [vmem:[#allocation5 + $0x32c] ss:$16 sps:$4 sm:$0xff]  }
 0x121   :  { %1969 = vmatpush1.bf16.msra.mxu0 %v3148_v11  ;;  %2141 = vmatpush1.bf16.msra.mxu1 %v3151_v12  ;;  %v3689_v28 = vpack.c.bf16 %v354_v18, %v346_v13  ;;  %v3695_v1 = vpack.c.bf16 %v355_v61, %v347_v59  ;;  %v3196_v9 = vld [vmem:[#allocation5 + $0x320] ss:$16 sps:$4 sm:$0xff]   ;;  %v3199_v10 = vld [vmem:[#allocation5 + $0x328] ss:$16 sps:$4 sm:$0xff]   ;;  %v3204_v11 = vld [vmem:[#allocation5 + $0x344] ss:$16 sps:$4 sm:$0xff]  }
 0x122   :  { %1970 = vmatprep.subr.bf16.mxu0 %v3156_v15  ;;  %2142 = vmatprep.subr.bf16.mxu1 %v3159_v16  ;;  %v3697_v4 = vpack.c.bf16 %v356_v62, %v348_v60  ;;  %v3207_v12 = vld [vmem:[#allocation5 + $0x34c] ss:$16 sps:$4 sm:$0xff]   ;;  %v3202_v13 = vld [vmem:[#allocation5 + $0x340] ss:$16 sps:$4 sm:$0xff]   ;;  %v3205_v14 = vld [vmem:[#allocation5 + $0x348] ss:$16 sps:$4 sm:$0xff]  }
 0x123   :  { %v3210_v15 = vld [vmem:[#allocation5 + $0x364] ss:$16 sps:$4 sm:$0xff]   ;;  %v3213_v16 = vld [vmem:[#allocation5 + $0x36c] ss:$16 sps:$4 sm:$0xff]   ;;  %v3208_v17 = vld [vmem:[#allocation5 + $0x360] ss:$16 sps:$4 sm:$0xff]  }
 0x124   :  { %v3211_v18 = vld [vmem:[#allocation5 + $0x368] ss:$16 sps:$4 sm:$0xff]   ;;  %v3232_v41 = vld [vmem:[#allocation5 + $0x3e0] ss:$16 sps:$4 sm:$0xff]   ;;  %v3240_v43 = vld [vmem:[#allocation5 + $0x404] ss:$16 sps:$4 sm:$0xff]  }
 0x125   :  { %1971 = vmatpush1.bf16.msra.mxu0 %v3154_v20  ;;  %2143 = vmatpush1.bf16.msra.mxu1 %v3157_v27  ;;  %v3216_v20 = vld [vmem:[#allocation5 + $0x384] ss:$16 sps:$4 sm:$0xff]   ;;  %v3219_v27 = vld [vmem:[#allocation5 + $0x38c] ss:$16 sps:$4 sm:$0xff]   ;;  %v3235_v42 = vld [vmem:[#allocation5 + $0x3e8] ss:$16 sps:$4 sm:$0xff]  }
 0x126   :  { %1972 = vmatprep.subr.bf16.mxu0 %v3162_v29  ;;  %2144 = vmatprep.subr.bf16.mxu1 %v3165_v30  ;;  %v3214_v29 = vld [vmem:[#allocation5 + $0x380] ss:$16 sps:$4 sm:$0xff]   ;;  %v3217_v30 = vld [vmem:[#allocation5 + $0x388] ss:$16 sps:$4 sm:$0xff]   ;;  %v3246_v47 = vld [vmem:[#allocation5 + $0x424] ss:$16 sps:$4 sm:$0xff]  }
 0x127   :  { %v3241_v46 = vld [vmem:[#allocation5 + $0x408] ss:$16 sps:$4 sm:$0xff]   ;;  %v3249_v48 = vld [vmem:[#allocation5 + $0x42c] ss:$16 sps:$4 sm:$0xff]   ;;  %v3244_v49 = vld [vmem:[#allocation5 + $0x420] ss:$16 sps:$4 sm:$0xff]  }
 0x128   :  { %v3255_v52 = vld [vmem:[#allocation5 + $0x44c] ss:$16 sps:$4 sm:$0xff]   ;;  %v3250_v53 = vld [vmem:[#allocation5 + $0x440] ss:$16 sps:$4 sm:$0xff]   ;;  %v3253_v54 = vld [vmem:[#allocation5 + $0x448] ss:$16 sps:$4 sm:$0xff]  }
 0x129   :  { %1973 = vmatpush1.bf16.msra.mxu0 %v3160_v31  ;;  %2145 = vmatpush1.bf16.msra.mxu1 %v3163_v32  ;;  %v3222_v31 = vld [vmem:[#allocation5 + $0x3a4] ss:$16 sps:$4 sm:$0xff]   ;;  %v3225_v32 = vld [vmem:[#allocation5 + $0x3ac] ss:$16 sps:$4 sm:$0xff]   ;;  %v3262_v60 = vld [vmem:[#allocation5 + $0x480] ss:$16 sps:$4 sm:$0xff]  }
 0x12a   :  { %1974 = vmatprep.subr.bf16.mxu0 %v3168_v33  ;;  %2146 = vmatprep.subr.bf16.mxu1 %v3171_v34  ;;  %v3220_v33 = vld [vmem:[#allocation5 + $0x3a0] ss:$16 sps:$4 sm:$0xff]   ;;  %v3223_v34 = vld [vmem:[#allocation5 + $0x3a8] ss:$16 sps:$4 sm:$0xff]   ;;  %v3258_v55 = vld [vmem:[#allocation5 + $0x464] ss:$16 sps:$4 sm:$0xff]  }
 0x12b   :  { %v3264_v58 = vld [vmem:[#allocation5 + $0x484] ss:$16 sps:$4 sm:$0xff]   ;;  %v3267_v59 = vld [vmem:[#allocation5 + $0x48c] ss:$16 sps:$4 sm:$0xff]  }
 0x12c   :  { %v3270_v61 = vld [vmem:[#allocation5 + $0x4a4] ss:$16 sps:$4 sm:$0xff]   ;;  %v3273_v62 = vld [vmem:[#allocation5 + $0x4ac] ss:$16 sps:$4 sm:$0xff]  }
 0x12d   :  { %1975 = vmatpush1.bf16.msra.mxu0 %v3166_v35  ;;  %2147 = vmatpush1.bf16.msra.mxu1 %v3169_v36  ;;  %v3228_v35 = vld [vmem:[#allocation5 + $0x3c4] ss:$16 sps:$4 sm:$0xff]   ;;  %v3231_v36 = vld [vmem:[#allocation5 + $0x3cc] ss:$16 sps:$4 sm:$0xff]  }
 0x12e   :  { %1976 = vmatprep.subr.bf16.mxu0 %v3174_v37  ;;  %2148 = vmatprep.subr.bf16.mxu1 %v3177_v38  ;;  %v3226_v37 = vld [vmem:[#allocation5 + $0x3c0] ss:$16 sps:$4 sm:$0xff]   ;;  %v3229_v38 = vld [vmem:[#allocation5 + $0x3c8] ss:$16 sps:$4 sm:$0xff]  }
 0x131   :  { %1977 = vmatpush1.bf16.msra.mxu0 %v3172_v39  ;;  %2149 = vmatpush1.bf16.msra.mxu1 %v3175_v40  ;;  %v3234_v39 = vld [vmem:[#allocation5 + $0x3e4] ss:$16 sps:$4 sm:$0xff]   ;;  %v3237_v40 = vld [vmem:[#allocation5 + $0x3ec] ss:$16 sps:$4 sm:$0xff]  }
 0x132   :  { %1978 = vmatprep.subr.bf16.mxu0 %v3180_v44  ;;  %2150 = vmatprep.subr.bf16.mxu1 %v3183_v45  ;;  %v3243_v44 = vld [vmem:[#allocation5 + $0x40c] ss:$16 sps:$4 sm:$0xff]   ;;  %v3238_v45 = vld [vmem:[#allocation5 + $0x400] ss:$16 sps:$4 sm:$0xff]  }
 0x135   :  { %1979 = vmatpush1.bf16.msra.mxu0 %v3178_v50  ;;  %2151 = vmatpush1.bf16.msra.mxu1 %v3181_v51  ;;  %v3247_v50 = vld [vmem:[#allocation5 + $0x428] ss:$16 sps:$4 sm:$0xff]   ;;  %v3252_v51 = vld [vmem:[#allocation5 + $0x444] ss:$16 sps:$4 sm:$0xff]  }
 0x136   :  { %1980 = vmatprep.subr.bf16.mxu0 %v3186_v56  ;;  %2152 = vmatprep.subr.bf16.mxu1 %v3189_v57  ;;  %v3256_v56 = vld [vmem:[#allocation5 + $0x460] ss:$16 sps:$4 sm:$0xff]   ;;  %v3259_v57 = vld [vmem:[#allocation5 + $0x468] ss:$16 sps:$4 sm:$0xff]  }
 0x139   :  { %1981 = vmatpush1.bf16.msra.mxu0 %v3184_v23  ;;  %2153 = vmatpush1.bf16.msra.mxu1 %v3187_v0  ;;  %v3268_v23 = vld [vmem:[#allocation5 + $0x4a0] ss:$16 sps:$4 sm:$0xff]   ;;  %v3271_v0 = vld [vmem:[#allocation5 + $0x4a8] ss:$16 sps:$4 sm:$0xff]  }
 0x13a   :  { %1982 = vmatprep.subr.bf16.mxu0 %v3192_v2  ;;  %2154 = vmatprep.subr.bf16.mxu1 %v3195_v3  ;;  %v3276_v2 = vld [vmem:[#allocation5 + $0x4c4] ss:$16 sps:$4 sm:$0xff]   ;;  %v3279_v3 = vld [vmem:[#allocation5 + $0x4cc] ss:$16 sps:$4 sm:$0xff]  }
 0x13d   :  { %1983 = vmatpush1.bf16.msra.mxu0 %v3190_v5  ;;  %2155 = vmatpush1.bf16.msra.mxu1 %v3193_v6  ;;  %v3274_v5 = vld [vmem:[#allocation5 + $0x4c0] ss:$16 sps:$4 sm:$0xff]   ;;  %v3277_v6 = vld [vmem:[#allocation5 + $0x4c8] ss:$16 sps:$4 sm:$0xff]  }
 0x13e   :  { %1984 = vmatprep.subr.bf16.mxu0 %v3198_v7  ;;  %2156 = vmatprep.subr.bf16.mxu1 %v3201_v8  ;;  %v3282_v7 = vld [vmem:[#allocation5 + $0x4e4] ss:$16 sps:$4 sm:$0xff]   ;;  %v3285_v8 = vld [vmem:[#allocation5 + $0x4ec] ss:$16 sps:$4 sm:$0xff]  }
 0x141   :  { %1985 = vmatpush1.bf16.msra.mxu0 %v3196_v9  ;;  %2157 = vmatpush1.bf16.msra.mxu1 %v3199_v10  ;;  %v3280_v9 = vld [vmem:[#allocation5 + $0x4e0] ss:$16 sps:$4 sm:$0xff]   ;;  %v3283_v10 = vld [vmem:[#allocation5 + $0x4e8] ss:$16 sps:$4 sm:$0xff]  }
 0x142   :  { %1986 = vmatprep.subr.bf16.mxu0 %v3204_v11  ;;  %2158 = vmatprep.subr.bf16.mxu1 %v3207_v12  ;;  %v3288_v11 = vld [vmem:[#allocation5 + $0x504] ss:$16 sps:$4 sm:$0xff]   ;;  %v3291_v12 = vld [vmem:[#allocation5 + $0x50c] ss:$16 sps:$4 sm:$0xff]  }
 0x145   :  { %1987 = vmatpush1.bf16.msra.mxu0 %v3202_v13  ;;  %2159 = vmatpush1.bf16.msra.mxu1 %v3205_v14  ;;  %v3286_v13 = vld [vmem:[#allocation5 + $0x500] ss:$16 sps:$4 sm:$0xff]   ;;  %v3289_v14 = vld [vmem:[#allocation5 + $0x508] ss:$16 sps:$4 sm:$0xff]  }
 0x146   :  { %1988 = vmatprep.subr.bf16.mxu0 %v3210_v15  ;;  %2160 = vmatprep.subr.bf16.mxu1 %v3213_v16  ;;  %v3294_v15 = vld [vmem:[#allocation5 + $0x524] ss:$16 sps:$4 sm:$0xff]   ;;  %v3297_v16 = vld [vmem:[#allocation5 + $0x52c] ss:$16 sps:$4 sm:$0xff]  }
 0x149   :  { %1989 = vmatpush1.bf16.msra.mxu0 %v3208_v17  ;;  %2161 = vmatpush1.bf16.msra.mxu1 %v3211_v18  ;;  %v3292_v17 = vld [vmem:[#allocation5 + $0x520] ss:$16 sps:$4 sm:$0xff]   ;;  %v3295_v18 = vld [vmem:[#allocation5 + $0x528] ss:$16 sps:$4 sm:$0xff]  }
 0x14a   :  { %1990 = vmatprep.subr.bf16.mxu0 %v3216_v20  ;;  %2162 = vmatprep.subr.bf16.mxu1 %v3219_v27  ;;  %v3300_v20 = vld [vmem:[#allocation5 + $0x544] ss:$16 sps:$4 sm:$0xff]   ;;  %v3303_v27 = vld [vmem:[#allocation5 + $0x54c] ss:$16 sps:$4 sm:$0xff]  }
 0x14d   :  { %1991 = vmatpush1.bf16.msra.mxu0 %v3214_v29  ;;  %2163 = vmatpush1.bf16.msra.mxu1 %v3217_v30  ;;  %v3298_v29 = vld [vmem:[#allocation5 + $0x540] ss:$16 sps:$4 sm:$0xff]   ;;  %v3301_v30 = vld [vmem:[#allocation5 + $0x548] ss:$16 sps:$4 sm:$0xff]  }
 0x14e   :  { %1992 = vmatprep.subr.bf16.mxu0 %v3222_v31  ;;  %2164 = vmatprep.subr.bf16.mxu1 %v3225_v32  ;;  %v3306_v31 = vld [vmem:[#allocation5 + $0x564] ss:$16 sps:$4 sm:$0xff]   ;;  %v3309_v32 = vld [vmem:[#allocation5 + $0x56c] ss:$16 sps:$4 sm:$0xff]  }
 0x151   :  { %1993 = vmatpush1.bf16.msra.mxu0 %v3220_v33  ;;  %2165 = vmatpush1.bf16.msra.mxu1 %v3223_v34  ;;  %v3304_v33 = vld [vmem:[#allocation5 + $0x560] ss:$16 sps:$4 sm:$0xff]   ;;  %v3307_v34 = vld [vmem:[#allocation5 + $0x568] ss:$16 sps:$4 sm:$0xff]  }
 0x152   :  { %1994 = vmatprep.subr.bf16.mxu0 %v3228_v35  ;;  %2166 = vmatprep.subr.bf16.mxu1 %v3231_v36  ;;  %v3312_v35 = vld [vmem:[#allocation5 + $0x584] ss:$16 sps:$4 sm:$0xff]   ;;  %v3315_v36 = vld [vmem:[#allocation5 + $0x58c] ss:$16 sps:$4 sm:$0xff]  }
 0x155   :  { %1995 = vmatpush1.bf16.msra.mxu0 %v3226_v37  ;;  %2167 = vmatpush1.bf16.msra.mxu1 %v3229_v38  ;;  %v3310_v37 = vld [vmem:[#allocation5 + $0x580] ss:$16 sps:$4 sm:$0xff]   ;;  %v3313_v38 = vld [vmem:[#allocation5 + $0x588] ss:$16 sps:$4 sm:$0xff]  }
 0x156   :  { %1996 = vmatprep.subr.bf16.mxu0 %v3234_v39  ;;  %2168 = vmatprep.subr.bf16.mxu1 %v3237_v40  ;;  %v3318_v39 = vld [vmem:[#allocation5 + $0x5a4] ss:$16 sps:$4 sm:$0xff]   ;;  %v3321_v40 = vld [vmem:[#allocation5 + $0x5ac] ss:$16 sps:$4 sm:$0xff]  }
 0x159   :  { %1997 = vmatpush1.bf16.msra.mxu0 %v3232_v41  ;;  %2169 = vmatpush1.bf16.msra.mxu1 %v3235_v42  ;;  %v3316_v41 = vld [vmem:[#allocation5 + $0x5a0] ss:$16 sps:$4 sm:$0xff]   ;;  %v3319_v42 = vld [vmem:[#allocation5 + $0x5a8] ss:$16 sps:$4 sm:$0xff]  }
 0x15a   :  { %2009 = vmatprep.subr.bf16.mxu0 %v3240_v43  ;;  %2181 = vmatprep.subr.bf16.mxu1 %v3243_v44  ;;  %v3324_v43 = vld [vmem:[#allocation5 + $0x5c4] ss:$16 sps:$4 sm:$0xff]   ;;  %v3327_v44 = vld [vmem:[#allocation5 + $0x5cc] ss:$16 sps:$4 sm:$0xff]  }
 0x15c   :  { %1999 = vmatmul.mubr.bf16.vlgmr.msra.gmra.mrb[8].mxu0 %v3685_v63  ;;  %2171 = vmatmul.mubr.bf16.vlgmr.msra.gmra.mrb[8].mxu1 %v3685_v63  ;;  %v3261_v63 = vld [vmem:[#allocation5 + $0x46c] ss:$16 sps:$4 sm:$0xff]  }
 0x15d   :  { %2010 = vmatpush1.bf16.msra.mxu0 %v3238_v45  ;;  %2182 = vmatpush1.bf16.msra.mxu1 %v3241_v46  ;;  %v3322_v45 = vld [vmem:[#allocation5 + $0x5c0] ss:$16 sps:$4 sm:$0xff]   ;;  %v3325_v46 = vld [vmem:[#allocation5 + $0x5c8] ss:$16 sps:$4 sm:$0xff]  }
 0x15e   :  { %2011 = vmatprep.subr.bf16.mxu0 %v3246_v47  ;;  %2183 = vmatprep.subr.bf16.mxu1 %v3249_v48  ;;  %v3330_v47 = vld [vmem:[#allocation5 + $0x5e4] ss:$16 sps:$4 sm:$0xff]   ;;  %v3333_v48 = vld [vmem:[#allocation5 + $0x5ec] ss:$16 sps:$4 sm:$0xff]  }
 0x15f   :  { %2041 = vmatprep.mubr.bf16.mxu0 %v3689_v28  ;;  %2213 = vmatprep.mubr.bf16.mxu1 %v3689_v28  ;;  %v3265_v28 = vld [vmem:[#allocation5 + $0x488] ss:$16 sps:$4 sm:$0xff]  }
 0x161   :  { %2012 = vmatpush1.bf16.msra.mxu0 %v3244_v49  ;;  %2184 = vmatpush1.bf16.msra.mxu1 %v3247_v50  ;;  %v3328_v49 = vld [vmem:[#allocation5 + $0x5e0] ss:$16 sps:$4 sm:$0xff]   ;;  %v3331_v50 = vld [vmem:[#allocation5 + $0x5e8] ss:$16 sps:$4 sm:$0xff]  }
 0x162   :  { %2013 = vmatprep.subr.bf16.mxu0 %v3252_v51  ;;  %2185 = vmatprep.subr.bf16.mxu1 %v3255_v52  ;;  %v3336_v51 = vld [vmem:[#allocation5 + $0x604] ss:$16 sps:$4 sm:$0xff]   ;;  %v3339_v52 = vld [vmem:[#allocation5 + $0x60c] ss:$16 sps:$4 sm:$0xff]  }
 0x165   :  { %2014 = vmatpush1.bf16.msra.mxu0 %v3250_v53  ;;  %2186 = vmatpush1.bf16.msra.mxu1 %v3253_v54  ;;  %v3334_v53 = vld [vmem:[#allocation5 + $0x600] ss:$16 sps:$4 sm:$0xff]   ;;  %v3337_v54 = vld [vmem:[#allocation5 + $0x608] ss:$16 sps:$4 sm:$0xff]  }
 0x166   :  { %2015 = vmatprep.subr.bf16.mxu0 %v3258_v55  ;;  %2187 = vmatprep.subr.bf16.mxu1 %v3261_v63  ;;  %v3342_v55 = vld [vmem:[#allocation5 + $0x624] ss:$16 sps:$4 sm:$0xff]   ;;  %v3345_v63 = vld [vmem:[#allocation5 + $0x62c] ss:$16 sps:$4 sm:$0xff]  }
 0x169   :  { %2016 = vmatpush1.bf16.msra.mxu0 %v3256_v56  ;;  %2188 = vmatpush1.bf16.msra.mxu1 %v3259_v57  ;;  %v3340_v56 = vld [vmem:[#allocation5 + $0x620] ss:$16 sps:$4 sm:$0xff]   ;;  %v3343_v57 = vld [vmem:[#allocation5 + $0x628] ss:$16 sps:$4 sm:$0xff]  }
 0x16a   :  { %2017 = vmatprep.subr.bf16.mxu0 %v3264_v58  ;;  %2189 = vmatprep.subr.bf16.mxu1 %v3267_v59  ;;  %v3348_v58 = vld [vmem:[#allocation5 + $0x644] ss:$16 sps:$4 sm:$0xff]   ;;  %v3351_v59 = vld [vmem:[#allocation5 + $0x64c] ss:$16 sps:$4 sm:$0xff]  }
 0x16d   :  { %2018 = vmatpush1.bf16.msra.mxu0 %v3262_v60  ;;  %2190 = vmatpush1.bf16.msra.mxu1 %v3265_v28  ;;  %v3346_v60 = vld [vmem:[#allocation5 + $0x640] ss:$16 sps:$4 sm:$0xff]   ;;  %v3349_v28 = vld [vmem:[#allocation5 + $0x648] ss:$16 sps:$4 sm:$0xff]  }
 0x16e   :  { %2019 = vmatprep.subr.bf16.mxu0 %v3270_v61  ;;  %2191 = vmatprep.subr.bf16.mxu1 %v3273_v62  ;;  %v3354_v61 = vld [vmem:[#allocation5 + $0x664] ss:$16 sps:$4 sm:$0xff]   ;;  %v3352_v62 = vld [vmem:[#allocation5 + $0x660] ss:$16 sps:$4 sm:$0xff]  }
 0x171   :  { %2020 = vmatpush1.bf16.msra.mxu0 %v3268_v23  ;;  %2192 = vmatpush1.bf16.msra.mxu1 %v3271_v0  ;;  %v3355_v23 = vld [vmem:[#allocation5 + $0x668] ss:$16 sps:$4 sm:$0xff]   ;;  %v3360_v0 = vld [vmem:[#allocation5 + $0x684] ss:$16 sps:$4 sm:$0xff]  }
 0x172   :  { %2021 = vmatprep.subr.bf16.mxu0 %v3276_v2  ;;  %2193 = vmatprep.subr.bf16.mxu1 %v3279_v3  ;;  %v3363_v2 = vld [vmem:[#allocation5 + $0x68c] ss:$16 sps:$4 sm:$0xff]   ;;  %v3358_v3 = vld [vmem:[#allocation5 + $0x680] ss:$16 sps:$4 sm:$0xff]  }
 0x175   :  { %2022 = vmatpush1.bf16.msra.mxu0 %v3274_v5  ;;  %2194 = vmatpush1.bf16.msra.mxu1 %v3277_v6  ;;  %v3366_v5 = vld [vmem:[#allocation5 + $0x6a4] ss:$16 sps:$4 sm:$0xff]   ;;  %v3369_v6 = vld [vmem:[#allocation5 + $0x6ac] ss:$16 sps:$4 sm:$0xff]  }
 0x176   :  { %2023 = vmatprep.subr.bf16.mxu0 %v3282_v7  ;;  %2195 = vmatprep.subr.bf16.mxu1 %v3285_v8  ;;  %v3364_v7 = vld [vmem:[#allocation5 + $0x6a0] ss:$16 sps:$4 sm:$0xff]   ;;  %v3367_v8 = vld [vmem:[#allocation5 + $0x6a8] ss:$16 sps:$4 sm:$0xff]  }
 0x179   :  { %2024 = vmatpush1.bf16.msra.mxu0 %v3280_v9  ;;  %2196 = vmatpush1.bf16.msra.mxu1 %v3283_v10  ;;  %v3372_v9 = vld [vmem:[#allocation5 + $0x6c4] ss:$16 sps:$4 sm:$0xff]   ;;  %v3375_v10 = vld [vmem:[#allocation5 + $0x6cc] ss:$16 sps:$4 sm:$0xff]  }
 0x17a   :  { %2025 = vmatprep.subr.bf16.mxu0 %v3288_v11  ;;  %2197 = vmatprep.subr.bf16.mxu1 %v3291_v12  ;;  %v3370_v11 = vld [vmem:[#allocation5 + $0x6c0] ss:$16 sps:$4 sm:$0xff]   ;;  %v3373_v12 = vld [vmem:[#allocation5 + $0x6c8] ss:$16 sps:$4 sm:$0xff]  }
 0x17d   :  { %2026 = vmatpush1.bf16.msra.mxu0 %v3286_v13  ;;  %2198 = vmatpush1.bf16.msra.mxu1 %v3289_v14  ;;  %v3378_v13 = vld [vmem:[#allocation5 + $0x6e4] ss:$16 sps:$4 sm:$0xff]   ;;  %v3381_v14 = vld [vmem:[#allocation5 + $0x6ec] ss:$16 sps:$4 sm:$0xff]  }
 0x17e   :  { %2027 = vmatprep.subr.bf16.mxu0 %v3294_v15  ;;  %2199 = vmatprep.subr.bf16.mxu1 %v3297_v16  ;;  %v3376_v15 = vld [vmem:[#allocation5 + $0x6e0] ss:$16 sps:$4 sm:$0xff]   ;;  %v3379_v16 = vld [vmem:[#allocation5 + $0x6e8] ss:$16 sps:$4 sm:$0xff]  }
 0x181   :  { %2028 = vmatpush1.bf16.msra.mxu0 %v3292_v17  ;;  %2200 = vmatpush1.bf16.msra.mxu1 %v3295_v18  ;;  %v3384_v17 = vld [vmem:[#allocation5 + $0x704] ss:$16 sps:$4 sm:$0xff]   ;;  %v3387_v18 = vld [vmem:[#allocation5 + $0x70c] ss:$16 sps:$4 sm:$0xff]  }
 0x182   :  { %2029 = vmatprep.subr.bf16.mxu0 %v3300_v20  ;;  %2201 = vmatprep.subr.bf16.mxu1 %v3303_v27  ;;  %v3382_v20 = vld [vmem:[#allocation5 + $0x700] ss:$16 sps:$4 sm:$0xff]   ;;  %v3385_v27 = vld [vmem:[#allocation5 + $0x708] ss:$16 sps:$4 sm:$0xff]  }
 0x185   :  { %2030 = vmatpush1.bf16.msra.mxu0 %v3298_v29  ;;  %2202 = vmatpush1.bf16.msra.mxu1 %v3301_v30  ;;  %v3390_v29 = vld [vmem:[#allocation5 + $0x724] ss:$16 sps:$4 sm:$0xff]   ;;  %v3393_v30 = vld [vmem:[#allocation5 + $0x72c] ss:$16 sps:$4 sm:$0xff]  }
 0x186   :  { %2031 = vmatprep.subr.bf16.mxu0 %v3306_v31  ;;  %2203 = vmatprep.subr.bf16.mxu1 %v3309_v32  ;;  %v3388_v31 = vld [vmem:[#allocation5 + $0x720] ss:$16 sps:$4 sm:$0xff]   ;;  %v3391_v32 = vld [vmem:[#allocation5 + $0x728] ss:$16 sps:$4 sm:$0xff]  }
 0x189   :  { %2032 = vmatpush1.bf16.msra.mxu0 %v3304_v33  ;;  %2204 = vmatpush1.bf16.msra.mxu1 %v3307_v34  ;;  %v3396_v33 = vld [vmem:[#allocation5 + $0x744] ss:$16 sps:$4 sm:$0xff]   ;;  %v3399_v34 = vld [vmem:[#allocation5 + $0x74c] ss:$16 sps:$4 sm:$0xff]  }
 0x18a   :  { %2033 = vmatprep.subr.bf16.mxu0 %v3312_v35  ;;  %2205 = vmatprep.subr.bf16.mxu1 %v3315_v36  ;;  %v3394_v35 = vld [vmem:[#allocation5 + $0x740] ss:$16 sps:$4 sm:$0xff]   ;;  %v3397_v36 = vld [vmem:[#allocation5 + $0x748] ss:$16 sps:$4 sm:$0xff]  }
 0x18d   :  { %2034 = vmatpush1.bf16.msra.mxu0 %v3310_v37  ;;  %2206 = vmatpush1.bf16.msra.mxu1 %v3313_v38  ;;  %v3402_v37 = vld [vmem:[#allocation5 + $0x764] ss:$16 sps:$4 sm:$0xff]   ;;  %v3405_v38 = vld [vmem:[#allocation5 + $0x76c] ss:$16 sps:$4 sm:$0xff]  }
 0x18e   :  { %2035 = vmatprep.subr.bf16.mxu0 %v3318_v39  ;;  %2207 = vmatprep.subr.bf16.mxu1 %v3321_v40  ;;  %v3400_v39 = vld [vmem:[#allocation5 + $0x760] ss:$16 sps:$4 sm:$0xff]   ;;  %v3403_v40 = vld [vmem:[#allocation5 + $0x768] ss:$16 sps:$4 sm:$0xff]  }
 0x191   :  { %2036 = vmatpush1.bf16.msra.mxu0 %v3316_v41  ;;  %2208 = vmatpush1.bf16.msra.mxu1 %v3319_v42  ;;  %v3408_v41 = vld [vmem:[#allocation5 + $0x784] ss:$16 sps:$4 sm:$0xff]   ;;  %v3411_v42 = vld [vmem:[#allocation5 + $0x78c] ss:$16 sps:$4 sm:$0xff]  }
 0x192   :  { %2037 = vmatprep.subr.bf16.mxu0 %v3324_v43  ;;  %2209 = vmatprep.subr.bf16.mxu1 %v3327_v44  ;;  %v3406_v43 = vld [vmem:[#allocation5 + $0x780] ss:$16 sps:$4 sm:$0xff]   ;;  %v3409_v44 = vld [vmem:[#allocation5 + $0x788] ss:$16 sps:$4 sm:$0xff]  }
 0x195   :  { %2038 = vmatpush1.bf16.msra.mxu0 %v3322_v45  ;;  %2210 = vmatpush1.bf16.msra.mxu1 %v3325_v46  ;;  %v3414_v45 = vld [vmem:[#allocation5 + $0x7a4] ss:$16 sps:$4 sm:$0xff]   ;;  %v3417_v46 = vld [vmem:[#allocation5 + $0x7ac] ss:$16 sps:$4 sm:$0xff]  }
 0x196   :  { %2039 = vmatprep.subr.bf16.mxu0 %v3330_v47  ;;  %2211 = vmatprep.subr.bf16.mxu1 %v3333_v48  ;;  %v3412_v47 = vld [vmem:[#allocation5 + $0x7a0] ss:$16 sps:$4 sm:$0xff]   ;;  %v3415_v48 = vld [vmem:[#allocation5 + $0x7a8] ss:$16 sps:$4 sm:$0xff]  }
 0x199   :  { %2040 = vmatpush1.bf16.msra.mxu0 %v3328_v49  ;;  %2212 = vmatpush1.bf16.msra.mxu1 %v3331_v50  ;;  %v3420_v49 = vld [vmem:[#allocation5 + $0x7c4] ss:$16 sps:$4 sm:$0xff]   ;;  %v3423_v50 = vld [vmem:[#allocation5 + $0x7cc] ss:$16 sps:$4 sm:$0xff]  }
 0x19a   :  { %2052 = vmatprep.subr.bf16.mxu0 %v3336_v51  ;;  %2224 = vmatprep.subr.bf16.mxu1 %v3339_v52  ;;  %v3418_v51 = vld [vmem:[#allocation5 + $0x7c0] ss:$16 sps:$4 sm:$0xff]   ;;  %v3421_v52 = vld [vmem:[#allocation5 + $0x7c8] ss:$16 sps:$4 sm:$0xff]  }
 0x19c   :  { %2042 = vmatmul.mubr.bf16.vlgmr.msra.gmra.mrb[8].mxu0 %v3687_v19  ;;  %2214 = vmatmul.mubr.bf16.vlgmr.msra.gmra.mrb[8].mxu1 %v3687_v19  ;;  %v3357_v19 = vld [vmem:[#allocation5 + $0x66c] ss:$16 sps:$4 sm:$0xff]  }
 0x19d   :  { %2053 = vmatpush1.bf16.msra.mxu0 %v3334_v53  ;;  %2225 = vmatpush1.bf16.msra.mxu1 %v3337_v54  ;;  %v3426_v53 = vld [vmem:[#allocation5 + $0x7e4] ss:$16 sps:$4 sm:$0xff]   ;;  %v3429_v54 = vld [vmem:[#allocation5 + $0x7ec] ss:$16 sps:$4 sm:$0xff]  }
 0x19e   :  { %2054 = vmatprep.subr.bf16.mxu0 %v3342_v55  ;;  %2226 = vmatprep.subr.bf16.mxu1 %v3345_v63  ;;  %v3424_v55 = vld [vmem:[#allocation5 + $0x7e0] ss:$16 sps:$4 sm:$0xff]   ;;  %v3427_v63 = vld [vmem:[#allocation5 + $0x7e8] ss:$16 sps:$4 sm:$0xff]  }
 0x19f   :  { %2084 = vmatprep.mubr.bf16.mxu0 %v3697_v4  ;;  %2256 = vmatprep.mubr.bf16.mxu1 %v3697_v4  ;;  %v3361_v4 = vld [vmem:[#allocation5 + $0x688] ss:$16 sps:$4 sm:$0xff]  }
 0x1a1   :  { %2055 = vmatpush1.bf16.msra.mxu0 %v3340_v56  ;;  %2227 = vmatpush1.bf16.msra.mxu1 %v3343_v57  ;;  %v3430_v56 = vld [vmem:[#allocation7 + $0x40] sm:$0xff]  }
 0x1a2   :  { %2056 = vmatprep.subr.bf16.mxu0 %v3348_v58  ;;  %2228 = vmatprep.subr.bf16.mxu1 %v3351_v59  ;;  %v3431_v57 = vld [vmem:[#allocation7 + $0xc0] sm:$0xff]  }
 0x1a3   :  { %v3432_v58 = vld [vmem:[#allocation7] sm:$0xff]  }
 0x1a4   :  { %v3433_v59 = vld [vmem:[#allocation7 + $0x80] sm:$0xff]  }
 0x1a5   :  { %2057 = vmatpush1.bf16.msra.mxu0 %v3346_v60  ;;  %2229 = vmatpush1.bf16.msra.mxu1 %v3349_v28  ;;  %v3434_v60 = vld [vmem:[#allocation7 + $0x48] sm:$0xff]  }
 0x1a6   :  { %2058 = vmatprep.subr.bf16.mxu0 %v3354_v61  ;;  %2230 = vmatprep.subr.bf16.mxu1 %v3357_v19  ;;  %v3435_v28 = vld [vmem:[#allocation7 + $0xc8] sm:$0xff]  }
 0x1a7   :  { %v3436_v61 = vld [vmem:[#allocation7 + $0x8] sm:$0xff]  }
 0x1a8   :  { %v3437_v19 = vld [vmem:[#allocation7 + $0x88] sm:$0xff]  }
 0x1a9   :  { %2059 = vmatpush1.bf16.msra.mxu0 %v3352_v62  ;;  %2231 = vmatpush1.bf16.msra.mxu1 %v3355_v23  ;;  %v3438_v62 = vld [vmem:[#allocation7 + $0x50] sm:$0xff]  }
 0x1aa   :  { %2060 = vmatprep.subr.bf16.mxu0 %v3360_v0  ;;  %2232 = vmatprep.subr.bf16.mxu1 %v3363_v2  ;;  %v3439_v23 = vld [vmem:[#allocation7 + $0xd0] sm:$0xff]  }
 0x1ab   :  { %v3440_v0 = vld [vmem:[#allocation7 + $0x10] sm:$0xff]  }
 0x1ac   :  { %v3441_v2 = vld [vmem:[#allocation7 + $0x90] sm:$0xff]  }
 0x1ad   :  { %2061 = vmatpush1.bf16.msra.mxu0 %v3358_v3  ;;  %2233 = vmatpush1.bf16.msra.mxu1 %v3361_v4  ;;  %v3442_v3 = vld [vmem:[#allocation7 + $0x58] sm:$0xff]  }
 0x1ae   :  { %2062 = vmatprep.subr.bf16.mxu0 %v3366_v5  ;;  %2234 = vmatprep.subr.bf16.mxu1 %v3369_v6  ;;  %v3443_v4 = vld [vmem:[#allocation7 + $0xd8] sm:$0xff]   ;;  %v3446_v6 = vld [vmem:[#allocation7 + $0x60] sm:$0xff]  }
 0x1af   :  { %v3444_v5 = vld [vmem:[#allocation7 + $0x18] sm:$0xff]  }
 0x1b1   :  { %2063 = vmatpush1.bf16.msra.mxu0 %v3364_v7  ;;  %2235 = vmatpush1.bf16.msra.mxu1 %v3367_v8  ;;  %v3447_v7 = vld [vmem:[#allocation7 + $0xe0] sm:$0xff]  }
 0x1b2   :  { %2064 = vmatprep.subr.bf16.mxu0 %v3372_v9  ;;  %2236 = vmatprep.subr.bf16.mxu1 %v3375_v10  ;;  %v3448_v8 = vld [vmem:[#allocation7 + $0x20] sm:$0xff]   ;;  %v3450_v10 = vld [vmem:[#allocation7 + $0x68] sm:$0xff]  }
 0x1b3   :  { %v3449_v9 = vld [vmem:[#allocation7 + $0xa0] sm:$0xff]  }
 0x1b5   :  { %2065 = vmatpush1.bf16.msra.mxu0 %v3370_v11  ;;  %2237 = vmatpush1.bf16.msra.mxu1 %v3373_v12  ;;  %v3451_v11 = vld [vmem:[#allocation7 + $0xe8] sm:$0xff]  }
 0x1b6   :  { %2066 = vmatprep.subr.bf16.mxu0 %v3378_v13  ;;  %2238 = vmatprep.subr.bf16.mxu1 %v3381_v14  ;;  %v3452_v12 = vld [vmem:[#allocation7 + $0x28] sm:$0xff]   ;;  %v3454_v14 = vld [vmem:[#allocation7 + $0x70] sm:$0xff]  }
 0x1b7   :  { %v3453_v13 = vld [vmem:[#allocation7 + $0xa8] sm:$0xff]  }
 0x1b9   :  { %2067 = vmatpush1.bf16.msra.mxu0 %v3376_v15  ;;  %2239 = vmatpush1.bf16.msra.mxu1 %v3379_v16  ;;  %v3455_v15 = vld [vmem:[#allocation7 + $0xf0] sm:$0xff]  }
 0x1ba   :  { %2068 = vmatprep.subr.bf16.mxu0 %v3384_v17  ;;  %2240 = vmatprep.subr.bf16.mxu1 %v3387_v18  ;;  %v3456_v16 = vld [vmem:[#allocation7 + $0x30] sm:$0xff]   ;;  %v3458_v18 = vld [vmem:[#allocation7 + $0x78] sm:$0xff]  }
 0x1bb   :  { %v3457_v17 = vld [vmem:[#allocation7 + $0xb0] sm:$0xff]  }
 0x1bd   :  { %2069 = vmatpush1.bf16.msra.mxu0 %v3382_v20  ;;  %2241 = vmatpush1.bf16.msra.mxu1 %v3385_v27  ;;  %v3459_v20 = vld [vmem:[#allocation7 + $0xf8] sm:$0xff]  }
 0x1be   :  { %2070 = vmatprep.subr.bf16.mxu0 %v3390_v29  ;;  %2242 = vmatprep.subr.bf16.mxu1 %v3393_v30  ;;  %v3460_v27 = vld [vmem:[#allocation7 + $0x38] sm:$0xff]  }
 0x1bf   :  { %v3461_v29 = vld [vmem:[#allocation7 + $0xb8] sm:$0xff]  }
 0x1c0   :  { %v621_v30 = vld [vmem:[%s3739_s4] sm:$0xf] }
 0x1c1   :  { %2071 = vmatpush1.bf16.msra.mxu0 %v3388_v31  ;;  %2243 = vmatpush1.bf16.msra.mxu1 %v3391_v32  ;;  %v626_v31 = vrot.slane %v621_v30, %v77_v22  ;;  %v634_v32 = vrot.slane %v621_v30, %v85_v25 }
 0x1c2   :  { %2072 = vmatprep.subr.bf16.mxu0 %v3396_v33  ;;  %2244 = vmatprep.subr.bf16.mxu1 %v3399_v34  ;;  %v630_v33 = vrot.slane %v621_v30, %v81_v24  ;;  %v638_v34 = vrot.slane %v621_v30, %v89_v26 }
 0x1c5   :  { %2073 = vmatpush1.bf16.msra.mxu0 %v3394_v35  ;;  %2245 = vmatpush1.bf16.msra.mxu1 %v3397_v36 }
 0x1c6   :  { %2074 = vmatprep.subr.bf16.mxu0 %v3402_v37  ;;  %2246 = vmatprep.subr.bf16.mxu1 %v3405_v38 }
 0x1c9   :  { %2075 = vmatpush1.bf16.msra.mxu0 %v3400_v39  ;;  %2247 = vmatpush1.bf16.msra.mxu1 %v3403_v40 }
 0x1ca   :  { %2076 = vmatprep.subr.bf16.mxu0 %v3408_v41  ;;  %2248 = vmatprep.subr.bf16.mxu1 %v3411_v42 }
 0x1cd   :  { %2077 = vmatpush1.bf16.msra.mxu0 %v3406_v43  ;;  %2249 = vmatpush1.bf16.msra.mxu1 %v3409_v44 }
 0x1ce   :  { %2078 = vmatprep.subr.bf16.mxu0 %v3414_v45  ;;  %2250 = vmatprep.subr.bf16.mxu1 %v3417_v46 }
 0x1d1   :  { %2079 = vmatpush1.bf16.msra.mxu0 %v3412_v47  ;;  %2251 = vmatpush1.bf16.msra.mxu1 %v3415_v48 }
 0x1d2   :  { %2080 = vmatprep.subr.bf16.mxu0 %v3420_v49  ;;  %2252 = vmatprep.subr.bf16.mxu1 %v3423_v50 }
 0x1d5   :  { %2081 = vmatpush1.bf16.msra.mxu0 %v3418_v51  ;;  %2253 = vmatpush1.bf16.msra.mxu1 %v3421_v52 }
 0x1d6   :  { %2082 = vmatprep.subr.bf16.mxu0 %v3426_v53  ;;  %2254 = vmatprep.subr.bf16.mxu1 %v3429_v54 }
 0x1d9   :  { %2083 = vmatpush1.bf16.msra.mxu0 %v3424_v55  ;;  %2255 = vmatpush1.bf16.msra.mxu1 %v3427_v63 }
 0x1da   :  { %2950 = vmatprep.subr.bf16.mxu0 %v3430_v56  ;;  %2972 = vmatprep.subr.bf16.mxu1 %v3431_v57 }
 0x1dc   :  { %2085 = vmatmul.mubr.bf16.vlgmr.msra.gmra.mrb[8].mxu0 %v3695_v1  ;;  %2257 = vmatmul.mubr.bf16.vlgmr.msra.gmra.mrb[8].mxu1 %v3695_v1  ;;  %v3445_v1 = vld [vmem:[#allocation7 + $0x98] sm:$0xff]  }
 0x1dd   :  { %2951 = vmatpush3.bf16.msra.mxu0 %v3432_v58  ;;  %2973 = vmatpush3.bf16.msra.mxu1 %v3433_v59  ;;  %v2917_v59 = vld [vmem:[%s3741_s6] ss:$0 sm:$0xff]  ;;  %s3528_s6 = scalar_lea.vmem %s2632_s21, 256 }
 0x1de   :  { %2952 = vmatprep.subr.bf16.mxu0 %v3434_v60  ;;  %2974 = vmatprep.subr.bf16.mxu1 %v3435_v28  ;;  %p3529_p10 = scmp.ne.s32.totalorder %s2632_s21, %s3528_s6  ;;  %p3534_p12 = scmp.lt.s32.totalorder %s3528_s6, %s3528_s6 }
 0x1e0   :  { %p3535_p13 = por %p3534_p12, %p3533_p11 }
 0x1e1   :  { %2953 = vmatpush3.bf16.msra.mxu0 %v3436_v61  ;;  %2975 = vmatpush3.bf16.msra.mxu1 %v3437_v19 }
 0x1e2   :  { %2954 = vmatprep.subr.bf16.mxu0 %v3438_v62  ;;  %2976 = vmatprep.subr.bf16.mxu1 %v3439_v23  ;;  %p3536_p0 = pnand %p3535_p13, %p3529_p10 }
 0x1e5   :  { %2955 = vmatpush3.bf16.msra.mxu0 %v3440_v0  ;;  %2977 = vmatpush3.bf16.msra.mxu1 %v3441_v2 }
 0x1e6   :  { %2956 = vmatprep.subr.bf16.mxu0 %v3442_v3  ;;  %2978 = vmatprep.subr.bf16.mxu1 %v3443_v4 }
 0x1e9   :  { %2957 = vmatpush3.bf16.msra.mxu0 %v3444_v5  ;;  %2979 = vmatpush3.bf16.msra.mxu1 %v3445_v1 }
 0x1ea   :  { %2958 = vmatprep.subr.bf16.mxu0 %v3446_v6  ;;  %2980 = vmatprep.subr.bf16.mxu1 %v3447_v7 }
 0x1ed   :  { %2959 = vmatpush3.bf16.msra.mxu0 %v3448_v8  ;;  %2981 = vmatpush3.bf16.msra.mxu1 %v3449_v9 }
 0x1ee   :  { %2960 = vmatprep.subr.bf16.mxu0 %v3450_v10  ;;  %2982 = vmatprep.subr.bf16.mxu1 %v3451_v11 }
 0x1f1   :  { %2961 = vmatpush3.bf16.msra.mxu0 %v3452_v12  ;;  %2983 = vmatpush3.bf16.msra.mxu1 %v3453_v13 }
 0x1f2   :  { %2962 = vmatprep.subr.bf16.mxu0 %v3454_v14  ;;  %2984 = vmatprep.subr.bf16.mxu1 %v3455_v15 }
 0x1f5   :  { %2963 = vmatpush3.bf16.msra.mxu0 %v3456_v16  ;;  %2985 = vmatpush3.bf16.msra.mxu1 %v3457_v17 }
 0x1f6   :  { %2964 = vmatprep.subr.bf16.mxu0 %v3458_v18  ;;  %2986 = vmatprep.subr.bf16.mxu1 %v3459_v20 }
 0x1f9   :  { %2965 = vmatpush3.bf16.msra.mxu0 %v3460_v27  ;;  %2987 = vmatpush3.bf16.msra.mxu1 %v3461_v29 }
 0x2af   :  { %v2086_v35 = vpop.f32.mrb[8].mxu0  ;;  %v2258_v36 = vpop.f32.mrb[8].mxu1 }
 0x2b0   :  { %v2994_v37 = vadd.f32 %v2086_v35, %v626_v31  ;;  %v2998_v38 = vadd.f32 %v2258_v36, %v634_v32  ;;  %v2088_v39 = vpop.f32.mrb[9].mxu0  ;;  %v2260_v40 = vpop.f32.mrb[9].mxu1 }
 0x2b1   :  { %v2995_v41 = vadd.f32 %v2088_v39, %v630_v33  ;;  %v2999_v42 = vadd.f32 %v2260_v40, %v638_v34  ;;  %v2090_v43 = vpop.f32.mrb[10].mxu0  ;;  %v2262_v44 = vpop.f32.mrb[10].mxu1 }
 0x2b2   :  { %v2996_v22 = vadd.f32 %v2090_v43, %v626_v31  ;;  %v3000_v45 = vadd.f32 %v2262_v44, %v634_v32  ;;  %v2092_v46 = vpop.f32.mrb[11].mxu0  ;;  %v2264_v25 = vpop.f32.mrb[11].mxu1  ;;  %v2267_v24 = vmax.f32 %v2994_v37, 0.0  ;;  %v2269_v49 = vmax.f32 %v2998_v38, 0.0 }
 0x2b3   :  { %v2997_v47 = vadd.f32 %v2092_v46, %v630_v33  ;;  %v3001_v48 = vadd.f32 %v2264_v25, %v638_v34  ;;  %v2268_v50 = vmax.f32 %v2995_v41, 0.0  ;;  %v2270_v51 = vmax.f32 %v2999_v42, 0.0 }
 0x2b4   :  { %v2271_v21 = vmax.f32 %v2996_v22, 0.0  ;;  %v2273_v26 = vmax.f32 %v3000_v45, 0.0 }
 0x2b5   :  { %v2272_v52 = vmax.f32 %v2997_v47, 0.0  ;;  %v2274_v53 = vmax.f32 %v3001_v48, 0.0 }
 0x2b6   :  { %v2275_v54 = vpack.c.bf16 %v2271_v21, %v2267_v24  ;;  %v2277_v55 = vpack.c.bf16 %v2273_v26, %v2269_v49 }
 0x2b7   :  { %v2276_v63 = vpack.c.bf16 %v2272_v52, %v2268_v50  ;;  %v2278_v56 = vpack.c.bf16 %v2274_v53, %v2270_v51 }
 0x2b9   :  { %2574 = vmatprep.mubr.bf16.mxu0 %v2276_v63  ;;  %2615 = vmatprep.mubr.bf16.mxu1 %v2278_v56 }
 0x2ba   :  { %2575 = vmatmul.mubr.bf16.vlgmr.msra.gmra.mrb[12].mxu0 %v2275_v54  ;;  %2616 = vmatmul.mubr.bf16.vlgmr.msra.gmra.mrb[12].mxu1 %v2277_v55 }
 0x38d   :  { %v2966_v57 = vpop.f32.mrb[12].mxu0  ;;  %v2988_v58 = vpop.f32.mrb[12].mxu1 }
 0x38e   :  { %v2967_v60 = vpop.f32.mrb[13].mxu0  ;;  %v2989_v28 = vpop.f32.mrb[13].mxu1 }
 0x38f   :  { %v2968_v61 = vadd.f32 %v2967_v60, %v2966_v57  ;;  %v2990_v19 = vadd.f32 %v2989_v28, %v2988_v58  ;;  %v2969_v62 = vpop.f32.mrb[14].mxu0  ;;  %v2991_v23 = vpop.f32.mrb[14].mxu1 }
 0x390   :  { %v2970_v0 = vpop.f32.mrb[15].mxu0  ;;  %v2992_v2 = vpop.f32.mrb[15].mxu1 }
 0x391   :  { %v2577_v3 = vadd.f32 %v2968_v61, %v2917_v59  ;;  %v2971_v4 = vadd.f32 %v2970_v0, %v2969_v62  ;;  %v2993_v5 = vadd.f32 %v2992_v2, %v2991_v23 }
 0x393   :  { %v2618_v1 = vadd.f32 %v2990_v19, %v2577_v3  ;;  %v2580_v6 = vadd.f32 %v2971_v4, %v2917_v59 }
 0x395   :  { %2624 = vst [vmem:[#allocation8] sm:$0xff] %v2618_v1  ;;  %v2621_v7 = vadd.f32 %v2993_v5, %v2580_v6 }
 0x397   :  { %2625 = vst [vmem:[#allocation8 + $0x8] sm:$0xff] %v2621_v7 }
 0x398   :  { %3539 = shalt.err (!%p3536_p0)
}
 0x399   :  { %s3540_s24 = scalar_lea.hbm %s3742_s7, 256 }
 0x39a   :  { %p3541_p1 = scmp.ne.s32.totalorder %s3742_s7, %s3540_s24  ;;  %p3544_p2 = scmp.lt.u32.totalorder %s3540_s24, %s3742_s7 }
 0x39c   :  { %p3546_p3 = pnand %p3544_p2, %p3541_p1 }
 0x39e   :  { %3549 = shalt.err (!%p3546_p3)
}
 0x39f   :  { %s3565_s28 = smov 128   ;;  %s3566_s29 = smov 8  }
 0x3a0   :  { %2637 = dma.vmem_to_hbm [thread:$0]  %s2632_s21, 256, %s3742_s7, [#allocation4], %s3565_s28, %s3565_s28, %s3566_s29  }
 0x3a1   :  { %3554 = dma.done.wait [#allocation4], 256  }
 0x3a2   :  { %3555 = vsyncadd [#allocation4], 4294967040 }
 0x3a3   :  { %2641 = vsyncpa [#allocation3], 1 }
 0x3a4   :  { %2642 = vsyncpa [#allocation6], 1 }
 0x3a5   :  { %2643 = vsyncpa [#allocation4], 1 }

</bundles_post_ra>
